<compile_context>
chip_gen: v7x
topology: tpu7x:2x2x1
jax: 0.10.0
libtpu: 0.0.40
codegen_flags: <defaults>
</compile_context>

<pallas_src>
import functools

import jax
import jax.numpy as jnp
from jax.experimental import pallas as pl
from jax.experimental.pallas import tpu as pltpu

VMEM_SPEC = pl.BlockSpec(memory_space=pltpu.MemorySpace.VMEM)
_SLAB_WIDTH = 256      # lane width of the packed parameter/input slab
_OUT_PAD = 128         # decoder outputs padded to a lane-dense width


def _round_up(x, m):
    return ((x + m - 1) // m) * m


def _pack_slab(entries):
    """Pack a list of (name, 2-D array) into one (rows, 256) f32 slab.

    Every entry is padded to a multiple of 8 rows so all in-kernel static
    slices are sublane aligned.  Returns (slab, index) with
    index[name] = (row_offset, rows, cols); offsets are Python ints.
    """
    index, parts, off = {}, [], 0
    for name, arr in entries:
        arr = jnp.asarray(arr, jnp.float32)
        r, c = arr.shape
        assert c <= _SLAB_WIDTH, (name, arr.shape)
        rp = _round_up(r, 8)
        buf = jnp.zeros((rp, _SLAB_WIDTH), jnp.float32).at[:r, :c].set(arr)
        parts.append(buf)
        index[name] = (off, r, c)
        off += rp
    return jnp.concatenate(parts, axis=0), index


# ----------------------------------------------------------------------------- #
# Fused MED forward kernel
# ----------------------------------------------------------------------------- #
def _med_fused_kernel(cfg, index):
    B = cfg["B"]
    T_t, T_a = cfg["T_t"], cfg["T_a"]
    Td_t, Td_a = cfg["Td_t"], cfg["Td_a"]
    E_t, E_a = cfg["E_t"], cfg["E_a"]
    H_t, H_a = cfg["H_t"], cfg["H_a"]
    Dm, heads = cfg["Dm"], cfg["heads"]
    nlt, nla = cfg["n_t_layers"], cfg["n_a_layers"]
    hd = Dm // heads
    scale = 1.0 / float(hd) ** 0.5
    f32 = jnp.float32

    def mm(a, b):
        return jnp.dot(a, b, preferred_element_type=f32)

    def kernel(slab_ref, t_out_ref, a_out_ref,
               t_gx, a_gx, t_hs, a_hs,
               t_dgx, a_dgx, t_dh, t_dctx, a_dh, a_dctx):

        def W(name):                              # static, sublane-aligned slice
            off, r, c = index[name]
            return slab_ref[off:off + r, :c]

        # ---- LSTM encoders (input-to-hidden GEMM hoisted, staged in VMEM) ----
        def run_encoder(prefix, T, E, n_layers, gx_ref, hs_ref):
            h = jnp.zeros((B, E), f32)
            for l in range(n_layers):
                wih = W(f"{prefix}_enc{l}_wih")
                whh = W(f"{prefix}_enc{l}_whh")
                bias = W(f"{prefix}_enc{l}_b")
                inp = (W(f"{prefix}_src") if l == 0
                       else hs_ref[...].reshape(T * B, E))
                gx_ref[...] = (mm(inp, wih) + bias).reshape(T, B, 4 * E)
                h = jnp.zeros((B, E), f32)
                c = jnp.zeros((B, E), f32)
                for t in range(T):                # small static recurrence
                    g = gx_ref[t] + mm(h, whh)
                    sg = jax.nn.sigmoid(g)        # one fused EUP pass (i,f,o)
                    gg = jnp.tanh(g[:, 2 * E:3 * E])
                    c = sg[:, E:2 * E] * c + sg[:, :E] * gg
                    h = sg[:, 3 * E:] * jnp.tanh(c)
                    hs_ref[t] = h
            return h

        t_h = run_encoder("t", T_t, E_t, nlt, t_gx, t_hs)
        a_h = run_encoder("a", T_a, E_a, nla, a_gx, a_hs)

        # ---- MFA multi-head fusion over the channel axis ----------------------
        t_enc3 = jnp.stack([t_hs[t] for t in range(T_t)], axis=1)   # (B,T_t,E_t)
        a_enc3 = jnp.stack([a_hs[t] for t in range(T_a)], axis=1)   # (B,T_a,E_a)
        q_cm = jnp.swapaxes(t_enc3, 1, 2)                           # (B,E_t,T_t)
        a_cm = jnp.swapaxes(a_enc3, 1, 2)                           # (B,E_a,T_a)

        q = mm(q_cm.reshape(B * E_t, T_t), W("mfa_wq")).reshape(B, E_t, Dm)
        kv = mm(a_cm.reshape(B * E_a, T_a), W("mfa_wkv")) + W("mfa_bkv")
        k = kv[:, :Dm].reshape(B, E_a, Dm)
        vv = kv[:, Dm:].reshape(B, E_a, Dm)

        head_outs = []
        for hh in range(heads):   # TODO(synk): heads could be merged into one
            sl = slice(hh * hd, (hh + 1) * hd)   # batched einsum axis instead
            s = jnp.einsum("bqd,bkd->bqk", q[:, :, sl], k[:, :, sl],
                           preferred_element_type=f32) * scale
            s = s - jnp.max(s, axis=-1, keepdims=True)
            e = jnp.exp(s)
            aw = e / jnp.sum(e, axis=-1, keepdims=True)
            head_outs.append(jnp.einsum("bqk,bkd->bqd", aw, vv[:, :, sl],
                                        preferred_element_type=f32))
        attn3 = jnp.concatenate(head_outs, axis=-1)                 # (B,E_t,Dm)

        # output projection + residual: one 2-D GEMM + one minor-dim swap
        delta = jnp.swapaxes(
            mm(attn3.reshape(B * E_t, Dm), W("mfa_wo")).reshape(B, E_t, T_t),
            1, 2)                                                   # (B,T_t,E_t)
        t_mem3 = t_enc3 + delta

        # ---- encoder -> decoder hidden bridges --------------------------------
        t_h0 = jnp.tanh(mm(t_h, W("t_bridge_w")) + W("t_bridge_b"))
        a_h0 = jnp.tanh(mm(a_h, W("a_bridge_w")) + W("a_bridge_b"))

        # ---- Bahdanau-attention LSTM decoders (teacher forcing) ---------------
        def run_decoder(prefix, Td, Tenc, E, H, mem3, h0,
                        dgx_ref, dh_ref, dctx_ref, out_ref):
            whbig = W(f"{prefix}_dec_whbig")      # [whh | attn_wh]  (H, 5H)
            wenc = W(f"{prefix}_dec_wenc")        # (E, H)
            v3 = W(f"{prefix}_dec_v").reshape(1, 1, H)
            wihx = W(f"{prefix}_dec_wihx")        # (D, 4H)
            wihc = W(f"{prefix}_dec_wihc")        # (E, 4H)
            bias = W(f"{prefix}_dec_b")           # (1, 4H)
            x2d = W(f"{prefix}_trg")              # (Td*B, D), time-major

            enc_proj = mm(mem3.reshape(B * Tenc, E), wenc).reshape(B, Tenc, H)
            dgx_ref[...] = (mm(x2d, wihx) + bias).reshape(Td, B, 4 * H)

            h = h0
            c = jnp.zeros((B, H), f32)
            for t in range(Td):
                hz = mm(h, whbig)                 # 1 MXU op: gates + attn query
                hw = hz[:, 4 * H:]
                energy = jnp.tanh(enc_proj + hw[:, None, :])       # (B,Tenc,H)
                sc = jnp.sum(energy * v3, axis=-1)                 # (B,Tenc)
                sc = sc - jnp.max(sc, axis=-1, keepdims=True)
                ex = jnp.exp(sc)
                aw = ex / jnp.sum(ex, axis=-1, keepdims=True)
                ctx = jnp.sum(aw[:, :, None] * mem3, axis=1)       # (B,E)
                g = dgx_ref[t] + hz[:, :4 * H] + mm(ctx, wihc)     # 2nd MXU op
                sg = jax.nn.sigmoid(g)
                gg = jnp.tanh(g[:, 2 * H:3 * H])
                c = sg[:, H:2 * H] * c + sg[:, :H] * gg
                h = sg[:, 3 * H:] * jnp.tanh(c)
                dh_ref[t] = h
                dctx_ref[t] = ctx
            # output projection hoisted out of the recurrence: one fused GEMM
            # into a lane-dense (Td*B, 128) slab (unmasked store).
            feats = jnp.concatenate(
                [dh_ref[...].reshape(Td * B, H),
                 dctx_ref[...].reshape(Td * B, E), x2d], axis=1)
            out_ref[...] = mm(feats, W(f"{prefix}_dec_fcw")) + W(f"{prefix}_dec_fcb")

        run_decoder("t", Td_t, T_t, E_t, H_t, t_mem3, t_h0,
                    t_dgx, t_dh, t_dctx, t_out_ref)
        run_decoder("a", Td_a, T_a, E_a, H_a, a_enc3, a_h0,
                    a_dgx, a_dh, a_dctx, a_out_ref)

    return kernel


# ----------------------------------------------------------------------------- #
# Host-side wrapper: pack everything into one slab, single fused pallas_call
# ----------------------------------------------------------------------------- #
def med_forward(params, t_src, a_src, t_trg, a_trg, *, mfa_heads):
    B, T_t, _ = t_src.shape
    _, T_a, _ = a_src.shape
    _, Td_t, _ = t_trg.shape
    _, Td_a, _ = a_trg.shape

    def tm2d(x):                                  # one boundary layout op each
        Bx, Tx, Dx = x.shape
        return jnp.transpose(x, (1, 0, 2)).reshape(Tx * Bx, Dx)

    mfa = params["mfa"]
    Dm = mfa["wq"].shape[0]
    # fold the time projection into fused K/V weights (host side, trivial)
    wkv = jnp.concatenate([mfa["time_proj_w"] @ mfa["wk"],
                           mfa["time_proj_w"] @ mfa["wv"]], axis=1)
    bkv = jnp.concatenate([mfa["time_proj_b"] @ mfa["wk"],
                           mfa["time_proj_b"] @ mfa["wv"]], axis=1)

    E_t = params["t_enc"][-1]["whh"].shape[0]
    E_a = params["a_enc"][-1]["whh"].shape[0]
    H_t = params["t_dec"]["whh"].shape[0]
    H_a = params["a_dec"]["whh"].shape[0]
    O_t = params["t_dec"]["fc_b"].shape[1]
    O_a = params["a_dec"]["fc_b"].shape[1]

    entries = [("t_src", tm2d(t_src)), ("a_src", tm2d(a_src)),
               ("t_trg", tm2d(t_trg)), ("a_trg", tm2d(a_trg))]
    for pfx, layers in (("t", params["t_enc"]), ("a", params["a_enc"])):
        for l, layer in enumerate(layers):
            entries += [(f"{pfx}_enc{l}_wih", layer["wih"]),
                        (f"{pfx}_enc{l}_whh", layer["whh"]),
                        (f"{pfx}_enc{l}_b", layer["b"])]
    entries += [("mfa_wq", mfa["wq"]), ("mfa_wkv", wkv),
                ("mfa_bkv", bkv), ("mfa_wo", mfa["wo"])]
    entries += [("t_bridge_w", params["t_bridge_w"]),
                ("t_bridge_b", params["t_bridge_b"]),
                ("a_bridge_w", params["a_bridge_w"]),
                ("a_bridge_b", params["a_bridge_b"])]
    for pfx, dec, O in (("t", params["t_dec"], O_t), ("a", params["a_dec"], O_a)):
        whbig = jnp.concatenate([dec["whh"], dec["attn_wh"]], axis=1)  # (H,5H)
        fcw = jnp.concatenate([dec["fc_wh"], dec["fc_wctx"], dec["fc_wx"]], axis=0)
        fcw = jnp.pad(fcw, ((0, 0), (0, _OUT_PAD - O)))                # lane-dense
        fcb = jnp.pad(dec["fc_b"], ((0, 0), (0, _OUT_PAD - O)))
        entries += [(f"{pfx}_dec_whbig", whbig),
                    (f"{pfx}_dec_wenc", dec["attn_wenc"]),
                    (f"{pfx}_dec_v", dec["attn_v"]),
                    (f"{pfx}_dec_wihx", dec["wih_x"]),
                    (f"{pfx}_dec_wihc", dec["wih_ctx"]),
                    (f"{pfx}_dec_b", dec["b"]),
                    (f"{pfx}_dec_fcw", fcw),
                    (f"{pfx}_dec_fcb", fcb)]

    slab, index = _pack_slab(entries)             # ONE kernel input -> one DMA

    cfg = dict(B=B, T_t=T_t, T_a=T_a, Td_t=Td_t, Td_a=Td_a,
               E_t=E_t, E_a=E_a, H_t=H_t, H_a=H_a,
               Dm=Dm, heads=mfa_heads,
               n_t_layers=len(params["t_enc"]),
               n_a_layers=len(params["a_enc"]))

    scratch_shapes = [
        pltpu.VMEM((T_t, B, 4 * E_t), jnp.float32),   # t encoder gate slab
        pltpu.VMEM((T_a, B, 4 * E_a), jnp.float32),   # a encoder gate slab
        pltpu.VMEM((T_t, B, E_t), jnp.float32),       # t encoder hidden states
        pltpu.VMEM((T_a, B, E_a), jnp.float32),       # a encoder hidden states
        pltpu.VMEM((Td_t, B, 4 * H_t), jnp.float32),  # t decoder x-gate slab
        pltpu.VMEM((Td_a, B, 4 * H_a), jnp.float32),  # a decoder x-gate slab
        pltpu.VMEM((Td_t, B, H_t), jnp.float32),      # t decoder hidden states
        pltpu.VMEM((Td_t, B, E_t), jnp.float32),      # t decoder contexts
        pltpu.VMEM((Td_a, B, H_a), jnp.float32),      # a decoder hidden states
        pltpu.VMEM((Td_a, B, E_a), jnp.float32),      # a decoder contexts
    ]

    t_raw, a_raw = pl.pallas_call(
        _med_fused_kernel(cfg, index),
        out_shape=(jax.ShapeDtypeStruct((Td_t * B, _OUT_PAD), jnp.float32),
                   jax.ShapeDtypeStruct((Td_a * B, _OUT_PAD), jnp.float32)),
        in_specs=[VMEM_SPEC],
        out_specs=(VMEM_SPEC, VMEM_SPEC),
        scratch_shapes=scratch_shapes,
        compiler_params=pltpu.CompilerParams(vmem_limit_bytes=32 * 1024 * 1024),
    )(slab)

    t_out = jnp.transpose(t_raw[:, :O_t].reshape(Td_t, B, O_t), (1, 0, 2))
    a_out = jnp.transpose(a_raw[:, :O_a].reshape(Td_a, B, O_a), (1, 0, 2))
    return t_out, a_out


# ----------------------------------------------------------------------------- #
# Deterministic parameter construction
# ----------------------------------------------------------------------------- #
def uinit(key, shape, scale=0.1):
    return jax.random.uniform(key, shape, jnp.float32, -scale, scale)


def make_lstm_params(key, D, H, num_layers):
    layers = []
    for l in range(num_layers):
        key, k1, k2, k3 = jax.random.split(key, 4)
        din = D if l == 0 else H
        layers.append({"wih": uinit(k1, (din, 4 * H)),
                       "whh": uinit(k2, (H, 4 * H)),
                       "b": uinit(k3, (1, 4 * H))})
    return layers


def make_dec_params(key, D, E, H, O):
    ks = jax.random.split(key, 11)
    return {"attn_wh": uinit(ks[0], (H, H)),          # hidden half of attn_w
            "attn_wenc": uinit(ks[1], (E, H)),        # encoder half of attn_w
            "attn_v": uinit(ks[2], (1, H)),
            "wih_x": uinit(ks[3], (D, 4 * H)),        # x half of wih
            "wih_ctx": uinit(ks[4], (E, 4 * H)),      # context half of wih
            "whh": uinit(ks[5], (H, 4 * H)),
            "b": uinit(ks[6], (1, 4 * H)),
            "fc_wh": uinit(ks[7], (H, O)),
            "fc_wctx": uinit(ks[8], (E, O)),
            "fc_wx": uinit(ks[9], (D, O)),
            "fc_b": uinit(ks[10], (1, O))}


def make_mfa_params(key, T_a, T_t):
    ks = jax.random.split(key, 6)
    return {"time_proj_w": uinit(ks[0], (T_a, T_t)),
            "time_proj_b": uinit(ks[1], (1, T_t)),
            "wq": uinit(ks[2], (T_t, T_t)),
            "wk": uinit(ks[3], (T_t, T_t)),
            "wv": uinit(ks[4], (T_t, T_t)),
            "wo": uinit(ks[5], (T_t, T_t))}


if __name__ == "__main__":
    # Small synthetic "args" consistent with the constructor.
    B = 2
    t_d_model, a1_d_model = 8, 8
    t_enc_hd, a_enc_hd = 32, 32
    t_dec_hd, a_dec_hd = 32, 32
    t_enc_time_steps, a_enc_time_steps = 8, 8
    t_dec_time_steps, a_dec_time_steps = 4, 4
    enc_num_layers = 1
    mfa_heads = 2

    root = jax.random.PRNGKey(0)
    k_te, k_ae, k_td, k_ad, k_mfa, k_tb, k_ab, k_in = jax.random.split(root, 8)
    ktb1, ktb2 = jax.random.split(k_tb)
    kab1, kab2 = jax.random.split(k_ab)

    params = {
        "t_enc": make_lstm_params(k_te, t_d_model, t_enc_hd, enc_num_layers),
        "a_enc": make_lstm_params(k_ae, a1_d_model, a_enc_hd, enc_num_layers),
        "t_dec": make_dec_params(k_td, t_d_model, t_enc_hd, t_dec_hd, 1),
        "a_dec": make_dec_params(k_ad, a1_d_model, a_enc_hd, a_dec_hd, a1_d_model),
        "mfa": make_mfa_params(k_mfa, a_enc_time_steps, t_enc_time_steps),
        "t_bridge_w": uinit(ktb1, (t_enc_hd, t_dec_hd)),
        "t_bridge_b": uinit(ktb2, (1, t_dec_hd)),
        "a_bridge_w": uinit(kab1, (a_enc_hd, a_dec_hd)),
        "a_bridge_b": uinit(kab2, (1, a_dec_hd)),
    }

    ki1, ki2, ki3, ki4 = jax.random.split(k_in, 4)
    t_src = jax.random.normal(ki1, (B, t_enc_time_steps, t_d_model), jnp.float32)
    a_src = jax.random.normal(ki2, (B, a_enc_time_steps, a1_d_model), jnp.float32)
    t_trg = jax.random.normal(ki3, (B, t_dec_time_steps, t_d_model), jnp.float32)
    a_trg = jax.random.normal(ki4, (B, a_dec_time_steps, a1_d_model), jnp.float32)

    fwd = jax.jit(functools.partial(med_forward, mfa_heads=mfa_heads))
    t_out, a_out = jax.block_until_ready(fwd(params, t_src, a_src, t_trg, a_trg))

    assert t_out.shape == (B, t_dec_time_steps, 1), t_out.shape
    assert a_out.shape == (B, a_dec_time_steps, a1_d_model), a_out.shape
    assert bool(jnp.all(jnp.isfinite(t_out))) and bool(jnp.all(jnp.isfinite(a_out)))
    print("KERNEL_OK")
</pallas_src>

<mosaic_0001>
module attributes {stable_mosaic.version = 11 : i64} {
  func.func @kernel(%arg0: memref<656x256xf32, #tpu.memory_space<vmem>>, %arg1: memref<8x128xf32, #tpu.memory_space<vmem>>, %arg2: memref<8x128xf32, #tpu.memory_space<vmem>>, %arg3: memref<8x2x128xf32, #tpu.memory_space<vmem>>, %arg4: memref<8x2x128xf32, #tpu.memory_space<vmem>>, %arg5: memref<8x2x32xf32, #tpu.memory_space<vmem>>, %arg6: memref<8x2x32xf32, #tpu.memory_space<vmem>>, %arg7: memref<4x2x128xf32, #tpu.memory_space<vmem>>, %arg8: memref<4x2x128xf32, #tpu.memory_space<vmem>>, %arg9: memref<4x2x32xf32, #tpu.memory_space<vmem>>, %arg10: memref<4x2x32xf32, #tpu.memory_space<vmem>>, %arg11: memref<4x2x32xf32, #tpu.memory_space<vmem>>, %arg12: memref<4x2x32xf32, #tpu.memory_space<vmem>>) attributes {dimension_semantics = [], scalar_prefetch = 0 : i64, scratch_operands = 10 : i64, tpu.core_type = #tpu.core_type<tc>} {
    %c48 = arith.constant 48 : index
    %c0 = arith.constant 0 : index
    %0 = vector.load %arg0[%c48, %c0] : memref<656x256xf32, #tpu.memory_space<vmem>>, vector<8x128xf32>
    %c56 = arith.constant 56 : index
    %c0_0 = arith.constant 0 : index
    %1 = vector.load %arg0[%c56, %c0_0] : memref<656x256xf32, #tpu.memory_space<vmem>>, vector<32x128xf32>
    %c88 = arith.constant 88 : index
    %c0_1 = arith.constant 0 : index
    %2 = vector.load %arg0[%c88, %c0_1] : memref<656x256xf32, #tpu.memory_space<vmem>>, vector<1x128xf32>
    %c0_2 = arith.constant 0 : index
    %c0_3 = arith.constant 0 : index
    %3 = vector.load %arg0[%c0_2, %c0_3] : memref<656x256xf32, #tpu.memory_space<vmem>>, vector<16x8xf32>
    %cst = arith.constant dense<0.000000e+00> : vector<16x128xf32>
    %4 = tpu.matmul %3, %0, %cst {dimension_numbers = #tpu.dot_dimension_numbers<[1], [0], [0], [1], [0, 0, 1, 1], [], []>} : vector<16x8xf32>, vector<8x128xf32>, vector<16x128xf32> -> vector<16x128xf32>
    %5 = vector.broadcast %2 : vector<1x128xf32> to vector<16x128xf32>
    %6 = arith.addf %4, %5 : vector<16x128xf32>
    %7 = vector.shape_cast %6 : vector<16x128xf32> to vector<8x2x128xf32>
    %c0_4 = arith.constant 0 : index
    %c0_5 = arith.constant 0 : index
    %c0_6 = arith.constant 0 : index
    %8 = vector.load %arg3[%c0_4, %c0_5, %c0_6] : memref<8x2x128xf32, #tpu.memory_space<vmem>>, vector<8x2x128xf32>
    tpu.vector_store %arg3[%c0_4, %c0_5, %c0_6], %7 {strides = array<i32>} : memref<8x2x128xf32, #tpu.memory_space<vmem>>, vector<8x2x128xf32>,
    %cst_7 = arith.constant 0.000000e+00 : f32
    %9 = vector.broadcast %cst_7 : f32 to vector<2x32xf32>
    %cst_8 = arith.constant 0.000000e+00 : f32
    %10 = vector.broadcast %cst_8 : f32 to vector<2x32xf32>
    %c0_9 = arith.constant 0 : index
    %c0_10 = arith.constant 0 : index
    %c0_11 = arith.constant 0 : index
    %11 = vector.load %arg3[%c0_9, %c0_10, %c0_11] : memref<8x2x128xf32, #tpu.memory_space<vmem>>, vector<1x2x128xf32>
    %12 = vector.shape_cast %11 : vector<1x2x128xf32> to vector<2x128xf32>
    %cst_12 = arith.constant dense<0.000000e+00> : vector<2x128xf32>
    %13 = tpu.matmul %9, %1, %cst_12 {dimension_numbers = #tpu.dot_dimension_numbers<[1], [0], [0], [1], [0, 0, 1, 1], [], []>} : vector<2x32xf32>, vector<32x128xf32>, vector<2x128xf32> -> vector<2x128xf32>
    %14 = arith.addf %12, %13 : vector<2x128xf32>
    %15 = arith.negf %14 : vector<2x128xf32>
    %16 = math.exp %15 : vector<2x128xf32>
    %cst_13 = arith.constant 1.000000e+00 : f32
    %17 = vector.broadcast %cst_13 : f32 to vector<2x128xf32>
    %18 = arith.addf %17, %16 : vector<2x128xf32>
    %19 = arith.divf %17, %18 : vector<2x128xf32>
    %20 = vector.extract_strided_slice %14 {offsets = [0, 64], sizes = [2, 32], strides = [1, 1]} : vector<2x128xf32> to vector<2x32xf32>
    %21 = math.tanh %20 : vector<2x32xf32>
    %22 = vector.extract_strided_slice %19 {offsets = [0, 32], sizes = [2, 32], strides = [1, 1]} : vector<2x128xf32> to vector<2x32xf32>
    %23 = arith.mulf %22, %10 : vector<2x32xf32>
    %24 = vector.extract_strided_slice %19 {offsets = [0, 0], sizes = [2, 32], strides = [1, 1]} : vector<2x128xf32> to vector<2x32xf32>
    %25 = arith.mulf %24, %21 : vector<2x32xf32>
    %26 = arith.addf %23, %25 : vector<2x32xf32>
    %27 = vector.extract_strided_slice %19 {offsets = [0, 96], sizes = [2, 32], strides = [1, 1]} : vector<2x128xf32> to vector<2x32xf32>
    %28 = math.tanh %26 : vector<2x32xf32>
    %29 = arith.mulf %27, %28 : vector<2x32xf32>
    %c0_14 = arith.constant 0 : index
    %c0_15 = arith.constant 0 : index
    %c0_16 = arith.constant 0 : index
    %30 = vector.load %arg5[%c0_14, %c0_15, %c0_16] : memref<8x2x32xf32, #tpu.memory_space<vmem>>, vector<1x2x32xf32>
    %31 = vector.shape_cast %30 : vector<1x2x32xf32> to vector<2x32xf32>
    %32 = vector.shape_cast %29 : vector<2x32xf32> to vector<1x2x32xf32>
    tpu.vector_store %arg5[%c0_14, %c0_15, %c0_16], %32 {strides = array<i32>} : memref<8x2x32xf32, #tpu.memory_space<vmem>>, vector<1x2x32xf32>,
    %c1 = arith.constant 1 : index
    %c0_17 = arith.constant 0 : index
    %c0_18 = arith.constant 0 : index
    %33 = vector.load %arg3[%c1, %c0_17, %c0_18] : memref<8x2x128xf32, #tpu.memory_space<vmem>>, vector<1x2x128xf32>
    %34 = vector.shape_cast %33 : vector<1x2x128xf32> to vector<2x128xf32>
    %cst_19 = arith.constant dense<0.000000e+00> : vector<2x128xf32>
    %35 = tpu.matmul %29, %1, %cst_19 {dimension_numbers = #tpu.dot_dimension_numbers<[1], [0], [0], [1], [0, 0, 1, 1], [], []>} : vector<2x32xf32>, vector<32x128xf32>, vector<2x128xf32> -> vector<2x128xf32>
    %36 = arith.addf %34, %35 : vector<2x128xf32>
    %37 = arith.negf %36 : vector<2x128xf32>
    %38 = math.exp %37 : vector<2x128xf32>
    %cst_20 = arith.constant 1.000000e+00 : f32
    %39 = vector.broadcast %cst_20 : f32 to vector<2x128xf32>
    %40 = arith.addf %39, %38 : vector<2x128xf32>
    %41 = arith.divf %39, %40 : vector<2x128xf32>
    %42 = vector.extract_strided_slice %36 {offsets = [0, 64], sizes = [2, 32], strides = [1, 1]} : vector<2x128xf32> to vector<2x32xf32>
    %43 = math.tanh %42 : vector<2x32xf32>
    %44 = vector.extract_strided_slice %41 {offsets = [0, 32], sizes = [2, 32], strides = [1, 1]} : vector<2x128xf32> to vector<2x32xf32>
    %45 = arith.mulf %44, %26 : vector<2x32xf32>
    %46 = vector.extract_strided_slice %41 {offsets = [0, 0], sizes = [2, 32], strides = [1, 1]} : vector<2x128xf32> to vector<2x32xf32>
    %47 = arith.mulf %46, %43 : vector<2x32xf32>
    %48 = arith.addf %45, %47 : vector<2x32xf32>
    %49 = vector.extract_strided_slice %41 {offsets = [0, 96], sizes = [2, 32], strides = [1, 1]} : vector<2x128xf32> to vector<2x32xf32>
    %50 = math.tanh %48 : vector<2x32xf32>
    %51 = arith.mulf %49, %50 : vector<2x32xf32>
    %c1_21 = arith.constant 1 : index
    %c0_22 = arith.constant 0 : index
    %c0_23 = arith.constant 0 : index
    %52 = vector.load %arg5[%c1_21, %c0_22, %c0_23] : memref<8x2x32xf32, #tpu.memory_space<vmem>>, vector<1x2x32xf32>
    %53 = vector.shape_cast %52 : vector<1x2x32xf32> to vector<2x32xf32>
    %54 = vector.shape_cast %51 : vector<2x32xf32> to vector<1x2x32xf32>
    tpu.vector_store %arg5[%c1_21, %c0_22, %c0_23], %54 {strides = array<i32>} : memref<8x2x32xf32, #tpu.memory_space<vmem>>, vector<1x2x32xf32>,
    %c2 = arith.constant 2 : index
    %c0_24 = arith.constant 0 : index
    %c0_25 = arith.constant 0 : index
    %55 = vector.load %arg3[%c2, %c0_24, %c0_25] : memref<8x2x128xf32, #tpu.memory_space<vmem>>, vector<1x2x128xf32>
    %56 = vector.shape_cast %55 : vector<1x2x128xf32> to vector<2x128xf32>
    %cst_26 = arith.constant dense<0.000000e+00> : vector<2x128xf32>
    %57 = tpu.matmul %51, %1, %cst_26 {dimension_numbers = #tpu.dot_dimension_numbers<[1], [0], [0], [1], [0, 0, 1, 1], [], []>} : vector<2x32xf32>, vector<32x128xf32>, vector<2x128xf32> -> vector<2x128xf32>
    %58 = arith.addf %56, %57 : vector<2x128xf32>
    %59 = arith.negf %58 : vector<2x128xf32>
    %60 = math.exp %59 : vector<2x128xf32>
    %cst_27 = arith.constant 1.000000e+00 : f32
    %61 = vector.broadcast %cst_27 : f32 to vector<2x128xf32>
    %62 = arith.addf %61, %60 : vector<2x128xf32>
    %63 = arith.divf %61, %62 : vector<2x128xf32>
    %64 = vector.extract_strided_slice %58 {offsets = [0, 64], sizes = [2, 32], strides = [1, 1]} : vector<2x128xf32> to vector<2x32xf32>
    %65 = math.tanh %64 : vector<2x32xf32>
    %66 = vector.extract_strided_slice %63 {offsets = [0, 32], sizes = [2, 32], strides = [1, 1]} : vector<2x128xf32> to vector<2x32xf32>
    %67 = arith.mulf %66, %48 : vector<2x32xf32>
    %68 = vector.extract_strided_slice %63 {offsets = [0, 0], sizes = [2, 32], strides = [1, 1]} : vector<2x128xf32> to vector<2x32xf32>
    %69 = arith.mulf %68, %65 : vector<2x32xf32>
    %70 = arith.addf %67, %69 : vector<2x32xf32>
    %71 = vector.extract_strided_slice %63 {offsets = [0, 96], sizes = [2, 32], strides = [1, 1]} : vector<2x128xf32> to vector<2x32xf32>
    %72 = math.tanh %70 : vector<2x32xf32>
    %73 = arith.mulf %71, %72 : vector<2x32xf32>
    %c2_28 = arith.constant 2 : index
    %c0_29 = arith.constant 0 : index
    %c0_30 = arith.constant 0 : index
    %74 = vector.load %arg5[%c2_28, %c0_29, %c0_30] : memref<8x2x32xf32, #tpu.memory_space<vmem>>, vector<1x2x32xf32>
    %75 = vector.shape_cast %74 : vector<1x2x32xf32> to vector<2x32xf32>
    %76 = vector.shape_cast %73 : vector<2x32xf32> to vector<1x2x32xf32>
    tpu.vector_store %arg5[%c2_28, %c0_29, %c0_30], %76 {strides = array<i32>} : memref<8x2x32xf32, #tpu.memory_space<vmem>>, vector<1x2x32xf32>,
    %c3 = arith.constant 3 : index
    %c0_31 = arith.constant 0 : index
    %c0_32 = arith.constant 0 : index
    %77 = vector.load %arg3[%c3, %c0_31, %c0_32] : memref<8x2x128xf32, #tpu.memory_space<vmem>>, vector<1x2x128xf32>
    %78 = vector.shape_cast %77 : vector<1x2x128xf32> to vector<2x128xf32>
    %cst_33 = arith.constant dense<0.000000e+00> : vector<2x128xf32>
    %79 = tpu.matmul %73, %1, %cst_33 {dimension_numbers = #tpu.dot_dimension_numbers<[1], [0], [0], [1], [0, 0, 1, 1], [], []>} : vector<2x32xf32>, vector<32x128xf32>, vector<2x128xf32> -> vector<2x128xf32>
    %80 = arith.addf %78, %79 : vector<2x128xf32>
    %81 = arith.negf %80 : vector<2x128xf32>
    %82 = math.exp %81 : vector<2x128xf32>
    %cst_34 = arith.constant 1.000000e+00 : f32
    %83 = vector.broadcast %cst_34 : f32 to vector<2x128xf32>
    %84 = arith.addf %83, %82 : vector<2x128xf32>
    %85 = arith.divf %83, %84 : vector<2x128xf32>
    %86 = vector.extract_strided_slice %80 {offsets = [0, 64], sizes = [2, 32], strides = [1, 1]} : vector<2x128xf32> to vector<2x32xf32>
    %87 = math.tanh %86 : vector<2x32xf32>
    %88 = vector.extract_strided_slice %85 {offsets = [0, 32], sizes = [2, 32], strides = [1, 1]} : vector<2x128xf32> to vector<2x32xf32>
    %89 = arith.mulf %88, %70 : vector<2x32xf32>
    %90 = vector.extract_strided_slice %85 {offsets = [0, 0], sizes = [2, 32], strides = [1, 1]} : vector<2x128xf32> to vector<2x32xf32>
    %91 = arith.mulf %90, %87 : vector<2x32xf32>
    %92 = arith.addf %89, %91 : vector<2x32xf32>
    %93 = vector.extract_strided_slice %85 {offsets = [0, 96], sizes = [2, 32], strides = [1, 1]} : vector<2x128xf32> to vector<2x32xf32>
    %94 = math.tanh %92 : vector<2x32xf32>
    %95 = arith.mulf %93, %94 : vector<2x32xf32>
    %c3_35 = arith.constant 3 : index
    %c0_36 = arith.constant 0 : index
    %c0_37 = arith.constant 0 : index
    %96 = vector.load %arg5[%c3_35, %c0_36, %c0_37] : memref<8x2x32xf32, #tpu.memory_space<vmem>>, vector<1x2x32xf32>
    %97 = vector.shape_cast %96 : vector<1x2x32xf32> to vector<2x32xf32>
    %98 = vector.shape_cast %95 : vector<2x32xf32> to vector<1x2x32xf32>
    tpu.vector_store %arg5[%c3_35, %c0_36, %c0_37], %98 {strides = array<i32>} : memref<8x2x32xf32, #tpu.memory_space<vmem>>, vector<1x2x32xf32>,
    %c4 = arith.constant 4 : index
    %c0_38 = arith.constant 0 : index
    %c0_39 = arith.constant 0 : index
    %99 = vector.load %arg3[%c4, %c0_38, %c0_39] : memref<8x2x128xf32, #tpu.memory_space<vmem>>, vector<1x2x128xf32>
    %100 = vector.shape_cast %99 : vector<1x2x128xf32> to vector<2x128xf32>
    %cst_40 = arith.constant dense<0.000000e+00> : vector<2x128xf32>
    %101 = tpu.matmul %95, %1, %cst_40 {dimension_numbers = #tpu.dot_dimension_numbers<[1], [0], [0], [1], [0, 0, 1, 1], [], []>} : vector<2x32xf32>, vector<32x128xf32>, vector<2x128xf32> -> vector<2x128xf32>
    %102 = arith.addf %100, %101 : vector<2x128xf32>
    %103 = arith.negf %102 : vector<2x128xf32>
    %104 = math.exp %103 : vector<2x128xf32>
    %cst_41 = arith.constant 1.000000e+00 : f32
    %105 = vector.broadcast %cst_41 : f32 to vector<2x128xf32>
    %106 = arith.addf %105, %104 : vector<2x128xf32>
    %107 = arith.divf %105, %106 : vector<2x128xf32>
    %108 = vector.extract_strided_slice %102 {offsets = [0, 64], sizes = [2, 32], strides = [1, 1]} : vector<2x128xf32> to vector<2x32xf32>
    %109 = math.tanh %108 : vector<2x32xf32>
    %110 = vector.extract_strided_slice %107 {offsets = [0, 32], sizes = [2, 32], strides = [1, 1]} : vector<2x128xf32> to vector<2x32xf32>
    %111 = arith.mulf %110, %92 : vector<2x32xf32>
    %112 = vector.extract_strided_slice %107 {offsets = [0, 0], sizes = [2, 32], strides = [1, 1]} : vector<2x128xf32> to vector<2x32xf32>
    %113 = arith.mulf %112, %109 : vector<2x32xf32>
    %114 = arith.addf %111, %113 : vector<2x32xf32>
    %115 = vector.extract_strided_slice %107 {offsets = [0, 96], sizes = [2, 32], strides = [1, 1]} : vector<2x128xf32> to vector<2x32xf32>
    %116 = math.tanh %114 : vector<2x32xf32>
    %117 = arith.mulf %115, %116 : vector<2x32xf32>
    %c4_42 = arith.constant 4 : index
    %c0_43 = arith.constant 0 : index
    %c0_44 = arith.constant 0 : index
    %118 = vector.load %arg5[%c4_42, %c0_43, %c0_44] : memref<8x2x32xf32, #tpu.memory_space<vmem>>, vector<1x2x32xf32>
    %119 = vector.shape_cast %118 : vector<1x2x32xf32> to vector<2x32xf32>
    %120 = vector.shape_cast %117 : vector<2x32xf32> to vector<1x2x32xf32>
    tpu.vector_store %arg5[%c4_42, %c0_43, %c0_44], %120 {strides = array<i32>} : memref<8x2x32xf32, #tpu.memory_space<vmem>>, vector<1x2x32xf32>,
    %c5 = arith.constant 5 : index
    %c0_45 = arith.constant 0 : index
    %c0_46 = arith.constant 0 : index
    %121 = vector.load %arg3[%c5, %c0_45, %c0_46] : memref<8x2x128xf32, #tpu.memory_space<vmem>>, vector<1x2x128xf32>
    %122 = vector.shape_cast %121 : vector<1x2x128xf32> to vector<2x128xf32>
    %cst_47 = arith.constant dense<0.000000e+00> : vector<2x128xf32>
    %123 = tpu.matmul %117, %1, %cst_47 {dimension_numbers = #tpu.dot_dimension_numbers<[1], [0], [0], [1], [0, 0, 1, 1], [], []>} : vector<2x32xf32>, vector<32x128xf32>, vector<2x128xf32> -> vector<2x128xf32>
    %124 = arith.addf %122, %123 : vector<2x128xf32>
    %125 = arith.negf %124 : vector<2x128xf32>
    %126 = math.exp %125 : vector<2x128xf32>
    %cst_48 = arith.constant 1.000000e+00 : f32
    %127 = vector.broadcast %cst_48 : f32 to vector<2x128xf32>
    %128 = arith.addf %127, %126 : vector<2x128xf32>
    %129 = arith.divf %127, %128 : vector<2x128xf32>
    %130 = vector.extract_strided_slice %124 {offsets = [0, 64], sizes = [2, 32], strides = [1, 1]} : vector<2x128xf32> to vector<2x32xf32>
    %131 = math.tanh %130 : vector<2x32xf32>
    %132 = vector.extract_strided_slice %129 {offsets = [0, 32], sizes = [2, 32], strides = [1, 1]} : vector<2x128xf32> to vector<2x32xf32>
    %133 = arith.mulf %132, %114 : vector<2x32xf32>
    %134 = vector.extract_strided_slice %129 {offsets = [0, 0], sizes = [2, 32], strides = [1, 1]} : vector<2x128xf32> to vector<2x32xf32>
    %135 = arith.mulf %134, %131 : vector<2x32xf32>
    %136 = arith.addf %133, %135 : vector<2x32xf32>
    %137 = vector.extract_strided_slice %129 {offsets = [0, 96], sizes = [2, 32], strides = [1, 1]} : vector<2x128xf32> to vector<2x32xf32>
    %138 = math.tanh %136 : vector<2x32xf32>
    %139 = arith.mulf %137, %138 : vector<2x32xf32>
    %c5_49 = arith.constant 5 : index
    %c0_50 = arith.constant 0 : index
    %c0_51 = arith.constant 0 : index
    %140 = vector.load %arg5[%c5_49, %c0_50, %c0_51] : memref<8x2x32xf32, #tpu.memory_space<vmem>>, vector<1x2x32xf32>
    %141 = vector.shape_cast %140 : vector<1x2x32xf32> to vector<2x32xf32>
    %142 = vector.shape_cast %139 : vector<2x32xf32> to vector<1x2x32xf32>
    tpu.vector_store %arg5[%c5_49, %c0_50, %c0_51], %142 {strides = array<i32>} : memref<8x2x32xf32, #tpu.memory_space<vmem>>, vector<1x2x32xf32>,
    %c6 = arith.constant 6 : index
    %c0_52 = arith.constant 0 : index
    %c0_53 = arith.constant 0 : index
    %143 = vector.load %arg3[%c6, %c0_52, %c0_53] : memref<8x2x128xf32, #tpu.memory_space<vmem>>, vector<1x2x128xf32>
    %144 = vector.shape_cast %143 : vector<1x2x128xf32> to vector<2x128xf32>
    %cst_54 = arith.constant dense<0.000000e+00> : vector<2x128xf32>
    %145 = tpu.matmul %139, %1, %cst_54 {dimension_numbers = #tpu.dot_dimension_numbers<[1], [0], [0], [1], [0, 0, 1, 1], [], []>} : vector<2x32xf32>, vector<32x128xf32>, vector<2x128xf32> -> vector<2x128xf32>
    %146 = arith.addf %144, %145 : vector<2x128xf32>
    %147 = arith.negf %146 : vector<2x128xf32>
    %148 = math.exp %147 : vector<2x128xf32>
    %cst_55 = arith.constant 1.000000e+00 : f32
    %149 = vector.broadcast %cst_55 : f32 to vector<2x128xf32>
    %150 = arith.addf %149, %148 : vector<2x128xf32>
    %151 = arith.divf %149, %150 : vector<2x128xf32>
    %152 = vector.extract_strided_slice %146 {offsets = [0, 64], sizes = [2, 32], strides = [1, 1]} : vector<2x128xf32> to vector<2x32xf32>
    %153 = math.tanh %152 : vector<2x32xf32>
    %154 = vector.extract_strided_slice %151 {offsets = [0, 32], sizes = [2, 32], strides = [1, 1]} : vector<2x128xf32> to vector<2x32xf32>
    %155 = arith.mulf %154, %136 : vector<2x32xf32>
    %156 = vector.extract_strided_slice %151 {offsets = [0, 0], sizes = [2, 32], strides = [1, 1]} : vector<2x128xf32> to vector<2x32xf32>
    %157 = arith.mulf %156, %153 : vector<2x32xf32>
    %158 = arith.addf %155, %157 : vector<2x32xf32>
    %159 = vector.extract_strided_slice %151 {offsets = [0, 96], sizes = [2, 32], strides = [1, 1]} : vector<2x128xf32> to vector<2x32xf32>
    %160 = math.tanh %158 : vector<2x32xf32>
    %161 = arith.mulf %159, %160 : vector<2x32xf32>
    %c6_56 = arith.constant 6 : index
    %c0_57 = arith.constant 0 : index
    %c0_58 = arith.constant 0 : index
    %162 = vector.load %arg5[%c6_56, %c0_57, %c0_58] : memref<8x2x32xf32, #tpu.memory_space<vmem>>, vector<1x2x32xf32>
    %163 = vector.shape_cast %162 : vector<1x2x32xf32> to vector<2x32xf32>
    %164 = vector.shape_cast %161 : vector<2x32xf32> to vector<1x2x32xf32>
    tpu.vector_store %arg5[%c6_56, %c0_57, %c0_58], %164 {strides = array<i32>} : memref<8x2x32xf32, #tpu.memory_space<vmem>>, vector<1x2x32xf32>,
    %c7 = arith.constant 7 : index
    %c0_59 = arith.constant 0 : index
    %c0_60 = arith.constant 0 : index
    %165 = vector.load %arg3[%c7, %c0_59, %c0_60] : memref<8x2x128xf32, #tpu.memory_space<vmem>>, vector<1x2x128xf32>
    %166 = vector.shape_cast %165 : vector<1x2x128xf32> to vector<2x128xf32>
    %cst_61 = arith.constant dense<0.000000e+00> : vector<2x128xf32>
    %167 = tpu.matmul %161, %1, %cst_61 {dimension_numbers = #tpu.dot_dimension_numbers<[1], [0], [0], [1], [0, 0, 1, 1], [], []>} : vector<2x32xf32>, vector<32x128xf32>, vector<2x128xf32> -> vector<2x128xf32>
    %168 = arith.addf %166, %167 : vector<2x128xf32>
    %169 = arith.negf %168 : vector<2x128xf32>
    %170 = math.exp %169 : vector<2x128xf32>
    %cst_62 = arith.constant 1.000000e+00 : f32
    %171 = vector.broadcast %cst_62 : f32 to vector<2x128xf32>
    %172 = arith.addf %171, %170 : vector<2x128xf32>
    %173 = arith.divf %171, %172 : vector<2x128xf32>
    %174 = vector.extract_strided_slice %168 {offsets = [0, 64], sizes = [2, 32], strides = [1, 1]} : vector<2x128xf32> to vector<2x32xf32>
    %175 = math.tanh %174 : vector<2x32xf32>
    %176 = vector.extract_strided_slice %173 {offsets = [0, 32], sizes = [2, 32], strides = [1, 1]} : vector<2x128xf32> to vector<2x32xf32>
    %177 = arith.mulf %176, %158 : vector<2x32xf32>
    %178 = vector.extract_strided_slice %173 {offsets = [0, 0], sizes = [2, 32], strides = [1, 1]} : vector<2x128xf32> to vector<2x32xf32>
    %179 = arith.mulf %178, %175 : vector<2x32xf32>
    %180 = arith.addf %177, %179 : vector<2x32xf32>
    %181 = vector.extract_strided_slice %173 {offsets = [0, 96], sizes = [2, 32], strides = [1, 1]} : vector<2x128xf32> to vector<2x32xf32>
    %182 = math.tanh %180 : vector<2x32xf32>
    %183 = arith.mulf %181, %182 : vector<2x32xf32>
    %c7_63 = arith.constant 7 : index
    %c0_64 = arith.constant 0 : index
    %c0_65 = arith.constant 0 : index
    %184 = vector.load %arg5[%c7_63, %c0_64, %c0_65] : memref<8x2x32xf32, #tpu.memory_space<vmem>>, vector<1x2x32xf32>
    %185 = vector.shape_cast %184 : vector<1x2x32xf32> to vector<2x32xf32>
    %186 = vector.shape_cast %183 : vector<2x32xf32> to vector<1x2x32xf32>
    tpu.vector_store %arg5[%c7_63, %c0_64, %c0_65], %186 {strides = array<i32>} : memref<8x2x32xf32, #tpu.memory_space<vmem>>, vector<1x2x32xf32>,
    %c96 = arith.constant 96 : index
    %c0_66 = arith.constant 0 : index
    %187 = vector.load %arg0[%c96, %c0_66] : memref<656x256xf32, #tpu.memory_space<vmem>>, vector<8x128xf32>
    %c104 = arith.constant 104 : index
    %c0_67 = arith.constant 0 : index
    %188 = vector.load %arg0[%c104, %c0_67] : memref<656x256xf32, #tpu.memory_space<vmem>>, vector<32x128xf32>
    %c136 = arith.constant 136 : index
    %c0_68 = arith.constant 0 : index
    %189 = vector.load %arg0[%c136, %c0_68] : memref<656x256xf32, #tpu.memory_space<vmem>>, vector<1x128xf32>
    %c16 = arith.constant 16 : index
    %c0_69 = arith.constant 0 : index
    %190 = vector.load %arg0[%c16, %c0_69] : memref<656x256xf32, #tpu.memory_space<vmem>>, vector<16x8xf32>
    %cst_70 = arith.constant dense<0.000000e+00> : vector<16x128xf32>
    %191 = tpu.matmul %190, %187, %cst_70 {dimension_numbers = #tpu.dot_dimension_numbers<[1], [0], [0], [1], [0, 0, 1, 1], [], []>} : vector<16x8xf32>, vector<8x128xf32>, vector<16x128xf32> -> vector<16x128xf32>
    %192 = vector.broadcast %189 : vector<1x128xf32> to vector<16x128xf32>
    %193 = arith.addf %191, %192 : vector<16x128xf32>
    %194 = vector.shape_cast %193 : vector<16x128xf32> to vector<8x2x128xf32>
    %c0_71 = arith.constant 0 : index
    %c0_72 = arith.constant 0 : index
    %c0_73 = arith.constant 0 : index
    %195 = vector.load %arg4[%c0_71, %c0_72, %c0_73] : memref<8x2x128xf32, #tpu.memory_space<vmem>>, vector<8x2x128xf32>
    tpu.vector_store %arg4[%c0_71, %c0_72, %c0_73], %194 {strides = array<i32>} : memref<8x2x128xf32, #tpu.memory_space<vmem>>, vector<8x2x128xf32>,
    %cst_74 = arith.constant 0.000000e+00 : f32
    %196 = vector.broadcast %cst_74 : f32 to vector<2x32xf32>
    %cst_75 = arith.constant 0.000000e+00 : f32
    %197 = vector.broadcast %cst_75 : f32 to vector<2x32xf32>
    %c0_76 = arith.constant 0 : index
    %c0_77 = arith.constant 0 : index
    %c0_78 = arith.constant 0 : index
    %198 = vector.load %arg4[%c0_76, %c0_77, %c0_78] : memref<8x2x128xf32, #tpu.memory_space<vmem>>, vector<1x2x128xf32>
    %199 = vector.shape_cast %198 : vector<1x2x128xf32> to vector<2x128xf32>
    %cst_79 = arith.constant dense<0.000000e+00> : vector<2x128xf32>
    %200 = tpu.matmul %196, %188, %cst_79 {dimension_numbers = #tpu.dot_dimension_numbers<[1], [0], [0], [1], [0, 0, 1, 1], [], []>} : vector<2x32xf32>, vector<32x128xf32>, vector<2x128xf32> -> vector<2x128xf32>
    %201 = arith.addf %199, %200 : vector<2x128xf32>
    %202 = arith.negf %201 : vector<2x128xf32>
    %203 = math.exp %202 : vector<2x128xf32>
    %cst_80 = arith.constant 1.000000e+00 : f32
    %204 = vector.broadcast %cst_80 : f32 to vector<2x128xf32>
    %205 = arith.addf %204, %203 : vector<2x128xf32>
    %206 = arith.divf %204, %205 : vector<2x128xf32>
    %207 = vector.extract_strided_slice %201 {offsets = [0, 64], sizes = [2, 32], strides = [1, 1]} : vector<2x128xf32> to vector<2x32xf32>
    %208 = math.tanh %207 : vector<2x32xf32>
    %209 = vector.extract_strided_slice %206 {offsets = [0, 32], sizes = [2, 32], strides = [1, 1]} : vector<2x128xf32> to vector<2x32xf32>
    %210 = arith.mulf %209, %197 : vector<2x32xf32>
    %211 = vector.extract_strided_slice %206 {offsets = [0, 0], sizes = [2, 32], strides = [1, 1]} : vector<2x128xf32> to vector<2x32xf32>
    %212 = arith.mulf %211, %208 : vector<2x32xf32>
    %213 = arith.addf %210, %212 : vector<2x32xf32>
    %214 = vector.extract_strided_slice %206 {offsets = [0, 96], sizes = [2, 32], strides = [1, 1]} : vector<2x128xf32> to vector<2x32xf32>
    %215 = math.tanh %213 : vector<2x32xf32>
    %216 = arith.mulf %214, %215 : vector<2x32xf32>
    %c0_81 = arith.constant 0 : index
    %c0_82 = arith.constant 0 : index
    %c0_83 = arith.constant 0 : index
    %217 = vector.load %arg6[%c0_81, %c0_82, %c0_83] : memref<8x2x32xf32, #tpu.memory_space<vmem>>, vector<1x2x32xf32>
    %218 = vector.shape_cast %217 : vector<1x2x32xf32> to vector<2x32xf32>
    %219 = vector.shape_cast %216 : vector<2x32xf32> to vector<1x2x32xf32>
    tpu.vector_store %arg6[%c0_81, %c0_82, %c0_83], %219 {strides = array<i32>} : memref<8x2x32xf32, #tpu.memory_space<vmem>>, vector<1x2x32xf32>,
    %c1_84 = arith.constant 1 : index
    %c0_85 = arith.constant 0 : index
    %c0_86 = arith.constant 0 : index
    %220 = vector.load %arg4[%c1_84, %c0_85, %c0_86] : memref<8x2x128xf32, #tpu.memory_space<vmem>>, vector<1x2x128xf32>
    %221 = vector.shape_cast %220 : vector<1x2x128xf32> to vector<2x128xf32>
    %cst_87 = arith.constant dense<0.000000e+00> : vector<2x128xf32>
    %222 = tpu.matmul %216, %188, %cst_87 {dimension_numbers = #tpu.dot_dimension_numbers<[1], [0], [0], [1], [0, 0, 1, 1], [], []>} : vector<2x32xf32>, vector<32x128xf32>, vector<2x128xf32> -> vector<2x128xf32>
    %223 = arith.addf %221, %222 : vector<2x128xf32>
    %224 = arith.negf %223 : vector<2x128xf32>
    %225 = math.exp %224 : vector<2x128xf32>
    %cst_88 = arith.constant 1.000000e+00 : f32
    %226 = vector.broadcast %cst_88 : f32 to vector<2x128xf32>
    %227 = arith.addf %226, %225 : vector<2x128xf32>
    %228 = arith.divf %226, %227 : vector<2x128xf32>
    %229 = vector.extract_strided_slice %223 {offsets = [0, 64], sizes = [2, 32], strides = [1, 1]} : vector<2x128xf32> to vector<2x32xf32>
    %230 = math.tanh %229 : vector<2x32xf32>
    %231 = vector.extract_strided_slice %228 {offsets = [0, 32], sizes = [2, 32], strides = [1, 1]} : vector<2x128xf32> to vector<2x32xf32>
    %232 = arith.mulf %231, %213 : vector<2x32xf32>
    %233 = vector.extract_strided_slice %228 {offsets = [0, 0], sizes = [2, 32], strides = [1, 1]} : vector<2x128xf32> to vector<2x32xf32>
    %234 = arith.mulf %233, %230 : vector<2x32xf32>
    %235 = arith.addf %232, %234 : vector<2x32xf32>
    %236 = vector.extract_strided_slice %228 {offsets = [0, 96], sizes = [2, 32], strides = [1, 1]} : vector<2x128xf32> to vector<2x32xf32>
    %237 = math.tanh %235 : vector<2x32xf32>
    %238 = arith.mulf %236, %237 : vector<2x32xf32>
    %c1_89 = arith.constant 1 : index
    %c0_90 = arith.constant 0 : index
    %c0_91 = arith.constant 0 : index
    %239 = vector.load %arg6[%c1_89, %c0_90, %c0_91] : memref<8x2x32xf32, #tpu.memory_space<vmem>>, vector<1x2x32xf32>
    %240 = vector.shape_cast %239 : vector<1x2x32xf32> to vector<2x32xf32>
    %241 = vector.shape_cast %238 : vector<2x32xf32> to vector<1x2x32xf32>
    tpu.vector_store %arg6[%c1_89, %c0_90, %c0_91], %241 {strides = array<i32>} : memref<8x2x32xf32, #tpu.memory_space<vmem>>, vector<1x2x32xf32>,
    %c2_92 = arith.constant 2 : index
    %c0_93 = arith.constant 0 : index
    %c0_94 = arith.constant 0 : index
    %242 = vector.load %arg4[%c2_92, %c0_93, %c0_94] : memref<8x2x128xf32, #tpu.memory_space<vmem>>, vector<1x2x128xf32>
    %243 = vector.shape_cast %242 : vector<1x2x128xf32> to vector<2x128xf32>
    %cst_95 = arith.constant dense<0.000000e+00> : vector<2x128xf32>
    %244 = tpu.matmul %238, %188, %cst_95 {dimension_numbers = #tpu.dot_dimension_numbers<[1], [0], [0], [1], [0, 0, 1, 1], [], []>} : vector<2x32xf32>, vector<32x128xf32>, vector<2x128xf32> -> vector<2x128xf32>
    %245 = arith.addf %243, %244 : vector<2x128xf32>
    %246 = arith.negf %245 : vector<2x128xf32>
    %247 = math.exp %246 : vector<2x128xf32>
    %cst_96 = arith.constant 1.000000e+00 : f32
    %248 = vector.broadcast %cst_96 : f32 to vector<2x128xf32>
    %249 = arith.addf %248, %247 : vector<2x128xf32>
    %250 = arith.divf %248, %249 : vector<2x128xf32>
    %251 = vector.extract_strided_slice %245 {offsets = [0, 64], sizes = [2, 32], strides = [1, 1]} : vector<2x128xf32> to vector<2x32xf32>
    %252 = math.tanh %251 : vector<2x32xf32>
    %253 = vector.extract_strided_slice %250 {offsets = [0, 32], sizes = [2, 32], strides = [1, 1]} : vector<2x128xf32> to vector<2x32xf32>
    %254 = arith.mulf %253, %235 : vector<2x32xf32>
    %255 = vector.extract_strided_slice %250 {offsets = [0, 0], sizes = [2, 32], strides = [1, 1]} : vector<2x128xf32> to vector<2x32xf32>
    %256 = arith.mulf %255, %252 : vector<2x32xf32>
    %257 = arith.addf %254, %256 : vector<2x32xf32>
    %258 = vector.extract_strided_slice %250 {offsets = [0, 96], sizes = [2, 32], strides = [1, 1]} : vector<2x128xf32> to vector<2x32xf32>
    %259 = math.tanh %257 : vector<2x32xf32>
    %260 = arith.mulf %258, %259 : vector<2x32xf32>
    %c2_97 = arith.constant 2 : index
    %c0_98 = arith.constant 0 : index
    %c0_99 = arith.constant 0 : index
    %261 = vector.load %arg6[%c2_97, %c0_98, %c0_99] : memref<8x2x32xf32, #tpu.memory_space<vmem>>, vector<1x2x32xf32>
    %262 = vector.shape_cast %261 : vector<1x2x32xf32> to vector<2x32xf32>
    %263 = vector.shape_cast %260 : vector<2x32xf32> to vector<1x2x32xf32>
    tpu.vector_store %arg6[%c2_97, %c0_98, %c0_99], %263 {strides = array<i32>} : memref<8x2x32xf32, #tpu.memory_space<vmem>>, vector<1x2x32xf32>,
    %c3_100 = arith.constant 3 : index
    %c0_101 = arith.constant 0 : index
    %c0_102 = arith.constant 0 : index
    %264 = vector.load %arg4[%c3_100, %c0_101, %c0_102] : memref<8x2x128xf32, #tpu.memory_space<vmem>>, vector<1x2x128xf32>
    %265 = vector.shape_cast %264 : vector<1x2x128xf32> to vector<2x128xf32>
    %cst_103 = arith.constant dense<0.000000e+00> : vector<2x128xf32>
    %266 = tpu.matmul %260, %188, %cst_103 {dimension_numbers = #tpu.dot_dimension_numbers<[1], [0], [0], [1], [0, 0, 1, 1], [], []>} : vector<2x32xf32>, vector<32x128xf32>, vector<2x128xf32> -> vector<2x128xf32>
    %267 = arith.addf %265, %266 : vector<2x128xf32>
    %268 = arith.negf %267 : vector<2x128xf32>
    %269 = math.exp %268 : vector<2x128xf32>
    %cst_104 = arith.constant 1.000000e+00 : f32
    %270 = vector.broadcast %cst_104 : f32 to vector<2x128xf32>
    %271 = arith.addf %270, %269 : vector<2x128xf32>
    %272 = arith.divf %270, %271 : vector<2x128xf32>
    %273 = vector.extract_strided_slice %267 {offsets = [0, 64], sizes = [2, 32], strides = [1, 1]} : vector<2x128xf32> to vector<2x32xf32>
    %274 = math.tanh %273 : vector<2x32xf32>
    %275 = vector.extract_strided_slice %272 {offsets = [0, 32], sizes = [2, 32], strides = [1, 1]} : vector<2x128xf32> to vector<2x32xf32>
    %276 = arith.mulf %275, %257 : vector<2x32xf32>
    %277 = vector.extract_strided_slice %272 {offsets = [0, 0], sizes = [2, 32], strides = [1, 1]} : vector<2x128xf32> to vector<2x32xf32>
    %278 = arith.mulf %277, %274 : vector<2x32xf32>
    %279 = arith.addf %276, %278 : vector<2x32xf32>
    %280 = vector.extract_strided_slice %272 {offsets = [0, 96], sizes = [2, 32], strides = [1, 1]} : vector<2x128xf32> to vector<2x32xf32>
    %281 = math.tanh %279 : vector<2x32xf32>
    %282 = arith.mulf %280, %281 : vector<2x32xf32>
    %c3_105 = arith.constant 3 : index
    %c0_106 = arith.constant 0 : index
    %c0_107 = arith.constant 0 : index
    %283 = vector.load %arg6[%c3_105, %c0_106, %c0_107] : memref<8x2x32xf32, #tpu.memory_space<vmem>>, vector<1x2x32xf32>
    %284 = vector.shape_cast %283 : vector<1x2x32xf32> to vector<2x32xf32>
    %285 = vector.shape_cast %282 : vector<2x32xf32> to vector<1x2x32xf32>
    tpu.vector_store %arg6[%c3_105, %c0_106, %c0_107], %285 {strides = array<i32>} : memref<8x2x32xf32, #tpu.memory_space<vmem>>, vector<1x2x32xf32>,
    %c4_108 = arith.constant 4 : index
    %c0_109 = arith.constant 0 : index
    %c0_110 = arith.constant 0 : index
    %286 = vector.load %arg4[%c4_108, %c0_109, %c0_110] : memref<8x2x128xf32, #tpu.memory_space<vmem>>, vector<1x2x128xf32>
    %287 = vector.shape_cast %286 : vector<1x2x128xf32> to vector<2x128xf32>
    %cst_111 = arith.constant dense<0.000000e+00> : vector<2x128xf32>
    %288 = tpu.matmul %282, %188, %cst_111 {dimension_numbers = #tpu.dot_dimension_numbers<[1], [0], [0], [1], [0, 0, 1, 1], [], []>} : vector<2x32xf32>, vector<32x128xf32>, vector<2x128xf32> -> vector<2x128xf32>
    %289 = arith.addf %287, %288 : vector<2x128xf32>
    %290 = arith.negf %289 : vector<2x128xf32>
    %291 = math.exp %290 : vector<2x128xf32>
    %cst_112 = arith.constant 1.000000e+00 : f32
    %292 = vector.broadcast %cst_112 : f32 to vector<2x128xf32>
    %293 = arith.addf %292, %291 : vector<2x128xf32>
    %294 = arith.divf %292, %293 : vector<2x128xf32>
    %295 = vector.extract_strided_slice %289 {offsets = [0, 64], sizes = [2, 32], strides = [1, 1]} : vector<2x128xf32> to vector<2x32xf32>
    %296 = math.tanh %295 : vector<2x32xf32>
    %297 = vector.extract_strided_slice %294 {offsets = [0, 32], sizes = [2, 32], strides = [1, 1]} : vector<2x128xf32> to vector<2x32xf32>
    %298 = arith.mulf %297, %279 : vector<2x32xf32>
    %299 = vector.extract_strided_slice %294 {offsets = [0, 0], sizes = [2, 32], strides = [1, 1]} : vector<2x128xf32> to vector<2x32xf32>
    %300 = arith.mulf %299, %296 : vector<2x32xf32>
    %301 = arith.addf %298, %300 : vector<2x32xf32>
    %302 = vector.extract_strided_slice %294 {offsets = [0, 96], sizes = [2, 32], strides = [1, 1]} : vector<2x128xf32> to vector<2x32xf32>
    %303 = math.tanh %301 : vector<2x32xf32>
    %304 = arith.mulf %302, %303 : vector<2x32xf32>
    %c4_113 = arith.constant 4 : index
    %c0_114 = arith.constant 0 : index
    %c0_115 = arith.constant 0 : index
    %305 = vector.load %arg6[%c4_113, %c0_114, %c0_115] : memref<8x2x32xf32, #tpu.memory_space<vmem>>, vector<1x2x32xf32>
    %306 = vector.shape_cast %305 : vector<1x2x32xf32> to vector<2x32xf32>
    %307 = vector.shape_cast %304 : vector<2x32xf32> to vector<1x2x32xf32>
    tpu.vector_store %arg6[%c4_113, %c0_114, %c0_115], %307 {strides = array<i32>} : memref<8x2x32xf32, #tpu.memory_space<vmem>>, vector<1x2x32xf32>,
    %c5_116 = arith.constant 5 : index
    %c0_117 = arith.constant 0 : index
    %c0_118 = arith.constant 0 : index
    %308 = vector.load %arg4[%c5_116, %c0_117, %c0_118] : memref<8x2x128xf32, #tpu.memory_space<vmem>>, vector<1x2x128xf32>
    %309 = vector.shape_cast %308 : vector<1x2x128xf32> to vector<2x128xf32>
    %cst_119 = arith.constant dense<0.000000e+00> : vector<2x128xf32>
    %310 = tpu.matmul %304, %188, %cst_119 {dimension_numbers = #tpu.dot_dimension_numbers<[1], [0], [0], [1], [0, 0, 1, 1], [], []>} : vector<2x32xf32>, vector<32x128xf32>, vector<2x128xf32> -> vector<2x128xf32>
    %311 = arith.addf %309, %310 : vector<2x128xf32>
    %312 = arith.negf %311 : vector<2x128xf32>
    %313 = math.exp %312 : vector<2x128xf32>
    %cst_120 = arith.constant 1.000000e+00 : f32
    %314 = vector.broadcast %cst_120 : f32 to vector<2x128xf32>
    %315 = arith.addf %314, %313 : vector<2x128xf32>
    %316 = arith.divf %314, %315 : vector<2x128xf32>
    %317 = vector.extract_strided_slice %311 {offsets = [0, 64], sizes = [2, 32], strides = [1, 1]} : vector<2x128xf32> to vector<2x32xf32>
    %318 = math.tanh %317 : vector<2x32xf32>
    %319 = vector.extract_strided_slice %316 {offsets = [0, 32], sizes = [2, 32], strides = [1, 1]} : vector<2x128xf32> to vector<2x32xf32>
    %320 = arith.mulf %319, %301 : vector<2x32xf32>
    %321 = vector.extract_strided_slice %316 {offsets = [0, 0], sizes = [2, 32], strides = [1, 1]} : vector<2x128xf32> to vector<2x32xf32>
    %322 = arith.mulf %321, %318 : vector<2x32xf32>
    %323 = arith.addf %320, %322 : vector<2x32xf32>
    %324 = vector.extract_strided_slice %316 {offsets = [0, 96], sizes = [2, 32], strides = [1, 1]} : vector<2x128xf32> to vector<2x32xf32>
    %325 = math.tanh %323 : vector<2x32xf32>
    %326 = arith.mulf %324, %325 : vector<2x32xf32>
    %c5_121 = arith.constant 5 : index
    %c0_122 = arith.constant 0 : index
    %c0_123 = arith.constant 0 : index
    %327 = vector.load %arg6[%c5_121, %c0_122, %c0_123] : memref<8x2x32xf32, #tpu.memory_space<vmem>>, vector<1x2x32xf32>
    %328 = vector.shape_cast %327 : vector<1x2x32xf32> to vector<2x32xf32>
    %329 = vector.shape_cast %326 : vector<2x32xf32> to vector<1x2x32xf32>
    tpu.vector_store %arg6[%c5_121, %c0_122, %c0_123], %329 {strides = array<i32>} : memref<8x2x32xf32, #tpu.memory_space<vmem>>, vector<1x2x32xf32>,
    %c6_124 = arith.constant 6 : index
    %c0_125 = arith.constant 0 : index
    %c0_126 = arith.constant 0 : index
    %330 = vector.load %arg4[%c6_124, %c0_125, %c0_126] : memref<8x2x128xf32, #tpu.memory_space<vmem>>, vector<1x2x128xf32>
    %331 = vector.shape_cast %330 : vector<1x2x128xf32> to vector<2x128xf32>
    %cst_127 = arith.constant dense<0.000000e+00> : vector<2x128xf32>
    %332 = tpu.matmul %326, %188, %cst_127 {dimension_numbers = #tpu.dot_dimension_numbers<[1], [0], [0], [1], [0, 0, 1, 1], [], []>} : vector<2x32xf32>, vector<32x128xf32>, vector<2x128xf32> -> vector<2x128xf32>
    %333 = arith.addf %331, %332 : vector<2x128xf32>
    %334 = arith.negf %333 : vector<2x128xf32>
    %335 = math.exp %334 : vector<2x128xf32>
    %cst_128 = arith.constant 1.000000e+00 : f32
    %336 = vector.broadcast %cst_128 : f32 to vector<2x128xf32>
    %337 = arith.addf %336, %335 : vector<2x128xf32>
    %338 = arith.divf %336, %337 : vector<2x128xf32>
    %339 = vector.extract_strided_slice %333 {offsets = [0, 64], sizes = [2, 32], strides = [1, 1]} : vector<2x128xf32> to vector<2x32xf32>
    %340 = math.tanh %339 : vector<2x32xf32>
    %341 = vector.extract_strided_slice %338 {offsets = [0, 32], sizes = [2, 32], strides = [1, 1]} : vector<2x128xf32> to vector<2x32xf32>
    %342 = arith.mulf %341, %323 : vector<2x32xf32>
    %343 = vector.extract_strided_slice %338 {offsets = [0, 0], sizes = [2, 32], strides = [1, 1]} : vector<2x128xf32> to vector<2x32xf32>
    %344 = arith.mulf %343, %340 : vector<2x32xf32>
    %345 = arith.addf %342, %344 : vector<2x32xf32>
    %346 = vector.extract_strided_slice %338 {offsets = [0, 96], sizes = [2, 32], strides = [1, 1]} : vector<2x128xf32> to vector<2x32xf32>
    %347 = math.tanh %345 : vector<2x32xf32>
    %348 = arith.mulf %346, %347 : vector<2x32xf32>
    %c6_129 = arith.constant 6 : index
    %c0_130 = arith.constant 0 : index
    %c0_131 = arith.constant 0 : index
    %349 = vector.load %arg6[%c6_129, %c0_130, %c0_131] : memref<8x2x32xf32, #tpu.memory_space<vmem>>, vector<1x2x32xf32>
    %350 = vector.shape_cast %349 : vector<1x2x32xf32> to vector<2x32xf32>
    %351 = vector.shape_cast %348 : vector<2x32xf32> to vector<1x2x32xf32>
    tpu.vector_store %arg6[%c6_129, %c0_130, %c0_131], %351 {strides = array<i32>} : memref<8x2x32xf32, #tpu.memory_space<vmem>>, vector<1x2x32xf32>,
    %c7_132 = arith.constant 7 : index
    %c0_133 = arith.constant 0 : index
    %c0_134 = arith.constant 0 : index
    %352 = vector.load %arg4[%c7_132, %c0_133, %c0_134] : memref<8x2x128xf32, #tpu.memory_space<vmem>>, vector<1x2x128xf32>
    %353 = vector.shape_cast %352 : vector<1x2x128xf32> to vector<2x128xf32>
    %cst_135 = arith.constant dense<0.000000e+00> : vector<2x128xf32>
    %354 = tpu.matmul %348, %188, %cst_135 {dimension_numbers = #tpu.dot_dimension_numbers<[1], [0], [0], [1], [0, 0, 1, 1], [], []>} : vector<2x32xf32>, vector<32x128xf32>, vector<2x128xf32> -> vector<2x128xf32>
    %355 = arith.addf %353, %354 : vector<2x128xf32>
    %356 = arith.negf %355 : vector<2x128xf32>
    %357 = math.exp %356 : vector<2x128xf32>
    %cst_136 = arith.constant 1.000000e+00 : f32
    %358 = vector.broadcast %cst_136 : f32 to vector<2x128xf32>
    %359 = arith.addf %358, %357 : vector<2x128xf32>
    %360 = arith.divf %358, %359 : vector<2x128xf32>
    %361 = vector.extract_strided_slice %355 {offsets = [0, 64], sizes = [2, 32], strides = [1, 1]} : vector<2x128xf32> to vector<2x32xf32>
    %362 = math.tanh %361 : vector<2x32xf32>
    %363 = vector.extract_strided_slice %360 {offsets = [0, 32], sizes = [2, 32], strides = [1, 1]} : vector<2x128xf32> to vector<2x32xf32>
    %364 = arith.mulf %363, %345 : vector<2x32xf32>
    %365 = vector.extract_strided_slice %360 {offsets = [0, 0], sizes = [2, 32], strides = [1, 1]} : vector<2x128xf32> to vector<2x32xf32>
    %366 = arith.mulf %365, %362 : vector<2x32xf32>
    %367 = arith.addf %364, %366 : vector<2x32xf32>
    %368 = vector.extract_strided_slice %360 {offsets = [0, 96], sizes = [2, 32], strides = [1, 1]} : vector<2x128xf32> to vector<2x32xf32>
    %369 = math.tanh %367 : vector<2x32xf32>
    %370 = arith.mulf %368, %369 : vector<2x32xf32>
    %c7_137 = arith.constant 7 : index
    %c0_138 = arith.constant 0 : index
    %c0_139 = arith.constant 0 : index
    %371 = vector.load %arg6[%c7_137, %c0_138, %c0_139] : memref<8x2x32xf32, #tpu.memory_space<vmem>>, vector<1x2x32xf32>
    %372 = vector.shape_cast %371 : vector<1x2x32xf32> to vector<2x32xf32>
    %373 = vector.shape_cast %370 : vector<2x32xf32> to vector<1x2x32xf32>
    tpu.vector_store %arg6[%c7_137, %c0_138, %c0_139], %373 {strides = array<i32>} : memref<8x2x32xf32, #tpu.memory_space<vmem>>, vector<1x2x32xf32>,
    %c0_140 = arith.constant 0 : index
    %c0_141 = arith.constant 0 : index
    %c0_142 = arith.constant 0 : index
    %374 = vector.load %arg5[%c0_140, %c0_141, %c0_142] : memref<8x2x32xf32, #tpu.memory_space<vmem>>, vector<1x2x32xf32>
    %375 = vector.shape_cast %374 : vector<1x2x32xf32> to vector<2x32xf32>
    %c1_143 = arith.constant 1 : index
    %c0_144 = arith.constant 0 : index
    %c0_145 = arith.constant 0 : index
    %376 = vector.load %arg5[%c1_143, %c0_144, %c0_145] : memref<8x2x32xf32, #tpu.memory_space<vmem>>, vector<1x2x32xf32>
    %377 = vector.shape_cast %376 : vector<1x2x32xf32> to vector<2x32xf32>
    %c2_146 = arith.constant 2 : index
    %c0_147 = arith.constant 0 : index
    %c0_148 = arith.constant 0 : index
    %378 = vector.load %arg5[%c2_146, %c0_147, %c0_148] : memref<8x2x32xf32, #tpu.memory_space<vmem>>, vector<1x2x32xf32>
    %379 = vector.shape_cast %378 : vector<1x2x32xf32> to vector<2x32xf32>
    %c3_149 = arith.constant 3 : index
    %c0_150 = arith.constant 0 : index
    %c0_151 = arith.constant 0 : index
    %380 = vector.load %arg5[%c3_149, %c0_150, %c0_151] : memref<8x2x32xf32, #tpu.memory_space<vmem>>, vector<1x2x32xf32>
    %381 = vector.shape_cast %380 : vector<1x2x32xf32> to vector<2x32xf32>
    %c4_152 = arith.constant 4 : index
    %c0_153 = arith.constant 0 : index
    %c0_154 = arith.constant 0 : index
    %382 = vector.load %arg5[%c4_152, %c0_153, %c0_154] : memref<8x2x32xf32, #tpu.memory_space<vmem>>, vector<1x2x32xf32>
    %383 = vector.shape_cast %382 : vector<1x2x32xf32> to vector<2x32xf32>
    %c5_155 = arith.constant 5 : index
    %c0_156 = arith.constant 0 : index
    %c0_157 = arith.constant 0 : index
    %384 = vector.load %arg5[%c5_155, %c0_156, %c0_157] : memref<8x2x32xf32, #tpu.memory_space<vmem>>, vector<1x2x32xf32>
    %385 = vector.shape_cast %384 : vector<1x2x32xf32> to vector<2x32xf32>
    %c6_158 = arith.constant 6 : index
    %c0_159 = arith.constant 0 : index
    %c0_160 = arith.constant 0 : index
    %386 = vector.load %arg5[%c6_158, %c0_159, %c0_160] : memref<8x2x32xf32, #tpu.memory_space<vmem>>, vector<1x2x32xf32>
    %387 = vector.shape_cast %386 : vector<1x2x32xf32> to vector<2x32xf32>
    %c7_161 = arith.constant 7 : index
    %c0_162 = arith.constant 0 : index
    %c0_163 = arith.constant 0 : index
    %388 = vector.load %arg5[%c7_161, %c0_162, %c0_163] : memref<8x2x32xf32, #tpu.memory_space<vmem>>, vector<1x2x32xf32>
    %389 = vector.shape_cast %388 : vector<1x2x32xf32> to vector<2x32xf32>
    %390 = vector.shape_cast %375 : vector<2x32xf32> to vector<2x1x32xf32>
    %391 = vector.shape_cast %377 : vector<2x32xf32> to vector<2x1x32xf32>
    %392 = vector.shape_cast %379 : vector<2x32xf32> to vector<2x1x32xf32>
    %393 = vector.shape_cast %381 : vector<2x32xf32> to vector<2x1x32xf32>
    %394 = vector.shape_cast %383 : vector<2x32xf32> to vector<2x1x32xf32>
    %395 = vector.shape_cast %385 : vector<2x32xf32> to vector<2x1x32xf32>
    %396 = vector.shape_cast %387 : vector<2x32xf32> to vector<2x1x32xf32>
    %397 = vector.shape_cast %389 : vector<2x32xf32> to vector<2x1x32xf32>
    %398 = tpu.concatenate %390, %391, %392, %393, %394, %395, %396, %397 in 1 : vector<2x1x32xf32>, vector<2x1x32xf32>, vector<2x1x32xf32>, vector<2x1x32xf32>, vector<2x1x32xf32>, vector<2x1x32xf32>, vector<2x1x32xf32>, vector<2x1x32xf32> -> vector<2x8x32xf32>
    %c0_164 = arith.constant 0 : index
    %c0_165 = arith.constant 0 : index
    %c0_166 = arith.constant 0 : index
    %399 = vector.load %arg6[%c0_164, %c0_165, %c0_166] : memref<8x2x32xf32, #tpu.memory_space<vmem>>, vector<1x2x32xf32>
    %400 = vector.shape_cast %399 : vector<1x2x32xf32> to vector<2x32xf32>
    %c1_167 = arith.constant 1 : index
    %c0_168 = arith.constant 0 : index
    %c0_169 = arith.constant 0 : index
    %401 = vector.load %arg6[%c1_167, %c0_168, %c0_169] : memref<8x2x32xf32, #tpu.memory_space<vmem>>, vector<1x2x32xf32>
    %402 = vector.shape_cast %401 : vector<1x2x32xf32> to vector<2x32xf32>
    %c2_170 = arith.constant 2 : index
    %c0_171 = arith.constant 0 : index
    %c0_172 = arith.constant 0 : index
    %403 = vector.load %arg6[%c2_170, %c0_171, %c0_172] : memref<8x2x32xf32, #tpu.memory_space<vmem>>, vector<1x2x32xf32>
    %404 = vector.shape_cast %403 : vector<1x2x32xf32> to vector<2x32xf32>
    %c3_173 = arith.constant 3 : index
    %c0_174 = arith.constant 0 : index
    %c0_175 = arith.constant 0 : index
    %405 = vector.load %arg6[%c3_173, %c0_174, %c0_175] : memref<8x2x32xf32, #tpu.memory_space<vmem>>, vector<1x2x32xf32>
    %406 = vector.shape_cast %405 : vector<1x2x32xf32> to vector<2x32xf32>
    %c4_176 = arith.constant 4 : index
    %c0_177 = arith.constant 0 : index
    %c0_178 = arith.constant 0 : index
    %407 = vector.load %arg6[%c4_176, %c0_177, %c0_178] : memref<8x2x32xf32, #tpu.memory_space<vmem>>, vector<1x2x32xf32>
    %408 = vector.shape_cast %407 : vector<1x2x32xf32> to vector<2x32xf32>
    %c5_179 = arith.constant 5 : index
    %c0_180 = arith.constant 0 : index
    %c0_181 = arith.constant 0 : index
    %409 = vector.load %arg6[%c5_179, %c0_180, %c0_181] : memref<8x2x32xf32, #tpu.memory_space<vmem>>, vector<1x2x32xf32>
    %410 = vector.shape_cast %409 : vector<1x2x32xf32> to vector<2x32xf32>
    %c6_182 = arith.constant 6 : index
    %c0_183 = arith.constant 0 : index
    %c0_184 = arith.constant 0 : index
    %411 = vector.load %arg6[%c6_182, %c0_183, %c0_184] : memref<8x2x32xf32, #tpu.memory_space<vmem>>, vector<1x2x32xf32>
    %412 = vector.shape_cast %411 : vector<1x2x32xf32> to vector<2x32xf32>
    %c7_185 = arith.constant 7 : index
    %c0_186 = arith.constant 0 : index
    %c0_187 = arith.constant 0 : index
    %413 = vector.load %arg6[%c7_185, %c0_186, %c0_187] : memref<8x2x32xf32, #tpu.memory_space<vmem>>, vector<1x2x32xf32>
    %414 = vector.shape_cast %413 : vector<1x2x32xf32> to vector<2x32xf32>
    %415 = vector.shape_cast %400 : vector<2x32xf32> to vector<2x1x32xf32>
    %416 = vector.shape_cast %402 : vector<2x32xf32> to vector<2x1x32xf32>
    %417 = vector.shape_cast %404 : vector<2x32xf32> to vector<2x1x32xf32>
    %418 = vector.shape_cast %406 : vector<2x32xf32> to vector<2x1x32xf32>
    %419 = vector.shape_cast %408 : vector<2x32xf32> to vector<2x1x32xf32>
    %420 = vector.shape_cast %410 : vector<2x32xf32> to vector<2x1x32xf32>
    %421 = vector.shape_cast %412 : vector<2x32xf32> to vector<2x1x32xf32>
    %422 = vector.shape_cast %414 : vector<2x32xf32> to vector<2x1x32xf32>
    %423 = tpu.concatenate %415, %416, %417, %418, %419, %420, %421, %422 in 1 : vector<2x1x32xf32>, vector<2x1x32xf32>, vector<2x1x32xf32>, vector<2x1x32xf32>, vector<2x1x32xf32>, vector<2x1x32xf32>, vector<2x1x32xf32>, vector<2x1x32xf32> -> vector<2x8x32xf32>
    %424 = tpu.transpose %398, [0, 2, 1] : vector<2x8x32xf32> -> vector<2x32x8xf32>
    %425 = tpu.transpose %423, [0, 2, 1] : vector<2x8x32xf32> -> vector<2x32x8xf32>
    %426 = vector.shape_cast %424 : vector<2x32x8xf32> to vector<64x8xf32>
    %c144 = arith.constant 144 : index
    %c0_188 = arith.constant 0 : index
    %427 = vector.load %arg0[%c144, %c0_188] : memref<656x256xf32, #tpu.memory_space<vmem>>, vector<8x8xf32>
    %cst_189 = arith.constant dense<0.000000e+00> : vector<64x8xf32>
    %428 = tpu.matmul %426, %427, %cst_189 {dimension_numbers = #tpu.dot_dimension_numbers<[1], [0], [0], [1], [0, 0, 1, 1], [], []>} : vector<64x8xf32>, vector<8x8xf32>, vector<64x8xf32> -> vector<64x8xf32>
    %429 = vector.shape_cast %428 : vector<64x8xf32> to vector<2x32x8xf32>
    %430 = vector.shape_cast %425 : vector<2x32x8xf32> to vector<64x8xf32>
    %c152 = arith.constant 152 : index
    %c0_190 = arith.constant 0 : index
    %431 = vector.load %arg0[%c152, %c0_190] : memref<656x256xf32, #tpu.memory_space<vmem>>, vector<8x16xf32>
    %cst_191 = arith.constant dense<0.000000e+00> : vector<64x16xf32>
    %432 = tpu.matmul %430, %431, %cst_191 {dimension_numbers = #tpu.dot_dimension_numbers<[1], [0], [0], [1], [0, 0, 1, 1], [], []>} : vector<64x8xf32>, vector<8x16xf32>, vector<64x16xf32> -> vector<64x16xf32>
    %c160 = arith.constant 160 : index
    %c0_192 = arith.constant 0 : index
    %433 = vector.load %arg0[%c160, %c0_192] : memref<656x256xf32, #tpu.memory_space<vmem>>, vector<1x16xf32>
    %434 = vector.broadcast %433 : vector<1x16xf32> to vector<64x16xf32>
    %435 = arith.addf %432, %434 : vector<64x16xf32>
    %436 = vector.extract_strided_slice %435 {offsets = [0, 0], sizes = [64, 8], strides = [1, 1]} : vector<64x16xf32> to vector<64x8xf32>
    %437 = vector.shape_cast %436 : vector<64x8xf32> to vector<2x32x8xf32>
    %438 = vector.extract_strided_slice %435 {offsets = [0, 8], sizes = [64, 8], strides = [1, 1]} : vector<64x16xf32> to vector<64x8xf32>
    %439 = vector.shape_cast %438 : vector<64x8xf32> to vector<2x32x8xf32>
    %440 = vector.extract_strided_slice %429 {offsets = [0, 0, 0], sizes = [2, 32, 4], strides = [1, 1, 1]} : vector<2x32x8xf32> to vector<2x32x4xf32>
    %441 = vector.extract_strided_slice %437 {offsets = [0, 0, 0], sizes = [2, 32, 4], strides = [1, 1, 1]} : vector<2x32x8xf32> to vector<2x32x4xf32>
    "tpu.trace_start"() <{level = 10 : i32, message = "bqd,bkd->bqk"}> : () -> ()
    %cst_193 = arith.constant dense<0.000000e+00> : vector<2x32x32xf32>
    %442 = tpu.matmul %440, %441, %cst_193 {dimension_numbers = #tpu.dot_dimension_numbers<[2], [2], [1], [1], [0, 0, 0, 1, 1, 1], [0], [0]>} : vector<2x32x4xf32>, vector<2x32x4xf32>, vector<2x32x32xf32> -> vector<2x32x32xf32>
    "tpu.trace_stop"() : () -> ()
    %cst_194 = arith.constant 5.000000e-01 : f32
    %443 = vector.broadcast %cst_194 : f32 to vector<2x32x32xf32>
    %444 = arith.mulf %442, %443 : vector<2x32x32xf32>
    %cst_195 = arith.constant dense<0xFF800000> : vector<2x32xf32>
    %445 = vector.multi_reduction <maximumf>, %444, %cst_195 [2] : vector<2x32x32xf32> to vector<2x32xf32>
    %446 = vector.shape_cast %445 : vector<2x32xf32> to vector<2x32x1xf32>
    %447 = vector.broadcast %446 : vector<2x32x1xf32> to vector<2x32x32xf32>
    %448 = arith.subf %444, %447 : vector<2x32x32xf32>
    %449 = math.exp %448 : vector<2x32x32xf32>
    %cst_196 = arith.constant dense<0.000000e+00> : vector<2x32xf32>
    %450 = vector.multi_reduction <add>, %449, %cst_196 [2] : vector<2x32x32xf32> to vector<2x32xf32>
    %451 = vector.shape_cast %450 : vector<2x32xf32> to vector<2x32x1xf32>
    %452 = vector.broadcast %451 : vector<2x32x1xf32> to vector<2x32x32xf32>
    %453 = arith.divf %449, %452 : vector<2x32x32xf32>
    %454 = vector.extract_strided_slice %439 {offsets = [0, 0, 0], sizes = [2, 32, 4], strides = [1, 1, 1]} : vector<2x32x8xf32> to vector<2x32x4xf32>
    "tpu.trace_start"() <{level = 10 : i32, message = "bqk,bkd->bqd"}> : () -> ()
    %cst_197 = arith.constant dense<0.000000e+00> : vector<2x32x4xf32>
    %455 = tpu.matmul %453, %454, %cst_197 {dimension_numbers = #tpu.dot_dimension_numbers<[2], [1], [1], [2], [0, 0, 0, 1, 1, 2], [0], [0]>} : vector<2x32x32xf32>, vector<2x32x4xf32>, vector<2x32x4xf32> -> vector<2x32x4xf32>
    "tpu.trace_stop"() : () -> ()
    %456 = vector.extract_strided_slice %429 {offsets = [0, 0, 4], sizes = [2, 32, 4], strides = [1, 1, 1]} : vector<2x32x8xf32> to vector<2x32x4xf32>
    %457 = vector.extract_strided_slice %437 {offsets = [0, 0, 4], sizes = [2, 32, 4], strides = [1, 1, 1]} : vector<2x32x8xf32> to vector<2x32x4xf32>
    "tpu.trace_start"() <{level = 10 : i32, message = "bqd,bkd->bqk"}> : () -> ()
    %cst_198 = arith.constant dense<0.000000e+00> : vector<2x32x32xf32>
    %458 = tpu.matmul %456, %457, %cst_198 {dimension_numbers = #tpu.dot_dimension_numbers<[2], [2], [1], [1], [0, 0, 0, 1, 1, 1], [0], [0]>} : vector<2x32x4xf32>, vector<2x32x4xf32>, vector<2x32x32xf32> -> vector<2x32x32xf32>
    "tpu.trace_stop"() : () -> ()
    %cst_199 = arith.constant 5.000000e-01 : f32
    %459 = vector.broadcast %cst_199 : f32 to vector<2x32x32xf32>
    %460 = arith.mulf %458, %459 : vector<2x32x32xf32>
    %cst_200 = arith.constant dense<0xFF800000> : vector<2x32xf32>
    %461 = vector.multi_reduction <maximumf>, %460, %cst_200 [2] : vector<2x32x32xf32> to vector<2x32xf32>
    %462 = vector.shape_cast %461 : vector<2x32xf32> to vector<2x32x1xf32>
    %463 = vector.broadcast %462 : vector<2x32x1xf32> to vector<2x32x32xf32>
    %464 = arith.subf %460, %463 : vector<2x32x32xf32>
    %465 = math.exp %464 : vector<2x32x32xf32>
    %cst_201 = arith.constant dense<0.000000e+00> : vector<2x32xf32>
    %466 = vector.multi_reduction <add>, %465, %cst_201 [2] : vector<2x32x32xf32> to vector<2x32xf32>
    %467 = vector.shape_cast %466 : vector<2x32xf32> to vector<2x32x1xf32>
    %468 = vector.broadcast %467 : vector<2x32x1xf32> to vector<2x32x32xf32>
    %469 = arith.divf %465, %468 : vector<2x32x32xf32>
    %470 = vector.extract_strided_slice %439 {offsets = [0, 0, 4], sizes = [2, 32, 4], strides = [1, 1, 1]} : vector<2x32x8xf32> to vector<2x32x4xf32>
    "tpu.trace_start"() <{level = 10 : i32, message = "bqk,bkd->bqd"}> : () -> ()
    %cst_202 = arith.constant dense<0.000000e+00> : vector<2x32x4xf32>
    %471 = tpu.matmul %469, %470, %cst_202 {dimension_numbers = #tpu.dot_dimension_numbers<[2], [1], [1], [2], [0, 0, 0, 1, 1, 2], [0], [0]>} : vector<2x32x32xf32>, vector<2x32x4xf32>, vector<2x32x4xf32> -> vector<2x32x4xf32>
    "tpu.trace_stop"() : () -> ()
    %472 = tpu.concatenate %455, %471 in 2 : vector<2x32x4xf32>, vector<2x32x4xf32> -> vector<2x32x8xf32>
    %473 = vector.shape_cast %472 : vector<2x32x8xf32> to vector<64x8xf32>
    %c168 = arith.constant 168 : index
    %c0_203 = arith.constant 0 : index
    %474 = vector.load %arg0[%c168, %c0_203] : memref<656x256xf32, #tpu.memory_space<vmem>>, vector<8x8xf32>
    %cst_204 = arith.constant dense<0.000000e+00> : vector<64x8xf32>
    %475 = tpu.matmul %473, %474, %cst_204 {dimension_numbers = #tpu.dot_dimension_numbers<[1], [0], [0], [1], [0, 0, 1, 1], [], []>} : vector<64x8xf32>, vector<8x8xf32>, vector<64x8xf32> -> vector<64x8xf32>
    %476 = vector.shape_cast %475 : vector<64x8xf32> to vector<2x32x8xf32>
    %477 = tpu.transpose %476, [0, 2, 1] : vector<2x32x8xf32> -> vector<2x8x32xf32>
    %478 = arith.addf %398, %477 : vector<2x8x32xf32>
    %c176 = arith.constant 176 : index
    %c0_205 = arith.constant 0 : index
    %479 = vector.load %arg0[%c176, %c0_205] : memref<656x256xf32, #tpu.memory_space<vmem>>, vector<32x32xf32>
    %cst_206 = arith.constant dense<0.000000e+00> : vector<2x32xf32>
    %480 = tpu.matmul %183, %479, %cst_206 {dimension_numbers = #tpu.dot_dimension_numbers<[1], [0], [0], [1], [0, 0, 1, 1], [], []>} : vector<2x32xf32>, vector<32x32xf32>, vector<2x32xf32> -> vector<2x32xf32>
    %c208 = arith.constant 208 : index
    %c0_207 = arith.constant 0 : index
    %481 = vector.load %arg0[%c208, %c0_207] : memref<656x256xf32, #tpu.memory_space<vmem>>, vector<1x32xf32>
    %482 = vector.broadcast %481 : vector<1x32xf32> to vector<2x32xf32>
    %483 = arith.addf %480, %482 : vector<2x32xf32>
    %484 = math.tanh %483 : vector<2x32xf32>
    %c216 = arith.constant 216 : index
    %c0_208 = arith.constant 0 : index
    %485 = vector.load %arg0[%c216, %c0_208] : memref<656x256xf32, #tpu.memory_space<vmem>>, vector<32x32xf32>
    %cst_209 = arith.constant dense<0.000000e+00> : vector<2x32xf32>
    %486 = tpu.matmul %370, %485, %cst_209 {dimension_numbers = #tpu.dot_dimension_numbers<[1], [0], [0], [1], [0, 0, 1, 1], [], []>} : vector<2x32xf32>, vector<32x32xf32>, vector<2x32xf32> -> vector<2x32xf32>
    %c248 = arith.constant 248 : index
    %c0_210 = arith.constant 0 : index
    %487 = vector.load %arg0[%c248, %c0_210] : memref<656x256xf32, #tpu.memory_space<vmem>>, vector<1x32xf32>
    %488 = vector.broadcast %487 : vector<1x32xf32> to vector<2x32xf32>
    %489 = arith.addf %486, %488 : vector<2x32xf32>
    %490 = math.tanh %489 : vector<2x32xf32>
    %c256 = arith.constant 256 : index
    %c0_211 = arith.constant 0 : index
    %491 = vector.load %arg0[%c256, %c0_211] : memref<656x256xf32, #tpu.memory_space<vmem>>, vector<32x160xf32>
    %c288 = arith.constant 288 : index
    %c0_212 = arith.constant 0 : index
    %492 = vector.load %arg0[%c288, %c0_212] : memref<656x256xf32, #tpu.memory_space<vmem>>, vector<32x32xf32>
    %c320 = arith.constant 320 : index
    %c0_213 = arith.constant 0 : index
    %493 = vector.load %arg0[%c320, %c0_213] : memref<656x256xf32, #tpu.memory_space<vmem>>, vector<1x32xf32>
    %494 = vector.shape_cast %493 : vector<1x32xf32> to vector<1x1x32xf32>
    %c328 = arith.constant 328 : index
    %c0_214 = arith.constant 0 : index
    %495 = vector.load %arg0[%c328, %c0_214] : memref<656x256xf32, #tpu.memory_space<vmem>>, vector<8x128xf32>
    %c336 = arith.constant 336 : index
    %c0_215 = arith.constant 0 : index
    %496 = vector.load %arg0[%c336, %c0_215] : memref<656x256xf32, #tpu.memory_space<vmem>>, vector<32x128xf32>
    %c368 = arith.constant 368 : index
    %c0_216 = arith.constant 0 : index
    %497 = vector.load %arg0[%c368, %c0_216] : memref<656x256xf32, #tpu.memory_space<vmem>>, vector<1x128xf32>
    %c32 = arith.constant 32 : index
    %c0_217 = arith.constant 0 : index
    %498 = vector.load %arg0[%c32, %c0_217] : memref<656x256xf32, #tpu.memory_space<vmem>>, vector<8x8xf32>
    %499 = vector.shape_cast %478 : vector<2x8x32xf32> to vector<16x32xf32>
    %cst_218 = arith.constant dense<0.000000e+00> : vector<16x32xf32>
    %500 = tpu.matmul %499, %492, %cst_218 {dimension_numbers = #tpu.dot_dimension_numbers<[1], [0], [0], [1], [0, 0, 1, 1], [], []>} : vector<16x32xf32>, vector<32x32xf32>, vector<16x32xf32> -> vector<16x32xf32>
    %501 = vector.shape_cast %500 : vector<16x32xf32> to vector<2x8x32xf32>
    %cst_219 = arith.constant dense<0.000000e+00> : vector<8x128xf32>
    %502 = tpu.matmul %498, %495, %cst_219 {dimension_numbers = #tpu.dot_dimension_numbers<[1], [0], [0], [1], [0, 0, 1, 1], [], []>} : vector<8x8xf32>, vector<8x128xf32>, vector<8x128xf32> -> vector<8x128xf32>
    %503 = vector.broadcast %497 : vector<1x128xf32> to vector<8x128xf32>
    %504 = arith.addf %502, %503 : vector<8x128xf32>
    %505 = vector.shape_cast %504 : vector<8x128xf32> to vector<4x2x128xf32>
    %c0_220 = arith.constant 0 : index
    %c0_221 = arith.constant 0 : index
    %c0_222 = arith.constant 0 : index
    %506 = vector.load %arg7[%c0_220, %c0_221, %c0_222] : memref<4x2x128xf32, #tpu.memory_space<vmem>>, vector<4x2x128xf32>
    tpu.vector_store %arg7[%c0_220, %c0_221, %c0_222], %505 {strides = array<i32>} : memref<4x2x128xf32, #tpu.memory_space<vmem>>, vector<4x2x128xf32>,
    %cst_223 = arith.constant 0.000000e+00 : f32
    %507 = vector.broadcast %cst_223 : f32 to vector<2x32xf32>
    %cst_224 = arith.constant dense<0.000000e+00> : vector<2x160xf32>
    %508 = tpu.matmul %484, %491, %cst_224 {dimension_numbers = #tpu.dot_dimension_numbers<[1], [0], [0], [1], [0, 0, 1, 1], [], []>} : vector<2x32xf32>, vector<32x160xf32>, vector<2x160xf32> -> vector<2x160xf32>
    %509 = vector.extract_strided_slice %508 {offsets = [0, 128], sizes = [2, 32], strides = [1, 1]} : vector<2x160xf32> to vector<2x32xf32>
    %510 = vector.shape_cast %509 : vector<2x32xf32> to vector<2x1x32xf32>
    %511 = vector.broadcast %510 : vector<2x1x32xf32> to vector<2x8x32xf32>
    %512 = arith.addf %501, %511 : vector<2x8x32xf32>
    %513 = math.tanh %512 : vector<2x8x32xf32>
    %514 = vector.broadcast %494 : vector<1x1x32xf32> to vector<2x8x32xf32>
    %515 = arith.mulf %513, %514 : vector<2x8x32xf32>
    %cst_225 = arith.constant dense<0.000000e+00> : vector<2x8xf32>
    %516 = vector.multi_reduction <add>, %515, %cst_225 [2] : vector<2x8x32xf32> to vector<2x8xf32>
    %cst_226 = arith.constant dense<0xFF800000> : vector<2xf32>
    %517 = vector.multi_reduction <maximumf>, %516, %cst_226 [1] : vector<2x8xf32> to vector<2xf32>
    %518 = vector.shape_cast %517 : vector<2xf32> to vector<2x1xf32>
    %519 = vector.broadcast %518 : vector<2x1xf32> to vector<2x8xf32>
    %520 = arith.subf %516, %519 : vector<2x8xf32>
    %521 = math.exp %520 : vector<2x8xf32>
    %cst_227 = arith.constant dense<0.000000e+00> : vector<2xf32>
    %522 = vector.multi_reduction <add>, %521, %cst_227 [1] : vector<2x8xf32> to vector<2xf32>
    %523 = vector.shape_cast %522 : vector<2xf32> to vector<2x1xf32>
    %524 = vector.broadcast %523 : vector<2x1xf32> to vector<2x8xf32>
    %525 = arith.divf %521, %524 : vector<2x8xf32>
    %526 = vector.shape_cast %525 : vector<2x8xf32> to vector<2x8x1xf32>
    %527 = vector.broadcast %526 : vector<2x8x1xf32> to vector<2x8x32xf32>
    %528 = arith.mulf %527, %478 : vector<2x8x32xf32>
    %cst_228 = arith.constant dense<0.000000e+00> : vector<2x32xf32>
    %529 = vector.multi_reduction <add>, %528, %cst_228 [1] : vector<2x8x32xf32> to vector<2x32xf32>
    %c0_229 = arith.constant 0 : index
    %c0_230 = arith.constant 0 : index
    %c0_231 = arith.constant 0 : index
    %530 = vector.load %arg7[%c0_229, %c0_230, %c0_231] : memref<4x2x128xf32, #tpu.memory_space<vmem>>, vector<1x2x128xf32>
    %531 = vector.shape_cast %530 : vector<1x2x128xf32> to vector<2x128xf32>
    %532 = vector.extract_strided_slice %508 {offsets = [0, 0], sizes = [2, 128], strides = [1, 1]} : vector<2x160xf32> to vector<2x128xf32>
    %533 = arith.addf %531, %532 : vector<2x128xf32>
    %cst_232 = arith.constant dense<0.000000e+00> : vector<2x128xf32>
    %534 = tpu.matmul %529, %496, %cst_232 {dimension_numbers = #tpu.dot_dimension_numbers<[1], [0], [0], [1], [0, 0, 1, 1], [], []>} : vector<2x32xf32>, vector<32x128xf32>, vector<2x128xf32> -> vector<2x128xf32>
    %535 = arith.addf %533, %534 : vector<2x128xf32>
    %536 = arith.negf %535 : vector<2x128xf32>
    %537 = math.exp %536 : vector<2x128xf32>
    %cst_233 = arith.constant 1.000000e+00 : f32
    %538 = vector.broadcast %cst_233 : f32 to vector<2x128xf32>
    %539 = arith.addf %538, %537 : vector<2x128xf32>
    %540 = arith.divf %538, %539 : vector<2x128xf32>
    %541 = vector.extract_strided_slice %535 {offsets = [0, 64], sizes = [2, 32], strides = [1, 1]} : vector<2x128xf32> to vector<2x32xf32>
    %542 = math.tanh %541 : vector<2x32xf32>
    %543 = vector.extract_strided_slice %540 {offsets = [0, 32], sizes = [2, 32], strides = [1, 1]} : vector<2x128xf32> to vector<2x32xf32>
    %544 = arith.mulf %543, %507 : vector<2x32xf32>
    %545 = vector.extract_strided_slice %540 {offsets = [0, 0], sizes = [2, 32], strides = [1, 1]} : vector<2x128xf32> to vector<2x32xf32>
    %546 = arith.mulf %545, %542 : vector<2x32xf32>
    %547 = arith.addf %544, %546 : vector<2x32xf32>
    %548 = vector.extract_strided_slice %540 {offsets = [0, 96], sizes = [2, 32], strides = [1, 1]} : vector<2x128xf32> to vector<2x32xf32>
    %549 = math.tanh %547 : vector<2x32xf32>
    %550 = arith.mulf %548, %549 : vector<2x32xf32>
    %c0_234 = arith.constant 0 : index
    %c0_235 = arith.constant 0 : index
    %c0_236 = arith.constant 0 : index
    %551 = vector.load %arg9[%c0_234, %c0_235, %c0_236] : memref<4x2x32xf32, #tpu.memory_space<vmem>>, vector<1x2x32xf32>
    %552 = vector.shape_cast %551 : vector<1x2x32xf32> to vector<2x32xf32>
    %553 = vector.shape_cast %550 : vector<2x32xf32> to vector<1x2x32xf32>
    tpu.vector_store %arg9[%c0_234, %c0_235, %c0_236], %553 {strides = array<i32>} : memref<4x2x32xf32, #tpu.memory_space<vmem>>, vector<1x2x32xf32>,
    %c0_237 = arith.constant 0 : index
    %c0_238 = arith.constant 0 : index
    %c0_239 = arith.constant 0 : index
    %554 = vector.load %arg10[%c0_237, %c0_238, %c0_239] : memref<4x2x32xf32, #tpu.memory_space<vmem>>, vector<1x2x32xf32>
    %555 = vector.shape_cast %554 : vector<1x2x32xf32> to vector<2x32xf32>
    %556 = vector.shape_cast %529 : vector<2x32xf32> to vector<1x2x32xf32>
    tpu.vector_store %arg10[%c0_237, %c0_238, %c0_239], %556 {strides = array<i32>} : memref<4x2x32xf32, #tpu.memory_space<vmem>>, vector<1x2x32xf32>,
    %cst_240 = arith.constant dense<0.000000e+00> : vector<2x160xf32>
    %557 = tpu.matmul %550, %491, %cst_240 {dimension_numbers = #tpu.dot_dimension_numbers<[1], [0], [0], [1], [0, 0, 1, 1], [], []>} : vector<2x32xf32>, vector<32x160xf32>, vector<2x160xf32> -> vector<2x160xf32>
    %558 = vector.extract_strided_slice %557 {offsets = [0, 128], sizes = [2, 32], strides = [1, 1]} : vector<2x160xf32> to vector<2x32xf32>
    %559 = vector.shape_cast %558 : vector<2x32xf32> to vector<2x1x32xf32>
    %560 = vector.broadcast %559 : vector<2x1x32xf32> to vector<2x8x32xf32>
    %561 = arith.addf %501, %560 : vector<2x8x32xf32>
    %562 = math.tanh %561 : vector<2x8x32xf32>
    %563 = vector.broadcast %494 : vector<1x1x32xf32> to vector<2x8x32xf32>
    %564 = arith.mulf %562, %563 : vector<2x8x32xf32>
    %cst_241 = arith.constant dense<0.000000e+00> : vector<2x8xf32>
    %565 = vector.multi_reduction <add>, %564, %cst_241 [2] : vector<2x8x32xf32> to vector<2x8xf32>
    %cst_242 = arith.constant dense<0xFF800000> : vector<2xf32>
    %566 = vector.multi_reduction <maximumf>, %565, %cst_242 [1] : vector<2x8xf32> to vector<2xf32>
    %567 = vector.shape_cast %566 : vector<2xf32> to vector<2x1xf32>
    %568 = vector.broadcast %567 : vector<2x1xf32> to vector<2x8xf32>
    %569 = arith.subf %565, %568 : vector<2x8xf32>
    %570 = math.exp %569 : vector<2x8xf32>
    %cst_243 = arith.constant dense<0.000000e+00> : vector<2xf32>
    %571 = vector.multi_reduction <add>, %570, %cst_243 [1] : vector<2x8xf32> to vector<2xf32>
    %572 = vector.shape_cast %571 : vector<2xf32> to vector<2x1xf32>
    %573 = vector.broadcast %572 : vector<2x1xf32> to vector<2x8xf32>
    %574 = arith.divf %570, %573 : vector<2x8xf32>
    %575 = vector.shape_cast %574 : vector<2x8xf32> to vector<2x8x1xf32>
    %576 = vector.broadcast %575 : vector<2x8x1xf32> to vector<2x8x32xf32>
    %577 = arith.mulf %576, %478 : vector<2x8x32xf32>
    %cst_244 = arith.constant dense<0.000000e+00> : vector<2x32xf32>
    %578 = vector.multi_reduction <add>, %577, %cst_244 [1] : vector<2x8x32xf32> to vector<2x32xf32>
    %c1_245 = arith.constant 1 : index
    %c0_246 = arith.constant 0 : index
    %c0_247 = arith.constant 0 : index
    %579 = vector.load %arg7[%c1_245, %c0_246, %c0_247] : memref<4x2x128xf32, #tpu.memory_space<vmem>>, vector<1x2x128xf32>
    %580 = vector.shape_cast %579 : vector<1x2x128xf32> to vector<2x128xf32>
    %581 = vector.extract_strided_slice %557 {offsets = [0, 0], sizes = [2, 128], strides = [1, 1]} : vector<2x160xf32> to vector<2x128xf32>
    %582 = arith.addf %580, %581 : vector<2x128xf32>
    %cst_248 = arith.constant dense<0.000000e+00> : vector<2x128xf32>
    %583 = tpu.matmul %578, %496, %cst_248 {dimension_numbers = #tpu.dot_dimension_numbers<[1], [0], [0], [1], [0, 0, 1, 1], [], []>} : vector<2x32xf32>, vector<32x128xf32>, vector<2x128xf32> -> vector<2x128xf32>
    %584 = arith.addf %582, %583 : vector<2x128xf32>
    %585 = arith.negf %584 : vector<2x128xf32>
    %586 = math.exp %585 : vector<2x128xf32>
    %cst_249 = arith.constant 1.000000e+00 : f32
    %587 = vector.broadcast %cst_249 : f32 to vector<2x128xf32>
    %588 = arith.addf %587, %586 : vector<2x128xf32>
    %589 = arith.divf %587, %588 : vector<2x128xf32>
    %590 = vector.extract_strided_slice %584 {offsets = [0, 64], sizes = [2, 32], strides = [1, 1]} : vector<2x128xf32> to vector<2x32xf32>
    %591 = math.tanh %590 : vector<2x32xf32>
    %592 = vector.extract_strided_slice %589 {offsets = [0, 32], sizes = [2, 32], strides = [1, 1]} : vector<2x128xf32> to vector<2x32xf32>
    %593 = arith.mulf %592, %547 : vector<2x32xf32>
    %594 = vector.extract_strided_slice %589 {offsets = [0, 0], sizes = [2, 32], strides = [1, 1]} : vector<2x128xf32> to vector<2x32xf32>
    %595 = arith.mulf %594, %591 : vector<2x32xf32>
    %596 = arith.addf %593, %595 : vector<2x32xf32>
    %597 = vector.extract_strided_slice %589 {offsets = [0, 96], sizes = [2, 32], strides = [1, 1]} : vector<2x128xf32> to vector<2x32xf32>
    %598 = math.tanh %596 : vector<2x32xf32>
    %599 = arith.mulf %597, %598 : vector<2x32xf32>
    %c1_250 = arith.constant 1 : index
    %c0_251 = arith.constant 0 : index
    %c0_252 = arith.constant 0 : index
    %600 = vector.load %arg9[%c1_250, %c0_251, %c0_252] : memref<4x2x32xf32, #tpu.memory_space<vmem>>, vector<1x2x32xf32>
    %601 = vector.shape_cast %600 : vector<1x2x32xf32> to vector<2x32xf32>
    %602 = vector.shape_cast %599 : vector<2x32xf32> to vector<1x2x32xf32>
    tpu.vector_store %arg9[%c1_250, %c0_251, %c0_252], %602 {strides = array<i32>} : memref<4x2x32xf32, #tpu.memory_space<vmem>>, vector<1x2x32xf32>,
    %c1_253 = arith.constant 1 : index
    %c0_254 = arith.constant 0 : index
    %c0_255 = arith.constant 0 : index
    %603 = vector.load %arg10[%c1_253, %c0_254, %c0_255] : memref<4x2x32xf32, #tpu.memory_space<vmem>>, vector<1x2x32xf32>
    %604 = vector.shape_cast %603 : vector<1x2x32xf32> to vector<2x32xf32>
    %605 = vector.shape_cast %578 : vector<2x32xf32> to vector<1x2x32xf32>
    tpu.vector_store %arg10[%c1_253, %c0_254, %c0_255], %605 {strides = array<i32>} : memref<4x2x32xf32, #tpu.memory_space<vmem>>, vector<1x2x32xf32>,
    %cst_256 = arith.constant dense<0.000000e+00> : vector<2x160xf32>
    %606 = tpu.matmul %599, %491, %cst_256 {dimension_numbers = #tpu.dot_dimension_numbers<[1], [0], [0], [1], [0, 0, 1, 1], [], []>} : vector<2x32xf32>, vector<32x160xf32>, vector<2x160xf32> -> vector<2x160xf32>
    %607 = vector.extract_strided_slice %606 {offsets = [0, 128], sizes = [2, 32], strides = [1, 1]} : vector<2x160xf32> to vector<2x32xf32>
    %608 = vector.shape_cast %607 : vector<2x32xf32> to vector<2x1x32xf32>
    %609 = vector.broadcast %608 : vector<2x1x32xf32> to vector<2x8x32xf32>
    %610 = arith.addf %501, %609 : vector<2x8x32xf32>
    %611 = math.tanh %610 : vector<2x8x32xf32>
    %612 = vector.broadcast %494 : vector<1x1x32xf32> to vector<2x8x32xf32>
    %613 = arith.mulf %611, %612 : vector<2x8x32xf32>
    %cst_257 = arith.constant dense<0.000000e+00> : vector<2x8xf32>
    %614 = vector.multi_reduction <add>, %613, %cst_257 [2] : vector<2x8x32xf32> to vector<2x8xf32>
    %cst_258 = arith.constant dense<0xFF800000> : vector<2xf32>
    %615 = vector.multi_reduction <maximumf>, %614, %cst_258 [1] : vector<2x8xf32> to vector<2xf32>
    %616 = vector.shape_cast %615 : vector<2xf32> to vector<2x1xf32>
    %617 = vector.broadcast %616 : vector<2x1xf32> to vector<2x8xf32>
    %618 = arith.subf %614, %617 : vector<2x8xf32>
    %619 = math.exp %618 : vector<2x8xf32>
    %cst_259 = arith.constant dense<0.000000e+00> : vector<2xf32>
    %620 = vector.multi_reduction <add>, %619, %cst_259 [1] : vector<2x8xf32> to vector<2xf32>
    %621 = vector.shape_cast %620 : vector<2xf32> to vector<2x1xf32>
    %622 = vector.broadcast %621 : vector<2x1xf32> to vector<2x8xf32>
    %623 = arith.divf %619, %622 : vector<2x8xf32>
    %624 = vector.shape_cast %623 : vector<2x8xf32> to vector<2x8x1xf32>
    %625 = vector.broadcast %624 : vector<2x8x1xf32> to vector<2x8x32xf32>
    %626 = arith.mulf %625, %478 : vector<2x8x32xf32>
    %cst_260 = arith.constant dense<0.000000e+00> : vector<2x32xf32>
    %627 = vector.multi_reduction <add>, %626, %cst_260 [1] : vector<2x8x32xf32> to vector<2x32xf32>
    %c2_261 = arith.constant 2 : index
    %c0_262 = arith.constant 0 : index
    %c0_263 = arith.constant 0 : index
    %628 = vector.load %arg7[%c2_261, %c0_262, %c0_263] : memref<4x2x128xf32, #tpu.memory_space<vmem>>, vector<1x2x128xf32>
    %629 = vector.shape_cast %628 : vector<1x2x128xf32> to vector<2x128xf32>
    %630 = vector.extract_strided_slice %606 {offsets = [0, 0], sizes = [2, 128], strides = [1, 1]} : vector<2x160xf32> to vector<2x128xf32>
    %631 = arith.addf %629, %630 : vector<2x128xf32>
    %cst_264 = arith.constant dense<0.000000e+00> : vector<2x128xf32>
    %632 = tpu.matmul %627, %496, %cst_264 {dimension_numbers = #tpu.dot_dimension_numbers<[1], [0], [0], [1], [0, 0, 1, 1], [], []>} : vector<2x32xf32>, vector<32x128xf32>, vector<2x128xf32> -> vector<2x128xf32>
    %633 = arith.addf %631, %632 : vector<2x128xf32>
    %634 = arith.negf %633 : vector<2x128xf32>
    %635 = math.exp %634 : vector<2x128xf32>
    %cst_265 = arith.constant 1.000000e+00 : f32
    %636 = vector.broadcast %cst_265 : f32 to vector<2x128xf32>
    %637 = arith.addf %636, %635 : vector<2x128xf32>
    %638 = arith.divf %636, %637 : vector<2x128xf32>
    %639 = vector.extract_strided_slice %633 {offsets = [0, 64], sizes = [2, 32], strides = [1, 1]} : vector<2x128xf32> to vector<2x32xf32>
    %640 = math.tanh %639 : vector<2x32xf32>
    %641 = vector.extract_strided_slice %638 {offsets = [0, 32], sizes = [2, 32], strides = [1, 1]} : vector<2x128xf32> to vector<2x32xf32>
    %642 = arith.mulf %641, %596 : vector<2x32xf32>
    %643 = vector.extract_strided_slice %638 {offsets = [0, 0], sizes = [2, 32], strides = [1, 1]} : vector<2x128xf32> to vector<2x32xf32>
    %644 = arith.mulf %643, %640 : vector<2x32xf32>
    %645 = arith.addf %642, %644 : vector<2x32xf32>
    %646 = vector.extract_strided_slice %638 {offsets = [0, 96], sizes = [2, 32], strides = [1, 1]} : vector<2x128xf32> to vector<2x32xf32>
    %647 = math.tanh %645 : vector<2x32xf32>
    %648 = arith.mulf %646, %647 : vector<2x32xf32>
    %c2_266 = arith.constant 2 : index
    %c0_267 = arith.constant 0 : index
    %c0_268 = arith.constant 0 : index
    %649 = vector.load %arg9[%c2_266, %c0_267, %c0_268] : memref<4x2x32xf32, #tpu.memory_space<vmem>>, vector<1x2x32xf32>
    %650 = vector.shape_cast %649 : vector<1x2x32xf32> to vector<2x32xf32>
    %651 = vector.shape_cast %648 : vector<2x32xf32> to vector<1x2x32xf32>
    tpu.vector_store %arg9[%c2_266, %c0_267, %c0_268], %651 {strides = array<i32>} : memref<4x2x32xf32, #tpu.memory_space<vmem>>, vector<1x2x32xf32>,
    %c2_269 = arith.constant 2 : index
    %c0_270 = arith.constant 0 : index
    %c0_271 = arith.constant 0 : index
    %652 = vector.load %arg10[%c2_269, %c0_270, %c0_271] : memref<4x2x32xf32, #tpu.memory_space<vmem>>, vector<1x2x32xf32>
    %653 = vector.shape_cast %652 : vector<1x2x32xf32> to vector<2x32xf32>
    %654 = vector.shape_cast %627 : vector<2x32xf32> to vector<1x2x32xf32>
    tpu.vector_store %arg10[%c2_269, %c0_270, %c0_271], %654 {strides = array<i32>} : memref<4x2x32xf32, #tpu.memory_space<vmem>>, vector<1x2x32xf32>,
    %cst_272 = arith.constant dense<0.000000e+00> : vector<2x160xf32>
    %655 = tpu.matmul %648, %491, %cst_272 {dimension_numbers = #tpu.dot_dimension_numbers<[1], [0], [0], [1], [0, 0, 1, 1], [], []>} : vector<2x32xf32>, vector<32x160xf32>, vector<2x160xf32> -> vector<2x160xf32>
    %656 = vector.extract_strided_slice %655 {offsets = [0, 128], sizes = [2, 32], strides = [1, 1]} : vector<2x160xf32> to vector<2x32xf32>
    %657 = vector.shape_cast %656 : vector<2x32xf32> to vector<2x1x32xf32>
    %658 = vector.broadcast %657 : vector<2x1x32xf32> to vector<2x8x32xf32>
    %659 = arith.addf %501, %658 : vector<2x8x32xf32>
    %660 = math.tanh %659 : vector<2x8x32xf32>
    %661 = vector.broadcast %494 : vector<1x1x32xf32> to vector<2x8x32xf32>
    %662 = arith.mulf %660, %661 : vector<2x8x32xf32>
    %cst_273 = arith.constant dense<0.000000e+00> : vector<2x8xf32>
    %663 = vector.multi_reduction <add>, %662, %cst_273 [2] : vector<2x8x32xf32> to vector<2x8xf32>
    %cst_274 = arith.constant dense<0xFF800000> : vector<2xf32>
    %664 = vector.multi_reduction <maximumf>, %663, %cst_274 [1] : vector<2x8xf32> to vector<2xf32>
    %665 = vector.shape_cast %664 : vector<2xf32> to vector<2x1xf32>
    %666 = vector.broadcast %665 : vector<2x1xf32> to vector<2x8xf32>
    %667 = arith.subf %663, %666 : vector<2x8xf32>
    %668 = math.exp %667 : vector<2x8xf32>
    %cst_275 = arith.constant dense<0.000000e+00> : vector<2xf32>
    %669 = vector.multi_reduction <add>, %668, %cst_275 [1] : vector<2x8xf32> to vector<2xf32>
    %670 = vector.shape_cast %669 : vector<2xf32> to vector<2x1xf32>
    %671 = vector.broadcast %670 : vector<2x1xf32> to vector<2x8xf32>
    %672 = arith.divf %668, %671 : vector<2x8xf32>
    %673 = vector.shape_cast %672 : vector<2x8xf32> to vector<2x8x1xf32>
    %674 = vector.broadcast %673 : vector<2x8x1xf32> to vector<2x8x32xf32>
    %675 = arith.mulf %674, %478 : vector<2x8x32xf32>
    %cst_276 = arith.constant dense<0.000000e+00> : vector<2x32xf32>
    %676 = vector.multi_reduction <add>, %675, %cst_276 [1] : vector<2x8x32xf32> to vector<2x32xf32>
    %c3_277 = arith.constant 3 : index
    %c0_278 = arith.constant 0 : index
    %c0_279 = arith.constant 0 : index
    %677 = vector.load %arg7[%c3_277, %c0_278, %c0_279] : memref<4x2x128xf32, #tpu.memory_space<vmem>>, vector<1x2x128xf32>
    %678 = vector.shape_cast %677 : vector<1x2x128xf32> to vector<2x128xf32>
    %679 = vector.extract_strided_slice %655 {offsets = [0, 0], sizes = [2, 128], strides = [1, 1]} : vector<2x160xf32> to vector<2x128xf32>
    %680 = arith.addf %678, %679 : vector<2x128xf32>
    %cst_280 = arith.constant dense<0.000000e+00> : vector<2x128xf32>
    %681 = tpu.matmul %676, %496, %cst_280 {dimension_numbers = #tpu.dot_dimension_numbers<[1], [0], [0], [1], [0, 0, 1, 1], [], []>} : vector<2x32xf32>, vector<32x128xf32>, vector<2x128xf32> -> vector<2x128xf32>
    %682 = arith.addf %680, %681 : vector<2x128xf32>
    %683 = arith.negf %682 : vector<2x128xf32>
    %684 = math.exp %683 : vector<2x128xf32>
    %cst_281 = arith.constant 1.000000e+00 : f32
    %685 = vector.broadcast %cst_281 : f32 to vector<2x128xf32>
    %686 = arith.addf %685, %684 : vector<2x128xf32>
    %687 = arith.divf %685, %686 : vector<2x128xf32>
    %688 = vector.extract_strided_slice %682 {offsets = [0, 64], sizes = [2, 32], strides = [1, 1]} : vector<2x128xf32> to vector<2x32xf32>
    %689 = math.tanh %688 : vector<2x32xf32>
    %690 = vector.extract_strided_slice %687 {offsets = [0, 32], sizes = [2, 32], strides = [1, 1]} : vector<2x128xf32> to vector<2x32xf32>
    %691 = arith.mulf %690, %645 : vector<2x32xf32>
    %692 = vector.extract_strided_slice %687 {offsets = [0, 0], sizes = [2, 32], strides = [1, 1]} : vector<2x128xf32> to vector<2x32xf32>
    %693 = arith.mulf %692, %689 : vector<2x32xf32>
    %694 = arith.addf %691, %693 : vector<2x32xf32>
    %695 = vector.extract_strided_slice %687 {offsets = [0, 96], sizes = [2, 32], strides = [1, 1]} : vector<2x128xf32> to vector<2x32xf32>
    %696 = math.tanh %694 : vector<2x32xf32>
    %697 = arith.mulf %695, %696 : vector<2x32xf32>
    %c3_282 = arith.constant 3 : index
    %c0_283 = arith.constant 0 : index
    %c0_284 = arith.constant 0 : index
    %698 = vector.load %arg9[%c3_282, %c0_283, %c0_284] : memref<4x2x32xf32, #tpu.memory_space<vmem>>, vector<1x2x32xf32>
    %699 = vector.shape_cast %698 : vector<1x2x32xf32> to vector<2x32xf32>
    %700 = vector.shape_cast %697 : vector<2x32xf32> to vector<1x2x32xf32>
    tpu.vector_store %arg9[%c3_282, %c0_283, %c0_284], %700 {strides = array<i32>} : memref<4x2x32xf32, #tpu.memory_space<vmem>>, vector<1x2x32xf32>,
    %c3_285 = arith.constant 3 : index
    %c0_286 = arith.constant 0 : index
    %c0_287 = arith.constant 0 : index
    %701 = vector.load %arg10[%c3_285, %c0_286, %c0_287] : memref<4x2x32xf32, #tpu.memory_space<vmem>>, vector<1x2x32xf32>
    %702 = vector.shape_cast %701 : vector<1x2x32xf32> to vector<2x32xf32>
    %703 = vector.shape_cast %676 : vector<2x32xf32> to vector<1x2x32xf32>
    tpu.vector_store %arg10[%c3_285, %c0_286, %c0_287], %703 {strides = array<i32>} : memref<4x2x32xf32, #tpu.memory_space<vmem>>, vector<1x2x32xf32>,
    %c0_288 = arith.constant 0 : index
    %c0_289 = arith.constant 0 : index
    %c0_290 = arith.constant 0 : index
    %704 = vector.load %arg9[%c0_288, %c0_289, %c0_290] : memref<4x2x32xf32, #tpu.memory_space<vmem>>, vector<4x2x32xf32>
    %705 = vector.shape_cast %704 : vector<4x2x32xf32> to vector<8x32xf32>
    %c0_291 = arith.constant 0 : index
    %c0_292 = arith.constant 0 : index
    %c0_293 = arith.constant 0 : index
    %706 = vector.load %arg10[%c0_291, %c0_292, %c0_293] : memref<4x2x32xf32, #tpu.memory_space<vmem>>, vector<4x2x32xf32>
    %707 = vector.shape_cast %706 : vector<4x2x32xf32> to vector<8x32xf32>
    %708 = tpu.concatenate %705, %707, %498 in 1 : vector<8x32xf32>, vector<8x32xf32>, vector<8x8xf32> -> vector<8x72xf32>
    %c376 = arith.constant 376 : index
    %c0_294 = arith.constant 0 : index
    %709 = vector.load %arg0[%c376, %c0_294] : memref<656x256xf32, #tpu.memory_space<vmem>>, vector<72x128xf32>
    %cst_295 = arith.constant dense<0.000000e+00> : vector<8x128xf32>
    %710 = tpu.matmul %708, %709, %cst_295 {dimension_numbers = #tpu.dot_dimension_numbers<[1], [0], [0], [1], [0, 0, 1, 1], [], []>} : vector<8x72xf32>, vector<72x128xf32>, vector<8x128xf32> -> vector<8x128xf32>
    %c448 = arith.constant 448 : index
    %c0_296 = arith.constant 0 : index
    %711 = vector.load %arg0[%c448, %c0_296] : memref<656x256xf32, #tpu.memory_space<vmem>>, vector<1x128xf32>
    %712 = vector.broadcast %711 : vector<1x128xf32> to vector<8x128xf32>
    %713 = arith.addf %710, %712 : vector<8x128xf32>
    %c0_297 = arith.constant 0 : index
    %c0_298 = arith.constant 0 : index
    %714 = vector.load %arg1[%c0_297, %c0_298] : memref<8x128xf32, #tpu.memory_space<vmem>>, vector<8x128xf32>
    tpu.vector_store %arg1[%c0_297, %c0_298], %713 {strides = array<i32>} : memref<8x128xf32, #tpu.memory_space<vmem>>, vector<8x128xf32>,
    %c456 = arith.constant 456 : index
    %c0_299 = arith.constant 0 : index
    %715 = vector.load %arg0[%c456, %c0_299] : memref<656x256xf32, #tpu.memory_space<vmem>>, vector<32x160xf32>
    %c488 = arith.constant 488 : index
    %c0_300 = arith.constant 0 : index
    %716 = vector.load %arg0[%c488, %c0_300] : memref<656x256xf32, #tpu.memory_space<vmem>>, vector<32x32xf32>
    %c520 = arith.constant 520 : index
    %c0_301 = arith.constant 0 : index
    %717 = vector.load %arg0[%c520, %c0_301] : memref<656x256xf32, #tpu.memory_space<vmem>>, vector<1x32xf32>
    %718 = vector.shape_cast %717 : vector<1x32xf32> to vector<1x1x32xf32>
    %c528 = arith.constant 528 : index
    %c0_302 = arith.constant 0 : index
    %719 = vector.load %arg0[%c528, %c0_302] : memref<656x256xf32, #tpu.memory_space<vmem>>, vector<8x128xf32>
    %c536 = arith.constant 536 : index
    %c0_303 = arith.constant 0 : index
    %720 = vector.load %arg0[%c536, %c0_303] : memref<656x256xf32, #tpu.memory_space<vmem>>, vector<32x128xf32>
    %c568 = arith.constant 568 : index
    %c0_304 = arith.constant 0 : index
    %721 = vector.load %arg0[%c568, %c0_304] : memref<656x256xf32, #tpu.memory_space<vmem>>, vector<1x128xf32>
    %c40 = arith.constant 40 : index
    %c0_305 = arith.constant 0 : index
    %722 = vector.load %arg0[%c40, %c0_305] : memref<656x256xf32, #tpu.memory_space<vmem>>, vector<8x8xf32>
    %723 = vector.shape_cast %423 : vector<2x8x32xf32> to vector<16x32xf32>
    %cst_306 = arith.constant dense<0.000000e+00> : vector<16x32xf32>
    %724 = tpu.matmul %723, %716, %cst_306 {dimension_numbers = #tpu.dot_dimension_numbers<[1], [0], [0], [1], [0, 0, 1, 1], [], []>} : vector<16x32xf32>, vector<32x32xf32>, vector<16x32xf32> -> vector<16x32xf32>
    %725 = vector.shape_cast %724 : vector<16x32xf32> to vector<2x8x32xf32>
    %cst_307 = arith.constant dense<0.000000e+00> : vector<8x128xf32>
    %726 = tpu.matmul %722, %719, %cst_307 {dimension_numbers = #tpu.dot_dimension_numbers<[1], [0], [0], [1], [0, 0, 1, 1], [], []>} : vector<8x8xf32>, vector<8x128xf32>, vector<8x128xf32> -> vector<8x128xf32>
    %727 = vector.broadcast %721 : vector<1x128xf32> to vector<8x128xf32>
    %728 = arith.addf %726, %727 : vector<8x128xf32>
    %729 = vector.shape_cast %728 : vector<8x128xf32> to vector<4x2x128xf32>
    %c0_308 = arith.constant 0 : index
    %c0_309 = arith.constant 0 : index
    %c0_310 = arith.constant 0 : index
    %730 = vector.load %arg8[%c0_308, %c0_309, %c0_310] : memref<4x2x128xf32, #tpu.memory_space<vmem>>, vector<4x2x128xf32>
    tpu.vector_store %arg8[%c0_308, %c0_309, %c0_310], %729 {strides = array<i32>} : memref<4x2x128xf32, #tpu.memory_space<vmem>>, vector<4x2x128xf32>,
    %cst_311 = arith.constant 0.000000e+00 : f32
    %731 = vector.broadcast %cst_311 : f32 to vector<2x32xf32>
    %cst_312 = arith.constant dense<0.000000e+00> : vector<2x160xf32>
    %732 = tpu.matmul %490, %715, %cst_312 {dimension_numbers = #tpu.dot_dimension_numbers<[1], [0], [0], [1], [0, 0, 1, 1], [], []>} : vector<2x32xf32>, vector<32x160xf32>, vector<2x160xf32> -> vector<2x160xf32>
    %733 = vector.extract_strided_slice %732 {offsets = [0, 128], sizes = [2, 32], strides = [1, 1]} : vector<2x160xf32> to vector<2x32xf32>
    %734 = vector.shape_cast %733 : vector<2x32xf32> to vector<2x1x32xf32>
    %735 = vector.broadcast %734 : vector<2x1x32xf32> to vector<2x8x32xf32>
    %736 = arith.addf %725, %735 : vector<2x8x32xf32>
    %737 = math.tanh %736 : vector<2x8x32xf32>
    %738 = vector.broadcast %718 : vector<1x1x32xf32> to vector<2x8x32xf32>
    %739 = arith.mulf %737, %738 : vector<2x8x32xf32>
    %cst_313 = arith.constant dense<0.000000e+00> : vector<2x8xf32>
    %740 = vector.multi_reduction <add>, %739, %cst_313 [2] : vector<2x8x32xf32> to vector<2x8xf32>
    %cst_314 = arith.constant dense<0xFF800000> : vector<2xf32>
    %741 = vector.multi_reduction <maximumf>, %740, %cst_314 [1] : vector<2x8xf32> to vector<2xf32>
    %742 = vector.shape_cast %741 : vector<2xf32> to vector<2x1xf32>
    %743 = vector.broadcast %742 : vector<2x1xf32> to vector<2x8xf32>
    %744 = arith.subf %740, %743 : vector<2x8xf32>
    %745 = math.exp %744 : vector<2x8xf32>
    %cst_315 = arith.constant dense<0.000000e+00> : vector<2xf32>
    %746 = vector.multi_reduction <add>, %745, %cst_315 [1] : vector<2x8xf32> to vector<2xf32>
    %747 = vector.shape_cast %746 : vector<2xf32> to vector<2x1xf32>
    %748 = vector.broadcast %747 : vector<2x1xf32> to vector<2x8xf32>
    %749 = arith.divf %745, %748 : vector<2x8xf32>
    %750 = vector.shape_cast %749 : vector<2x8xf32> to vector<2x8x1xf32>
    %751 = vector.broadcast %750 : vector<2x8x1xf32> to vector<2x8x32xf32>
    %752 = arith.mulf %751, %423 : vector<2x8x32xf32>
    %cst_316 = arith.constant dense<0.000000e+00> : vector<2x32xf32>
    %753 = vector.multi_reduction <add>, %752, %cst_316 [1] : vector<2x8x32xf32> to vector<2x32xf32>
    %c0_317 = arith.constant 0 : index
    %c0_318 = arith.constant 0 : index
    %c0_319 = arith.constant 0 : index
    %754 = vector.load %arg8[%c0_317, %c0_318, %c0_319] : memref<4x2x128xf32, #tpu.memory_space<vmem>>, vector<1x2x128xf32>
    %755 = vector.shape_cast %754 : vector<1x2x128xf32> to vector<2x128xf32>
    %756 = vector.extract_strided_slice %732 {offsets = [0, 0], sizes = [2, 128], strides = [1, 1]} : vector<2x160xf32> to vector<2x128xf32>
    %757 = arith.addf %755, %756 : vector<2x128xf32>
    %cst_320 = arith.constant dense<0.000000e+00> : vector<2x128xf32>
    %758 = tpu.matmul %753, %720, %cst_320 {dimension_numbers = #tpu.dot_dimension_numbers<[1], [0], [0], [1], [0, 0, 1, 1], [], []>} : vector<2x32xf32>, vector<32x128xf32>, vector<2x128xf32> -> vector<2x128xf32>
    %759 = arith.addf %757, %758 : vector<2x128xf32>
    %760 = arith.negf %759 : vector<2x128xf32>
    %761 = math.exp %760 : vector<2x128xf32>
    %cst_321 = arith.constant 1.000000e+00 : f32
    %762 = vector.broadcast %cst_321 : f32 to vector<2x128xf32>
    %763 = arith.addf %762, %761 : vector<2x128xf32>
    %764 = arith.divf %762, %763 : vector<2x128xf32>
    %765 = vector.extract_strided_slice %759 {offsets = [0, 64], sizes = [2, 32], strides = [1, 1]} : vector<2x128xf32> to vector<2x32xf32>
    %766 = math.tanh %765 : vector<2x32xf32>
    %767 = vector.extract_strided_slice %764 {offsets = [0, 32], sizes = [2, 32], strides = [1, 1]} : vector<2x128xf32> to vector<2x32xf32>
    %768 = arith.mulf %767, %731 : vector<2x32xf32>
    %769 = vector.extract_strided_slice %764 {offsets = [0, 0], sizes = [2, 32], strides = [1, 1]} : vector<2x128xf32> to vector<2x32xf32>
    %770 = arith.mulf %769, %766 : vector<2x32xf32>
    %771 = arith.addf %768, %770 : vector<2x32xf32>
    %772 = vector.extract_strided_slice %764 {offsets = [0, 96], sizes = [2, 32], strides = [1, 1]} : vector<2x128xf32> to vector<2x32xf32>
    %773 = math.tanh %771 : vector<2x32xf32>
    %774 = arith.mulf %772, %773 : vector<2x32xf32>
    %c0_322 = arith.constant 0 : index
    %c0_323 = arith.constant 0 : index
    %c0_324 = arith.constant 0 : index
    %775 = vector.load %arg11[%c0_322, %c0_323, %c0_324] : memref<4x2x32xf32, #tpu.memory_space<vmem>>, vector<1x2x32xf32>
    %776 = vector.shape_cast %775 : vector<1x2x32xf32> to vector<2x32xf32>
    %777 = vector.shape_cast %774 : vector<2x32xf32> to vector<1x2x32xf32>
    tpu.vector_store %arg11[%c0_322, %c0_323, %c0_324], %777 {strides = array<i32>} : memref<4x2x32xf32, #tpu.memory_space<vmem>>, vector<1x2x32xf32>,
    %c0_325 = arith.constant 0 : index
    %c0_326 = arith.constant 0 : index
    %c0_327 = arith.constant 0 : index
    %778 = vector.load %arg12[%c0_325, %c0_326, %c0_327] : memref<4x2x32xf32, #tpu.memory_space<vmem>>, vector<1x2x32xf32>
    %779 = vector.shape_cast %778 : vector<1x2x32xf32> to vector<2x32xf32>
    %780 = vector.shape_cast %753 : vector<2x32xf32> to vector<1x2x32xf32>
    tpu.vector_store %arg12[%c0_325, %c0_326, %c0_327], %780 {strides = array<i32>} : memref<4x2x32xf32, #tpu.memory_space<vmem>>, vector<1x2x32xf32>,
    %cst_328 = arith.constant dense<0.000000e+00> : vector<2x160xf32>
    %781 = tpu.matmul %774, %715, %cst_328 {dimension_numbers = #tpu.dot_dimension_numbers<[1], [0], [0], [1], [0, 0, 1, 1], [], []>} : vector<2x32xf32>, vector<32x160xf32>, vector<2x160xf32> -> vector<2x160xf32>
    %782 = vector.extract_strided_slice %781 {offsets = [0, 128], sizes = [2, 32], strides = [1, 1]} : vector<2x160xf32> to vector<2x32xf32>
    %783 = vector.shape_cast %782 : vector<2x32xf32> to vector<2x1x32xf32>
    %784 = vector.broadcast %783 : vector<2x1x32xf32> to vector<2x8x32xf32>
    %785 = arith.addf %725, %784 : vector<2x8x32xf32>
    %786 = math.tanh %785 : vector<2x8x32xf32>
    %787 = vector.broadcast %718 : vector<1x1x32xf32> to vector<2x8x32xf32>
    %788 = arith.mulf %786, %787 : vector<2x8x32xf32>
    %cst_329 = arith.constant dense<0.000000e+00> : vector<2x8xf32>
    %789 = vector.multi_reduction <add>, %788, %cst_329 [2] : vector<2x8x32xf32> to vector<2x8xf32>
    %cst_330 = arith.constant dense<0xFF800000> : vector<2xf32>
    %790 = vector.multi_reduction <maximumf>, %789, %cst_330 [1] : vector<2x8xf32> to vector<2xf32>
    %791 = vector.shape_cast %790 : vector<2xf32> to vector<2x1xf32>
    %792 = vector.broadcast %791 : vector<2x1xf32> to vector<2x8xf32>
    %793 = arith.subf %789, %792 : vector<2x8xf32>
    %794 = math.exp %793 : vector<2x8xf32>
    %cst_331 = arith.constant dense<0.000000e+00> : vector<2xf32>
    %795 = vector.multi_reduction <add>, %794, %cst_331 [1] : vector<2x8xf32> to vector<2xf32>
    %796 = vector.shape_cast %795 : vector<2xf32> to vector<2x1xf32>
    %797 = vector.broadcast %796 : vector<2x1xf32> to vector<2x8xf32>
    %798 = arith.divf %794, %797 : vector<2x8xf32>
    %799 = vector.shape_cast %798 : vector<2x8xf32> to vector<2x8x1xf32>
    %800 = vector.broadcast %799 : vector<2x8x1xf32> to vector<2x8x32xf32>
    %801 = arith.mulf %800, %423 : vector<2x8x32xf32>
    %cst_332 = arith.constant dense<0.000000e+00> : vector<2x32xf32>
    %802 = vector.multi_reduction <add>, %801, %cst_332 [1] : vector<2x8x32xf32> to vector<2x32xf32>
    %c1_333 = arith.constant 1 : index
    %c0_334 = arith.constant 0 : index
    %c0_335 = arith.constant 0 : index
    %803 = vector.load %arg8[%c1_333, %c0_334, %c0_335] : memref<4x2x128xf32, #tpu.memory_space<vmem>>, vector<1x2x128xf32>
    %804 = vector.shape_cast %803 : vector<1x2x128xf32> to vector<2x128xf32>
    %805 = vector.extract_strided_slice %781 {offsets = [0, 0], sizes = [2, 128], strides = [1, 1]} : vector<2x160xf32> to vector<2x128xf32>
    %806 = arith.addf %804, %805 : vector<2x128xf32>
    %cst_336 = arith.constant dense<0.000000e+00> : vector<2x128xf32>
    %807 = tpu.matmul %802, %720, %cst_336 {dimension_numbers = #tpu.dot_dimension_numbers<[1], [0], [0], [1], [0, 0, 1, 1], [], []>} : vector<2x32xf32>, vector<32x128xf32>, vector<2x128xf32> -> vector<2x128xf32>
    %808 = arith.addf %806, %807 : vector<2x128xf32>
    %809 = arith.negf %808 : vector<2x128xf32>
    %810 = math.exp %809 : vector<2x128xf32>
    %cst_337 = arith.constant 1.000000e+00 : f32
    %811 = vector.broadcast %cst_337 : f32 to vector<2x128xf32>
    %812 = arith.addf %811, %810 : vector<2x128xf32>
    %813 = arith.divf %811, %812 : vector<2x128xf32>
    %814 = vector.extract_strided_slice %808 {offsets = [0, 64], sizes = [2, 32], strides = [1, 1]} : vector<2x128xf32> to vector<2x32xf32>
    %815 = math.tanh %814 : vector<2x32xf32>
    %816 = vector.extract_strided_slice %813 {offsets = [0, 32], sizes = [2, 32], strides = [1, 1]} : vector<2x128xf32> to vector<2x32xf32>
    %817 = arith.mulf %816, %771 : vector<2x32xf32>
    %818 = vector.extract_strided_slice %813 {offsets = [0, 0], sizes = [2, 32], strides = [1, 1]} : vector<2x128xf32> to vector<2x32xf32>
    %819 = arith.mulf %818, %815 : vector<2x32xf32>
    %820 = arith.addf %817, %819 : vector<2x32xf32>
    %821 = vector.extract_strided_slice %813 {offsets = [0, 96], sizes = [2, 32], strides = [1, 1]} : vector<2x128xf32> to vector<2x32xf32>
    %822 = math.tanh %820 : vector<2x32xf32>
    %823 = arith.mulf %821, %822 : vector<2x32xf32>
    %c1_338 = arith.constant 1 : index
    %c0_339 = arith.constant 0 : index
    %c0_340 = arith.constant 0 : index
    %824 = vector.load %arg11[%c1_338, %c0_339, %c0_340] : memref<4x2x32xf32, #tpu.memory_space<vmem>>, vector<1x2x32xf32>
    %825 = vector.shape_cast %824 : vector<1x2x32xf32> to vector<2x32xf32>
    %826 = vector.shape_cast %823 : vector<2x32xf32> to vector<1x2x32xf32>
    tpu.vector_store %arg11[%c1_338, %c0_339, %c0_340], %826 {strides = array<i32>} : memref<4x2x32xf32, #tpu.memory_space<vmem>>, vector<1x2x32xf32>,
    %c1_341 = arith.constant 1 : index
    %c0_342 = arith.constant 0 : index
    %c0_343 = arith.constant 0 : index
    %827 = vector.load %arg12[%c1_341, %c0_342, %c0_343] : memref<4x2x32xf32, #tpu.memory_space<vmem>>, vector<1x2x32xf32>
    %828 = vector.shape_cast %827 : vector<1x2x32xf32> to vector<2x32xf32>
    %829 = vector.shape_cast %802 : vector<2x32xf32> to vector<1x2x32xf32>
    tpu.vector_store %arg12[%c1_341, %c0_342, %c0_343], %829 {strides = array<i32>} : memref<4x2x32xf32, #tpu.memory_space<vmem>>, vector<1x2x32xf32>,
    %cst_344 = arith.constant dense<0.000000e+00> : vector<2x160xf32>
    %830 = tpu.matmul %823, %715, %cst_344 {dimension_numbers = #tpu.dot_dimension_numbers<[1], [0], [0], [1], [0, 0, 1, 1], [], []>} : vector<2x32xf32>, vector<32x160xf32>, vector<2x160xf32> -> vector<2x160xf32>
    %831 = vector.extract_strided_slice %830 {offsets = [0, 128], sizes = [2, 32], strides = [1, 1]} : vector<2x160xf32> to vector<2x32xf32>
    %832 = vector.shape_cast %831 : vector<2x32xf32> to vector<2x1x32xf32>
    %833 = vector.broadcast %832 : vector<2x1x32xf32> to vector<2x8x32xf32>
    %834 = arith.addf %725, %833 : vector<2x8x32xf32>
    %835 = math.tanh %834 : vector<2x8x32xf32>
    %836 = vector.broadcast %718 : vector<1x1x32xf32> to vector<2x8x32xf32>
    %837 = arith.mulf %835, %836 : vector<2x8x32xf32>
    %cst_345 = arith.constant dense<0.000000e+00> : vector<2x8xf32>
    %838 = vector.multi_reduction <add>, %837, %cst_345 [2] : vector<2x8x32xf32> to vector<2x8xf32>
    %cst_346 = arith.constant dense<0xFF800000> : vector<2xf32>
    %839 = vector.multi_reduction <maximumf>, %838, %cst_346 [1] : vector<2x8xf32> to vector<2xf32>
    %840 = vector.shape_cast %839 : vector<2xf32> to vector<2x1xf32>
    %841 = vector.broadcast %840 : vector<2x1xf32> to vector<2x8xf32>
    %842 = arith.subf %838, %841 : vector<2x8xf32>
    %843 = math.exp %842 : vector<2x8xf32>
    %cst_347 = arith.constant dense<0.000000e+00> : vector<2xf32>
    %844 = vector.multi_reduction <add>, %843, %cst_347 [1] : vector<2x8xf32> to vector<2xf32>
    %845 = vector.shape_cast %844 : vector<2xf32> to vector<2x1xf32>
    %846 = vector.broadcast %845 : vector<2x1xf32> to vector<2x8xf32>
    %847 = arith.divf %843, %846 : vector<2x8xf32>
    %848 = vector.shape_cast %847 : vector<2x8xf32> to vector<2x8x1xf32>
    %849 = vector.broadcast %848 : vector<2x8x1xf32> to vector<2x8x32xf32>
    %850 = arith.mulf %849, %423 : vector<2x8x32xf32>
    %cst_348 = arith.constant dense<0.000000e+00> : vector<2x32xf32>
    %851 = vector.multi_reduction <add>, %850, %cst_348 [1] : vector<2x8x32xf32> to vector<2x32xf32>
    %c2_349 = arith.constant 2 : index
    %c0_350 = arith.constant 0 : index
    %c0_351 = arith.constant 0 : index
    %852 = vector.load %arg8[%c2_349, %c0_350, %c0_351] : memref<4x2x128xf32, #tpu.memory_space<vmem>>, vector<1x2x128xf32>
    %853 = vector.shape_cast %852 : vector<1x2x128xf32> to vector<2x128xf32>
    %854 = vector.extract_strided_slice %830 {offsets = [0, 0], sizes = [2, 128], strides = [1, 1]} : vector<2x160xf32> to vector<2x128xf32>
    %855 = arith.addf %853, %854 : vector<2x128xf32>
    %cst_352 = arith.constant dense<0.000000e+00> : vector<2x128xf32>
    %856 = tpu.matmul %851, %720, %cst_352 {dimension_numbers = #tpu.dot_dimension_numbers<[1], [0], [0], [1], [0, 0, 1, 1], [], []>} : vector<2x32xf32>, vector<32x128xf32>, vector<2x128xf32> -> vector<2x128xf32>
    %857 = arith.addf %855, %856 : vector<2x128xf32>
    %858 = arith.negf %857 : vector<2x128xf32>
    %859 = math.exp %858 : vector<2x128xf32>
    %cst_353 = arith.constant 1.000000e+00 : f32
    %860 = vector.broadcast %cst_353 : f32 to vector<2x128xf32>
    %861 = arith.addf %860, %859 : vector<2x128xf32>
    %862 = arith.divf %860, %861 : vector<2x128xf32>
    %863 = vector.extract_strided_slice %857 {offsets = [0, 64], sizes = [2, 32], strides = [1, 1]} : vector<2x128xf32> to vector<2x32xf32>
    %864 = math.tanh %863 : vector<2x32xf32>
    %865 = vector.extract_strided_slice %862 {offsets = [0, 32], sizes = [2, 32], strides = [1, 1]} : vector<2x128xf32> to vector<2x32xf32>
    %866 = arith.mulf %865, %820 : vector<2x32xf32>
    %867 = vector.extract_strided_slice %862 {offsets = [0, 0], sizes = [2, 32], strides = [1, 1]} : vector<2x128xf32> to vector<2x32xf32>
    %868 = arith.mulf %867, %864 : vector<2x32xf32>
    %869 = arith.addf %866, %868 : vector<2x32xf32>
    %870 = vector.extract_strided_slice %862 {offsets = [0, 96], sizes = [2, 32], strides = [1, 1]} : vector<2x128xf32> to vector<2x32xf32>
    %871 = math.tanh %869 : vector<2x32xf32>
    %872 = arith.mulf %870, %871 : vector<2x32xf32>
    %c2_354 = arith.constant 2 : index
    %c0_355 = arith.constant 0 : index
    %c0_356 = arith.constant 0 : index
    %873 = vector.load %arg11[%c2_354, %c0_355, %c0_356] : memref<4x2x32xf32, #tpu.memory_space<vmem>>, vector<1x2x32xf32>
    %874 = vector.shape_cast %873 : vector<1x2x32xf32> to vector<2x32xf32>
    %875 = vector.shape_cast %872 : vector<2x32xf32> to vector<1x2x32xf32>
    tpu.vector_store %arg11[%c2_354, %c0_355, %c0_356], %875 {strides = array<i32>} : memref<4x2x32xf32, #tpu.memory_space<vmem>>, vector<1x2x32xf32>,
    %c2_357 = arith.constant 2 : index
    %c0_358 = arith.constant 0 : index
    %c0_359 = arith.constant 0 : index
    %876 = vector.load %arg12[%c2_357, %c0_358, %c0_359] : memref<4x2x32xf32, #tpu.memory_space<vmem>>, vector<1x2x32xf32>
    %877 = vector.shape_cast %876 : vector<1x2x32xf32> to vector<2x32xf32>
    %878 = vector.shape_cast %851 : vector<2x32xf32> to vector<1x2x32xf32>
    tpu.vector_store %arg12[%c2_357, %c0_358, %c0_359], %878 {strides = array<i32>} : memref<4x2x32xf32, #tpu.memory_space<vmem>>, vector<1x2x32xf32>,
    %cst_360 = arith.constant dense<0.000000e+00> : vector<2x160xf32>
    %879 = tpu.matmul %872, %715, %cst_360 {dimension_numbers = #tpu.dot_dimension_numbers<[1], [0], [0], [1], [0, 0, 1, 1], [], []>} : vector<2x32xf32>, vector<32x160xf32>, vector<2x160xf32> -> vector<2x160xf32>
    %880 = vector.extract_strided_slice %879 {offsets = [0, 128], sizes = [2, 32], strides = [1, 1]} : vector<2x160xf32> to vector<2x32xf32>
    %881 = vector.shape_cast %880 : vector<2x32xf32> to vector<2x1x32xf32>
    %882 = vector.broadcast %881 : vector<2x1x32xf32> to vector<2x8x32xf32>
    %883 = arith.addf %725, %882 : vector<2x8x32xf32>
    %884 = math.tanh %883 : vector<2x8x32xf32>
    %885 = vector.broadcast %718 : vector<1x1x32xf32> to vector<2x8x32xf32>
    %886 = arith.mulf %884, %885 : vector<2x8x32xf32>
    %cst_361 = arith.constant dense<0.000000e+00> : vector<2x8xf32>
    %887 = vector.multi_reduction <add>, %886, %cst_361 [2] : vector<2x8x32xf32> to vector<2x8xf32>
    %cst_362 = arith.constant dense<0xFF800000> : vector<2xf32>
    %888 = vector.multi_reduction <maximumf>, %887, %cst_362 [1] : vector<2x8xf32> to vector<2xf32>
    %889 = vector.shape_cast %888 : vector<2xf32> to vector<2x1xf32>
    %890 = vector.broadcast %889 : vector<2x1xf32> to vector<2x8xf32>
    %891 = arith.subf %887, %890 : vector<2x8xf32>
    %892 = math.exp %891 : vector<2x8xf32>
    %cst_363 = arith.constant dense<0.000000e+00> : vector<2xf32>
    %893 = vector.multi_reduction <add>, %892, %cst_363 [1] : vector<2x8xf32> to vector<2xf32>
    %894 = vector.shape_cast %893 : vector<2xf32> to vector<2x1xf32>
    %895 = vector.broadcast %894 : vector<2x1xf32> to vector<2x8xf32>
    %896 = arith.divf %892, %895 : vector<2x8xf32>
    %897 = vector.shape_cast %896 : vector<2x8xf32> to vector<2x8x1xf32>
    %898 = vector.broadcast %897 : vector<2x8x1xf32> to vector<2x8x32xf32>
    %899 = arith.mulf %898, %423 : vector<2x8x32xf32>
    %cst_364 = arith.constant dense<0.000000e+00> : vector<2x32xf32>
    %900 = vector.multi_reduction <add>, %899, %cst_364 [1] : vector<2x8x32xf32> to vector<2x32xf32>
    %c3_365 = arith.constant 3 : index
    %c0_366 = arith.constant 0 : index
    %c0_367 = arith.constant 0 : index
    %901 = vector.load %arg8[%c3_365, %c0_366, %c0_367] : memref<4x2x128xf32, #tpu.memory_space<vmem>>, vector<1x2x128xf32>
    %902 = vector.shape_cast %901 : vector<1x2x128xf32> to vector<2x128xf32>
    %903 = vector.extract_strided_slice %879 {offsets = [0, 0], sizes = [2, 128], strides = [1, 1]} : vector<2x160xf32> to vector<2x128xf32>
    %904 = arith.addf %902, %903 : vector<2x128xf32>
    %cst_368 = arith.constant dense<0.000000e+00> : vector<2x128xf32>
    %905 = tpu.matmul %900, %720, %cst_368 {dimension_numbers = #tpu.dot_dimension_numbers<[1], [0], [0], [1], [0, 0, 1, 1], [], []>} : vector<2x32xf32>, vector<32x128xf32>, vector<2x128xf32> -> vector<2x128xf32>
    %906 = arith.addf %904, %905 : vector<2x128xf32>
    %907 = arith.negf %906 : vector<2x128xf32>
    %908 = math.exp %907 : vector<2x128xf32>
    %cst_369 = arith.constant 1.000000e+00 : f32
    %909 = vector.broadcast %cst_369 : f32 to vector<2x128xf32>
    %910 = arith.addf %909, %908 : vector<2x128xf32>
    %911 = arith.divf %909, %910 : vector<2x128xf32>
    %912 = vector.extract_strided_slice %906 {offsets = [0, 64], sizes = [2, 32], strides = [1, 1]} : vector<2x128xf32> to vector<2x32xf32>
    %913 = math.tanh %912 : vector<2x32xf32>
    %914 = vector.extract_strided_slice %911 {offsets = [0, 32], sizes = [2, 32], strides = [1, 1]} : vector<2x128xf32> to vector<2x32xf32>
    %915 = arith.mulf %914, %869 : vector<2x32xf32>
    %916 = vector.extract_strided_slice %911 {offsets = [0, 0], sizes = [2, 32], strides = [1, 1]} : vector<2x128xf32> to vector<2x32xf32>
    %917 = arith.mulf %916, %913 : vector<2x32xf32>
    %918 = arith.addf %915, %917 : vector<2x32xf32>
    %919 = vector.extract_strided_slice %911 {offsets = [0, 96], sizes = [2, 32], strides = [1, 1]} : vector<2x128xf32> to vector<2x32xf32>
    %920 = math.tanh %918 : vector<2x32xf32>
    %921 = arith.mulf %919, %920 : vector<2x32xf32>
    %c3_370 = arith.constant 3 : index
    %c0_371 = arith.constant 0 : index
    %c0_372 = arith.constant 0 : index
    %922 = vector.load %arg11[%c3_370, %c0_371, %c0_372] : memref<4x2x32xf32, #tpu.memory_space<vmem>>, vector<1x2x32xf32>
    %923 = vector.shape_cast %922 : vector<1x2x32xf32> to vector<2x32xf32>
    %924 = vector.shape_cast %921 : vector<2x32xf32> to vector<1x2x32xf32>
    tpu.vector_store %arg11[%c3_370, %c0_371, %c0_372], %924 {strides = array<i32>} : memref<4x2x32xf32, #tpu.memory_space<vmem>>, vector<1x2x32xf32>,
    %c3_373 = arith.constant 3 : index
    %c0_374 = arith.constant 0 : index
    %c0_375 = arith.constant 0 : index
    %925 = vector.load %arg12[%c3_373, %c0_374, %c0_375] : memref<4x2x32xf32, #tpu.memory_space<vmem>>, vector<1x2x32xf32>
    %926 = vector.shape_cast %925 : vector<1x2x32xf32> to vector<2x32xf32>
    %927 = vector.shape_cast %900 : vector<2x32xf32> to vector<1x2x32xf32>
    tpu.vector_store %arg12[%c3_373, %c0_374, %c0_375], %927 {strides = array<i32>} : memref<4x2x32xf32, #tpu.memory_space<vmem>>, vector<1x2x32xf32>,
    %c0_376 = arith.constant 0 : index
    %c0_377 = arith.constant 0 : index
    %c0_378 = arith.constant 0 : index
    %928 = vector.load %arg11[%c0_376, %c0_377, %c0_378] : memref<4x2x32xf32, #tpu.memory_space<vmem>>, vector<4x2x32xf32>
    %929 = vector.shape_cast %928 : vector<4x2x32xf32> to vector<8x32xf32>
    %c0_379 = arith.constant 0 : index
    %c0_380 = arith.constant 0 : index
    %c0_381 = arith.constant 0 : index
    %930 = vector.load %arg12[%c0_379, %c0_380, %c0_381] : memref<4x2x32xf32, #tpu.memory_space<vmem>>, vector<4x2x32xf32>
    %931 = vector.shape_cast %930 : vector<4x2x32xf32> to vector<8x32xf32>
    %932 = tpu.concatenate %929, %931, %722 in 1 : vector<8x32xf32>, vector<8x32xf32>, vector<8x8xf32> -> vector<8x72xf32>
    %c576 = arith.constant 576 : index
    %c0_382 = arith.constant 0 : index
    %933 = vector.load %arg0[%c576, %c0_382] : memref<656x256xf32, #tpu.memory_space<vmem>>, vector<72x128xf32>
    %cst_383 = arith.constant dense<0.000000e+00> : vector<8x128xf32>
    %934 = tpu.matmul %932, %933, %cst_383 {dimension_numbers = #tpu.dot_dimension_numbers<[1], [0], [0], [1], [0, 0, 1, 1], [], []>} : vector<8x72xf32>, vector<72x128xf32>, vector<8x128xf32> -> vector<8x128xf32>
    %c648 = arith.constant 648 : index
    %c0_384 = arith.constant 0 : index
    %935 = vector.load %arg0[%c648, %c0_384] : memref<656x256xf32, #tpu.memory_space<vmem>>, vector<1x128xf32>
    %936 = vector.broadcast %935 : vector<1x128xf32> to vector<8x128xf32>
    %937 = arith.addf %934, %936 : vector<8x128xf32>
    %c0_385 = arith.constant 0 : index
    %c0_386 = arith.constant 0 : index
    %938 = vector.load %arg2[%c0_385, %c0_386] : memref<8x128xf32, #tpu.memory_space<vmem>>, vector<8x128xf32>
    tpu.vector_store %arg2[%c0_385, %c0_386], %937 {strides = array<i32>} : memref<8x128xf32, #tpu.memory_space<vmem>>, vector<8x128xf32>,
    return
  }
}

</mosaic_0001>

<bundles_post_ra>
// kernel: med_forward.1
= control target key start
LH: loop header
LB: loop body
LE: loop exit
PB: predicated region body
PF: predicated region fallthrough
CT: control target
= control target key end

     0   :  { %vm18_vm0 = vcmask 64512   ;;  %v9410_v3 = vmov 0.0|0.0   ;;  %vm9411_vm1 = vmmov 0   ;;  %v9412_v4 = vmov 0.0   ;;  %s9414_s25 = smov 64   ;;  %s9415_s26 = smov 32   ;;  %s10901_s0 = inlined_call_operand.vmem [shape: f32[656,256], index: 0, kind: input, shape index: {}]   ;;  %s10902_s1 = inlined_call_operand.vmem [shape: f32[8,128], index: 1, kind: output, shape index: {0}]   ;;  %s10903_s2 = inlined_call_operand.vmem [shape: f32[8,128], index: 2, kind: output, shape index: {1}]  }
   0x1   :  { %v10_v0 = vld [vmem:[%s10901_s0 + $0x60] sm:$0xff]  ;;  %v17_v2 = vld [vmem:[%s10901_s0 + $0x10] sm:$0xff]  ;;  %8638 = vmatprep.subr.bf16.mxu1 %v9410_v3  ;;  %8127 = vmatprep.mubr.msk.f32.mxu1 %vm9411_vm1, %v9412_v4  ;;  %v9413_v11 = vmov 1983009808   ;;  %v106_v13 = vlaneseq  ;;  %vm256_vm2 = vcmask 254976   ;;  %vm153_vm3 = vcmask 261120  }
   0x2   :  { %v16_v1 = vld [vmem:[%s10901_s0] sm:$0xff]  ;;  %8114 = vmatprep.subr.mxu0 %v10_v0  ;;  %v11_v5 = vld [vmem:[%s10901_s0 + $0x70] sm:$0xff]  ;;  %v104_v12 = vunpack.c.l.s4 %v9413_v11  ;;  %vm2234_vm4 = vcmask 1040384   ;;  %vm2237_vm5 = vcmask 1041408   ;;  %vm2240_vm6 = vcmask 1042432   ;;  %s9417_s21 = smov 120  }
   0x3   :  { %8116 = vmatprep.mubr.msk.f32.mxu0 %vm18_vm0, %v16_v1  ;;  %v12_v6 = vld [vmem:[%s10901_s0 + $0x80] sm:$0xff]  ;;  %v13_v7 = vld [vmem:[%s10901_s0 + $0x90] sm:$0xff]  ;;  %8115 = vmatpush3.msra.mxu0 %v10_v0  ;;  %v9486_v15 = vshrl.u32 %v106_v13, 7  ;;  %vm2243_vm7 = vcmask 1043456   ;;  %vm2246_vm8 = vcmask 1044480   ;;  %vm2249_vm9 = vcmask 1045504  }
   0x4   :  { %v9459_v8 = vpack.c.bf16 %v12_v6, %v11_v5  ;;  %v14_v9 = vld [vmem:[%s10901_s0 + $0xa0] sm:$0xff]  ;;  %8117 = vmatmul.mubr.msk.f32.vlgmr.msra.gmra.mrb[0].mxu0 %vm18_vm0, %v17_v2  ;;  %8656 = vmatprep.subr.bf16.mxu0 %v9410_v3  ;;  %v105_v14 = vunpack.c.0.s8 %v104_v12  ;;  %v15_v16 = vld [vmem:[%s10901_s0 + $0xb0] ss:$0 sm:$0xff]  ;;  %vm2252_vm10 = vcmask 1046528   ;;  %vm2922_vm11 = vcmask 31744   ;;  %s9418_s22 = smov 124  }
   0x5   :  { %v9467_v10 = vpack.c.bf16 %v14_v9, %v13_v7  ;;  %8160 = vmatprep.mubr.msk.f32.mxu0 %vm9411_vm1, %v9412_v4  ;;  %vm9876_vm12 = vmpackc.low %vm2922_vm11, %vm2922_vm11  ;;  %s9419_s23 = smov 116   ;;  %s9420_s10 = smov 4   ;;  %vm4726_vm13 = vcmask 1041409   ;;  %vm4729_vm14 = vcmask 58368   ;;  %vm5951_vm15 = vcmask 523264  }
   0x6   :  { %8640 = vmatpush3.bf16.msra.mxu1 %v9459_v8  ;;  %8658 = vmatpush3.bf16.msra.mxu0 %v9459_v8  ;;  %v9492_v17 = vsub.s32 %v105_v14, %v9486_v15 }
   0x7   :  { %8641 = vmatprep.subr.bf16.mxu1 %v9410_v3  ;;  %8659 = vmatprep.subr.bf16.mxu0 %v9410_v3 }
   0xa   :  { %8643 = vmatpush3.bf16.msra.mxu1 %v9467_v10  ;;  %8661 = vmatpush3.bf16.msra.mxu0 %v9467_v10 }
   0xb   :  { %8644 = vmatprep.subr.bf16.mxu1 %v9410_v3  ;;  %8668 = vmatprep.subr.bf16.mxu0 %v9410_v3 }
   0xd   :  { %8128 = vmatmul.mubr.f32.vlgmr.msra.gmra.mrb[0].mxu1 %v9412_v4 }
   0xe   :  { %8646 = vmatpush3.bf16.msra.mxu1 %v9459_v8  ;;  %8138 = vmatprep.mubr.msk.f32.mxu1 %vm9411_vm1, %v9412_v4 }
   0xf   :  { %8647 = vmatprep.subr.bf16.mxu1 %v9410_v3 }
  0x12   :  { %8649 = vmatpush3.bf16.msra.mxu1 %v9467_v10 }
  0x13   :  { %8650 = vmatprep.subr.bf16.mxu1 %v9410_v3 }
  0xd7   :  { %v8118_v18 = vpop.f32.mrb[0].mxu0 }
  0xd8   :  { %v97_v19 = vadd.f32 %v8118_v18, %v15_v16  ;;  %v91_v20 = vpop.f32.mrb[1].mxu0 }
  0xd9   :  { %v92_v21 = vadd.f32 %v91_v20, %v15_v16 }
  0xda   :  { %v119_v22 = vcombine.high %v97_v19, %v97_v19  ;;  %v126_v23 = vrot.slane %v97_v19, %v9492_v17  ;;  %7687 = vst.sshfl [vmem:[#allocation2 + $0x8] sm:$0x3 pattern:$0x76325410] %v97_v19 }
  0xdb   :  { %v102_v24 = vcombine.high %v92_v21, %v92_v21  ;;  %v109_v25 = vrot.slane %v92_v21, %v9492_v17  ;;  %7685 = vst.sshfl [vmem:[#allocation2] sm:$0x3 pattern:$0x76325410] %v92_v21 }
  0xdc   :  { %v133_v26 = vrot.slane %v119_v22, %v9492_v17  ;;  %v134_v27 = vcombine.high %v126_v23, %v126_v23  ;;  %7688 = vst.sshfl [vmem:[#allocation2 + $0xc] sm:$0x3 pattern:$0x76325410] %v119_v22 }
  0xdd   :  { %v116_v28 = vrot.slane %v102_v24, %v9492_v17  ;;  %v117_v29 = vcombine.high %v109_v25, %v109_v25  ;;  %7686 = vst.sshfl [vmem:[#allocation2 + $0x4] sm:$0x3 pattern:$0x76325410] %v102_v24 }
  0xde   :  { %v135_v30 = vcombine.high %v133_v26, %v133_v26  ;;  %149 = vst [vmem:[#allocation2 + $0xa] sm:$0x3] %v134_v27 }
  0xdf   :  { %v118_v31 = vcombine.high %v116_v28, %v116_v28  ;;  %145 = vst [vmem:[#allocation2 + $0x2] sm:$0x3] %v117_v29 }
  0xe0   :  { %v223_v32 = vpop.f32.mrb[0].mxu1  ;;  %151 = vst [vmem:[#allocation2 + $0xe] sm:$0x3] %v135_v30 }
  0xe1   :  { %v8129_v33 = vpop.f32.mrb[1].mxu1  ;;  %147 = vst [vmem:[#allocation2 + $0x6] sm:$0x3] %v118_v31 }
  0xe2   :  { %v152_v34 = vld [vmem:[#allocation2] sm:$0x3] }
  0xe3   :  { %v227_v35 = vadd.f32 %v223_v32, %v152_v34 }
  0xe4   :  { %v364_v6 = vld [vmem:[#allocation2 + $0x4] sm:$0x3] }
  0xe5   :  { %9052 = vtanh.f32 %v227_v35  ;;  %v7689_v37 = vmul.f32 -1.442695, %v227_v35 }
  0xe6   :  { %v259_v50 = vld [vmem:[#allocation2 + $0x2] sm:$0x3] }
  0xe7   :  { %9054 = vpow2.f32 %v7689_v37 }
  0xe8   :  { %v469_v29 = vld [vmem:[#allocation2 + $0x6] sm:$0x3] }
  0xef   :  { %v9053_v36 = vpop.eup %9052 }
  0xf0   :  { %237 = vrot.lane.b32.xlu0 %v9053_v36, %s9414_s25 }
  0xf1   :  { %v9055_v38 = vpop.eup %9054 }
  0xf2   :  { %v231_v39 = vadd.f32 1.0, %v9055_v38 }
  0xf4   :  { %9056 = vrcp.f32 %v231_v39 }
  0xfe   :  { %v9057_v40 = vpop.eup %9056 }
  0xff   :  { %v235_v43 = vmul.f32 0.0, %v9057_v40 }
 0x162   :  { %v238_v41 = vpop.permute.xlu0 %237 }
 0x163   :  { %v240_v42 = vmul.f32 %v9057_v40, %v238_v41 }
 0x165   :  { %242 = vrot.lane.b32.xlu0 %v240_v42, %s9415_s26 }
 0x1d7   :  { %v243_v44 = vpop.permute.xlu0 %242 }
 0x1d8   :  { %v245_v45 = vadd.f32 %v243_v44, %v235_v43 }
 0x1da   :  { %9058 = vtanh.f32 %v245_v45 }
 0x1e4   :  { %v9059_v46 = vpop.eup %9058 }
 0x1e5   :  { %248 = vrot.lane.b32.xlu1 %v9059_v46, %s9414_s25 }
 0x257   :  { %v249_v47 = vpop.permute.xlu1 %248 }
 0x258   :  { %v251_v48 = vmul.f32 %v9057_v40, %v249_v47  ;;  %v574_v47 = vld [vmem:[#allocation2 + $0x8] sm:$0x3] }
 0x25a   :  { %253 = vrot.lane.b32.xlu1 %v251_v48, %s9415_s26 }
 0x2cc   :  { %v254_v49 = vpop.permute.xlu1 %253 }
 0x2cd   :  { %257 = vst.msk [vmem:[#allocation4] sm:$0x3] %vm256_vm2, %v254_v49  ;;  %8139 = vmatmul.mubr.msk.f32.vlgmr.msra.gmra.mrb[2].mxu1 %vm153_vm3, %v254_v49 }
 0x2ce   :  { %8652 = vmatpush3.bf16.msra.mxu1 %v9459_v8  ;;  %8149 = vmatprep.mubr.msk.f32.mxu1 %vm9411_vm1, %v9412_v4 }
 0x2cf   :  { %8653 = vmatprep.subr.bf16.mxu1 %v9410_v3 }
 0x2d2   :  { %8655 = vmatpush3.bf16.msra.mxu1 %v9467_v10 }
 0x2d3   :  { %8662 = vmatprep.subr.bf16.mxu1 %v9410_v3 }
 0x3a0   :  { %v328_v51 = vpop.f32.mrb[2].mxu1 }
 0x3a1   :  { %v332_v52 = vadd.f32 %v328_v51, %v259_v50  ;;  %v8140_v53 = vpop.f32.mrb[3].mxu1 }
 0x3a3   :  { %9060 = vtanh.f32 %v332_v52  ;;  %v7691_v55 = vmul.f32 -1.442695, %v332_v52 }
 0x3a5   :  { %9062 = vpow2.f32 %v7691_v55 }
 0x3ad   :  { %v9061_v54 = vpop.eup %9060 }
 0x3ae   :  { %342 = vrot.lane.b32.xlu0 %v9061_v54, %s9414_s25 }
 0x3af   :  { %v9063_v56 = vpop.eup %9062 }
 0x3b0   :  { %v336_v57 = vadd.f32 1.0, %v9063_v56 }
 0x3b2   :  { %9064 = vrcp.f32 %v336_v57 }
 0x3bc   :  { %v9065_v58 = vpop.eup %9064 }
 0x3bd   :  { %v340_v61 = vmul.f32 %v9065_v58, %v245_v45 }
 0x420   :  { %v343_v59 = vpop.permute.xlu0 %342 }
 0x421   :  { %v345_v60 = vmul.f32 %v9065_v58, %v343_v59 }
 0x423   :  { %347 = vrot.lane.b32.xlu1 %v345_v60, %s9415_s26 }
 0x495   :  { %v348_v62 = vpop.permute.xlu1 %347 }
 0x496   :  { %v350_v63 = vadd.f32 %v348_v62, %v340_v61 }
 0x498   :  { %9066 = vtanh.f32 %v350_v63 }
 0x4a2   :  { %v9067_v0 = vpop.eup %9066 }
 0x4a3   :  { %353 = vrot.lane.b32.xlu0 %v9067_v0, %s9414_s25 }
 0x515   :  { %v354_v1 = vpop.permute.xlu0 %353 }
 0x516   :  { %v356_v2 = vmul.f32 %v9065_v58, %v354_v1  ;;  %v679_v1 = vld [vmem:[#allocation2 + $0xa] sm:$0x3] }
 0x518   :  { %358 = vrot.lane.b32.xlu1 %v356_v2, %s9415_s26 }
 0x58a   :  { %v359_v5 = vpop.permute.xlu1 %358 }
 0x58b   :  { %362 = vst.msk [vmem:[#allocation4 + $0x2] sm:$0x3] %vm256_vm2, %v359_v5  ;;  %8150 = vmatmul.mubr.msk.f32.vlgmr.msra.gmra.mrb[4].mxu1 %vm153_vm3, %v359_v5 }
 0x58c   :  { %8664 = vmatpush3.bf16.msra.mxu1 %v9459_v8  ;;  %8171 = vmatprep.mubr.msk.f32.mxu1 %vm9411_vm1, %v9412_v4 }
 0x58d   :  { %8665 = vmatprep.subr.bf16.mxu1 %v9410_v3 }
 0x590   :  { %8667 = vmatpush3.bf16.msra.mxu1 %v9467_v10 }
 0x591   :  { %8674 = vmatprep.subr.bf16.mxu1 %v9410_v3 }
 0x65e   :  { %v433_v7 = vpop.f32.mrb[4].mxu1 }
 0x65f   :  { %v437_v9 = vadd.f32 %v433_v7, %v364_v6  ;;  %v8151_v11 = vpop.f32.mrb[5].mxu1 }
 0x661   :  { %9068 = vtanh.f32 %v437_v9  ;;  %v7693_v14 = vmul.f32 -1.442695, %v437_v9 }
 0x663   :  { %9070 = vpow2.f32 %v7693_v14 }
 0x66b   :  { %v9069_v12 = vpop.eup %9068 }
 0x66c   :  { %447 = vrot.lane.b32.xlu0 %v9069_v12, %s9414_s25 }
 0x66d   :  { %v9071_v16 = vpop.eup %9070 }
 0x66e   :  { %v441_v18 = vadd.f32 1.0, %v9071_v16 }
 0x670   :  { %9072 = vrcp.f32 %v441_v18 }
 0x67a   :  { %v9073_v19 = vpop.eup %9072 }
 0x67b   :  { %v445_v22 = vmul.f32 %v9073_v19, %v350_v63 }
 0x6de   :  { %v448_v20 = vpop.permute.xlu0 %447 }
 0x6df   :  { %v450_v21 = vmul.f32 %v9073_v19, %v448_v20 }
 0x6e1   :  { %452 = vrot.lane.b32.xlu1 %v450_v21, %s9415_s26 }
 0x753   :  { %v453_v23 = vpop.permute.xlu1 %452 }
 0x754   :  { %v455_v24 = vadd.f32 %v453_v23, %v445_v22 }
 0x756   :  { %9074 = vtanh.f32 %v455_v24 }
 0x760   :  { %v9075_v25 = vpop.eup %9074 }
 0x761   :  { %458 = vrot.lane.b32.xlu0 %v9075_v25, %s9414_s25 }
 0x7d3   :  { %v459_v26 = vpop.permute.xlu0 %458 }
 0x7d4   :  { %v461_v27 = vmul.f32 %v9073_v19, %v459_v26 }
 0x7d6   :  { %463 = vrot.lane.b32.xlu1 %v461_v27, %s9415_s26 }
 0x848   :  { %v464_v28 = vpop.permute.xlu1 %463 }
 0x849   :  { %467 = vst.msk [vmem:[#allocation4 + $0x4] sm:$0x3] %vm256_vm2, %v464_v28  ;;  %8161 = vmatmul.mubr.msk.f32.vlgmr.msra.gmra.mrb[2].mxu0 %vm153_vm3, %v464_v28 }
 0x84a   :  { %8670 = vmatpush3.bf16.msra.mxu0 %v9459_v8  ;;  %8182 = vmatprep.mubr.msk.f32.mxu0 %vm9411_vm1, %v9412_v4 }
 0x84b   :  { %8671 = vmatprep.subr.bf16.mxu0 %v9410_v3 }
 0x84e   :  { %8673 = vmatpush3.bf16.msra.mxu0 %v9467_v10 }
 0x84f   :  { %8680 = vmatprep.subr.bf16.mxu0 %v9410_v3 }
 0x91c   :  { %v538_v30 = vpop.f32.mrb[2].mxu0 }
 0x91d   :  { %v542_v31 = vadd.f32 %v538_v30, %v469_v29  ;;  %v8162_v32 = vpop.f32.mrb[3].mxu0 }
 0x91f   :  { %9076 = vtanh.f32 %v542_v31  ;;  %v7695_v34 = vmul.f32 -1.442695, %v542_v31 }
 0x921   :  { %9078 = vpow2.f32 %v7695_v34 }
 0x929   :  { %v9077_v33 = vpop.eup %9076 }
 0x92a   :  { %552 = vrot.lane.b32.xlu0 %v9077_v33, %s9414_s25 }
 0x92b   :  { %v9079_v35 = vpop.eup %9078 }
 0x92c   :  { %v546_v36 = vadd.f32 1.0, %v9079_v35 }
 0x92e   :  { %9080 = vrcp.f32 %v546_v36 }
 0x938   :  { %v9081_v37 = vpop.eup %9080 }
 0x939   :  { %v550_v40 = vmul.f32 %v9081_v37, %v455_v24  ;;  %v784_v24 = vld [vmem:[#allocation2 + $0xc] sm:$0x3] }
 0x99c   :  { %v553_v38 = vpop.permute.xlu0 %552 }
 0x99d   :  { %v555_v39 = vmul.f32 %v9081_v37, %v553_v38  ;;  %v993_v38 = vld [vmem:[%s10901_s0 + $0xc0] sm:$0xff] }
 0x99f   :  { %557 = vrot.lane.b32.xlu1 %v555_v39, %s9415_s26  ;;  %v999_v39 = vld [vmem:[%s10901_s0 + $0x20] sm:$0xff] }
 0xa11   :  { %v558_v41 = vpop.permute.xlu1 %557 }
 0xa12   :  { %v560_v42 = vadd.f32 %v558_v41, %v550_v40  ;;  %v1000_v40 = vld [vmem:[%s10901_s0 + $0x30] sm:$0xff] }
 0xa14   :  { %9082 = vtanh.f32 %v560_v42 }
 0xa1e   :  { %v9083_v43 = vpop.eup %9082 }
 0xa1f   :  { %563 = vrot.lane.b32.xlu0 %v9083_v43, %s9414_s25  ;;  %v995_v43 = vld [vmem:[%s10901_s0 + $0xe0] sm:$0xff] }
 0xa91   :  { %v564_v44 = vpop.permute.xlu0 %563 }
 0xa92   :  { %v566_v45 = vmul.f32 %v9081_v37, %v564_v44 }
 0xa94   :  { %568 = vrot.lane.b32.xlu1 %v566_v45, %s9415_s26  ;;  %v996_v45 = vld [vmem:[%s10901_s0 + $0xf0] sm:$0xff] }
 0xb06   :  { %v569_v46 = vpop.permute.xlu1 %568 }
 0xb07   :  { %572 = vst.msk [vmem:[#allocation4 + $0x6] sm:$0x3] %vm256_vm2, %v569_v46  ;;  %8172 = vmatmul.mubr.msk.f32.vlgmr.msra.gmra.mrb[6].mxu1 %vm153_vm3, %v569_v46  ;;  %v997_v46 = vld [vmem:[%s10901_s0 + $0x100] sm:$0xff] }
 0xb08   :  { %8676 = vmatpush3.bf16.msra.mxu1 %v9459_v8  ;;  %8193 = vmatprep.mubr.msk.f32.mxu1 %vm9411_vm1, %v9412_v4 }
 0xb09   :  { %8677 = vmatprep.subr.bf16.mxu1 %v9410_v3 }
 0xb0c   :  { %8679 = vmatpush3.bf16.msra.mxu1 %v9467_v10 }
 0xb0d   :  { %8207 = vmatprep.subr.mxu1 %v993_v38 }
 0xbda   :  { %v643_v48 = vpop.f32.mrb[6].mxu1 }
 0xbdb   :  { %v647_v49 = vadd.f32 %v643_v48, %v574_v47  ;;  %v8173_v50 = vpop.f32.mrb[7].mxu1  ;;  %v9599_v47 = vpack.c.bf16 %v997_v46, %v996_v45 }
 0xbdc   :  { %v998_v50 = vld [vmem:[%s10901_s0 + $0x110] ss:$0 sm:$0xff] }
 0xbdd   :  { %9084 = vtanh.f32 %v647_v49  ;;  %v7697_v52 = vmul.f32 -1.442695, %v647_v49 }
 0xbdf   :  { %9086 = vpow2.f32 %v7697_v52 }
 0xbe7   :  { %v9085_v51 = vpop.eup %9084 }
 0xbe8   :  { %657 = vrot.lane.b32.xlu0 %v9085_v51, %s9414_s25 }
 0xbe9   :  { %v9087_v53 = vpop.eup %9086 }
 0xbea   :  { %v651_v54 = vadd.f32 1.0, %v9087_v53 }
 0xbec   :  { %9088 = vrcp.f32 %v651_v54 }
 0xbf6   :  { %v9089_v55 = vpop.eup %9088 }
 0xbf7   :  { %v655_v58 = vmul.f32 %v9089_v55, %v560_v42  ;;  %v994_v42 = vld [vmem:[%s10901_s0 + $0xd0] sm:$0xff] }
 0xbf8   :  { %v9589_v44 = vpack.c.bf16 %v995_v43, %v994_v42 }
 0xc5a   :  { %v658_v56 = vpop.permute.xlu0 %657 }
 0xc5b   :  { %v660_v57 = vmul.f32 %v9089_v55, %v658_v56 }
 0xc5d   :  { %662 = vrot.lane.b32.xlu1 %v660_v57, %s9415_s26 }
 0xccf   :  { %v663_v59 = vpop.permute.xlu1 %662 }
 0xcd0   :  { %v665_v60 = vadd.f32 %v663_v59, %v655_v58 }
 0xcd2   :  { %9090 = vtanh.f32 %v665_v60 }
 0xcdc   :  { %v9091_v61 = vpop.eup %9090 }
 0xcdd   :  { %668 = vrot.lane.b32.xlu0 %v9091_v61, %s9414_s25 }
 0xd4f   :  { %v669_v62 = vpop.permute.xlu0 %668 }
 0xd50   :  { %v671_v63 = vmul.f32 %v9089_v55, %v669_v62 }
 0xd52   :  { %673 = vrot.lane.b32.xlu1 %v671_v63, %s9415_s26 }
 0xdc4   :  { %v674_v0 = vpop.permute.xlu1 %673 }
 0xdc5   :  { %677 = vst.msk [vmem:[#allocation4 + $0x8] sm:$0x3] %vm256_vm2, %v674_v0  ;;  %8183 = vmatmul.mubr.msk.f32.vlgmr.msra.gmra.mrb[4].mxu0 %vm153_vm3, %v674_v0 }
 0xdc6   :  { %8682 = vmatpush3.bf16.msra.mxu0 %v9459_v8  ;;  %8204 = vmatprep.mubr.msk.f32.mxu0 %vm9411_vm1, %v9412_v4 }
 0xdc7   :  { %8683 = vmatprep.subr.bf16.mxu0 %v9410_v3 }
 0xdca   :  { %8685 = vmatpush3.bf16.msra.mxu0 %v9467_v10 }
 0xdcb   :  { %8686 = vmatprep.subr.bf16.mxu0 %v9410_v3 }
 0xe98   :  { %v748_v2 = vpop.f32.mrb[4].mxu0 }
 0xe99   :  { %v752_v5 = vadd.f32 %v748_v2, %v679_v1  ;;  %v8184_v6 = vpop.f32.mrb[5].mxu0 }
 0xe9b   :  { %9092 = vtanh.f32 %v752_v5  ;;  %v7699_v9 = vmul.f32 -1.442695, %v752_v5 }
 0xe9d   :  { %9094 = vpow2.f32 %v7699_v9 }
 0xea5   :  { %v9093_v7 = vpop.eup %9092 }
 0xea6   :  { %762 = vrot.lane.b32.xlu0 %v9093_v7, %s9414_s25 }
 0xea7   :  { %v9095_v8 = vpop.eup %9094 }
 0xea8   :  { %v756_v11 = vadd.f32 1.0, %v9095_v8 }
 0xeaa   :  { %9096 = vrcp.f32 %v756_v11 }
 0xeb4   :  { %v9097_v12 = vpop.eup %9096 }
 0xeb5   :  { %v760_v10 = vmul.f32 %v9097_v12, %v665_v60 }
 0xf18   :  { %v763_v14 = vpop.permute.xlu0 %762 }
 0xf19   :  { %v765_v16 = vmul.f32 %v9097_v12, %v763_v14 }
 0xf1b   :  { %767 = vrot.lane.b32.xlu1 %v765_v16, %s9415_s26 }
 0xf8d   :  { %v768_v18 = vpop.permute.xlu1 %767 }
 0xf8e   :  { %v770_v19 = vadd.f32 %v768_v18, %v760_v10 }
 0xf90   :  { %9098 = vtanh.f32 %v770_v19 }
 0xf9a   :  { %v9099_v20 = vpop.eup %9098 }
 0xf9b   :  { %773 = vrot.lane.b32.xlu0 %v9099_v20, %s9414_s25 }
0x100d   :  { %v774_v21 = vpop.permute.xlu0 %773 }
0x100e   :  { %v776_v22 = vmul.f32 %v9097_v12, %v774_v21 }
0x1010   :  { %778 = vrot.lane.b32.xlu1 %v776_v22, %s9415_s26 }
0x1082   :  { %v779_v23 = vpop.permute.xlu1 %778 }
0x1083   :  { %782 = vst.msk [vmem:[#allocation4 + $0xa] sm:$0x3] %vm256_vm2, %v779_v23  ;;  %8194 = vmatmul.mubr.msk.f32.vlgmr.msra.gmra.mrb[8].mxu1 %vm153_vm3, %v779_v23 }
0x1084   :  { %8209 = vmatprep.mubr.msk.f32.mxu1 %vm18_vm0, %v999_v39  ;;  %8208 = vmatpush3.msra.mxu1 %v993_v38 }
0x1085   :  { %8692 = vmatprep.subr.bf16.mxu1 %v9410_v3 }
0x1087   :  { %8210 = vmatmul.mubr.msk.f32.vlgmr.msra.gmra.mrb[10].mxu1 %vm18_vm0, %v1000_v40 }
0x1088   :  { %8231 = vmatprep.mubr.msk.f32.mxu1 %vm9411_vm1, %v9412_v4  ;;  %8694 = vmatpush3.bf16.msra.mxu1 %v9589_v44 }
0x1089   :  { %8695 = vmatprep.subr.bf16.mxu1 %v9410_v3 }
0x108c   :  { %8697 = vmatpush3.bf16.msra.mxu1 %v9599_v47 }
0x108d   :  { %8704 = vmatprep.subr.bf16.mxu1 %v9410_v3 }
0x1156   :  { %v853_v25 = vpop.f32.mrb[8].mxu1 }
0x1157   :  { %v857_v26 = vadd.f32 %v853_v25, %v784_v24  ;;  %v8195_v27 = vpop.f32.mrb[9].mxu1 }
0x1159   :  { %9100 = vtanh.f32 %v857_v26  ;;  %v7701_v29 = vmul.f32 -1.442695, %v857_v26 }
0x115a   :  { %v8211_v51 = vpop.f32.mrb[10].mxu1 }
0x115b   :  { %9102 = vpow2.f32 %v7701_v29  ;;  %v1079_v52 = vadd.f32 %v8211_v51, %v998_v50  ;;  %v1073_v53 = vpop.f32.mrb[11].mxu1 }
0x115c   :  { %v1074_v54 = vadd.f32 %v1073_v53, %v998_v50 }
0x115d   :  { %v1101_v55 = vcombine.high %v1079_v52, %v1079_v52  ;;  %v1108_v56 = vrot.slane %v1079_v52, %v9492_v17  ;;  %7708 = vst.sshfl [vmem:[#allocation3 + $0x8] sm:$0x3 pattern:$0x76325410] %v1079_v52 }
0x115e   :  { %v1084_v57 = vcombine.high %v1074_v54, %v1074_v54  ;;  %v1091_v58 = vrot.slane %v1074_v54, %v9492_v17  ;;  %7706 = vst.sshfl [vmem:[#allocation3] sm:$0x3 pattern:$0x76325410] %v1074_v54 }
0x115f   :  { %v1115_v59 = vrot.slane %v1101_v55, %v9492_v17  ;;  %v1116_v60 = vcombine.high %v1108_v56, %v1108_v56  ;;  %7709 = vst.sshfl [vmem:[#allocation3 + $0xc] sm:$0x3 pattern:$0x76325410] %v1101_v55 }
0x1160   :  { %v1098_v61 = vrot.slane %v1084_v57, %v9492_v17  ;;  %v1099_v62 = vcombine.high %v1091_v58, %v1091_v58  ;;  %7707 = vst.sshfl [vmem:[#allocation3 + $0x4] sm:$0x3 pattern:$0x76325410] %v1084_v57 }
0x1161   :  { %v1117_v63 = vcombine.high %v1115_v59, %v1115_v59  ;;  %1131 = vst [vmem:[#allocation3 + $0xa] sm:$0x3] %v1116_v60 }
0x1162   :  { %v1100_v0 = vcombine.high %v1098_v61, %v1098_v61  ;;  %1127 = vst [vmem:[#allocation3 + $0x2] sm:$0x3] %v1099_v62 }
0x1163   :  { %v9101_v28 = vpop.eup %9100  ;;  %1133 = vst [vmem:[#allocation3 + $0xe] sm:$0x3] %v1117_v63 }
0x1164   :  { %867 = vrot.lane.b32.xlu0 %v9101_v28, %s9414_s25  ;;  %1129 = vst [vmem:[#allocation3 + $0x6] sm:$0x3] %v1100_v0 }
0x1165   :  { %v9103_v30 = vpop.eup %9102  ;;  %v1134_v6 = vld [vmem:[#allocation3] sm:$0x3] }
0x1166   :  { %v861_v31 = vadd.f32 1.0, %v9103_v30 }
0x1168   :  { %9104 = vrcp.f32 %v861_v31 }
0x1169   :  { %v1236_v27 = vld [vmem:[#allocation3 + $0x2] sm:$0x3] }
0x1172   :  { %v9105_v32 = vpop.eup %9104 }
0x1173   :  { %v865_v35 = vmul.f32 %v9105_v32, %v770_v19 }
0x11d6   :  { %v868_v33 = vpop.permute.xlu0 %867 }
0x11d7   :  { %v870_v34 = vmul.f32 %v9105_v32, %v868_v33 }
0x11d9   :  { %872 = vrot.lane.b32.xlu1 %v870_v34, %s9415_s26 }
0x124b   :  { %v873_v36 = vpop.permute.xlu1 %872 }
0x124c   :  { %v9565_v37 = vadd.f32 %v873_v36, %v865_v35 }
0x124e   :  { %9106 = vtanh.f32 %v9565_v37 }
0x1258   :  { %v9107_v41 = vpop.eup %9106 }
0x1259   :  { %878 = vrot.lane.b32.xlu0 %v9107_v41, %s9414_s25 }
0x12cb   :  { %v879_v48 = vpop.permute.xlu0 %878 }
0x12cc   :  { %v881_v49 = vmul.f32 %v9105_v32, %v879_v48  ;;  %v1341_v48 = vld [vmem:[#allocation3 + $0x4] sm:$0x3] }
0x12ce   :  { %883 = vrot.lane.b32.xlu1 %v881_v49, %s9415_s26 }
0x1340   :  { %v884_v1 = vpop.permute.xlu1 %883 }
0x1341   :  { %887 = vst.msk [vmem:[#allocation4 + $0xc] sm:$0x3] %vm256_vm2, %v884_v1  ;;  %8205 = vmatmul.mubr.msk.f32.vlgmr.msra.gmra.mrb[6].mxu0 %vm153_vm3, %v884_v1 }
0x1342   :  { %8688 = vmatpush3.bf16.msra.mxu0 %v9589_v44  ;;  %8220 = vmatprep.mubr.msk.f32.mxu0 %vm9411_vm1, %v9412_v4 }
0x1343   :  { %8689 = vmatprep.subr.bf16.mxu0 %v9410_v3 }
0x1346   :  { %8691 = vmatpush3.bf16.msra.mxu0 %v9599_v47 }
0x1347   :  { %8698 = vmatprep.subr.bf16.mxu0 %v9410_v3 }
0x1349   :  { %8221 = vmatmul.mubr.f32.vlgmr.msra.gmra.mrb[8].mxu0 %v9412_v4 }
0x134a   :  { %8700 = vmatpush3.bf16.msra.mxu0 %v9589_v44  ;;  %8242 = vmatprep.mubr.msk.f32.mxu0 %vm9411_vm1, %v9412_v4 }
0x134b   :  { %8701 = vmatprep.subr.bf16.mxu0 %v9410_v3 }
0x134e   :  { %8703 = vmatpush3.bf16.msra.mxu0 %v9599_v47 }
0x134f   :  { %8710 = vmatprep.subr.bf16.mxu0 %v9410_v3 }
0x1414   :  { %v9626_v2 = vpop.f32.mrb[6].mxu0 }
0x1415   :  { %v8206_v5 = vpop.f32.mrb[7].mxu0 }
0x1416   :  { %v1446_v5 = vld [vmem:[#allocation3 + $0x6] sm:$0x3] }
0x141c   :  { %v1201_v7 = vpop.f32.mrb[8].mxu0 }
0x141d   :  { %v1205_v9 = vadd.f32 %v1201_v7, %v1134_v6  ;;  %v8222_v8 = vpop.f32.mrb[9].mxu0 }
0x141f   :  { %9108 = vtanh.f32 %v1205_v9  ;;  %v7710_v12 = vmul.f32 -1.442695, %v1205_v9 }
0x1421   :  { %9110 = vpow2.f32 %v7710_v12 }
0x1429   :  { %v9109_v11 = vpop.eup %9108 }
0x142a   :  { %1215 = vrot.lane.b32.xlu0 %v9109_v11, %s9414_s25 }
0x142b   :  { %v9111_v14 = vpop.eup %9110 }
0x142c   :  { %v1209_v16 = vadd.f32 1.0, %v9111_v14 }
0x142e   :  { %9112 = vrcp.f32 %v1209_v16 }
0x1438   :  { %v9113_v10 = vpop.eup %9112 }
0x1439   :  { %v1213_v20 = vmul.f32 0.0, %v9113_v10 }
0x149c   :  { %v1216_v18 = vpop.permute.xlu0 %1215 }
0x149d   :  { %v1218_v19 = vmul.f32 %v9113_v10, %v1216_v18 }
0x149f   :  { %1220 = vrot.lane.b32.xlu1 %v1218_v19, %s9415_s26 }
0x1511   :  { %v1221_v21 = vpop.permute.xlu1 %1220 }
0x1512   :  { %v1223_v22 = vadd.f32 %v1221_v21, %v1213_v20 }
0x1514   :  { %9114 = vtanh.f32 %v1223_v22 }
0x151e   :  { %v9115_v23 = vpop.eup %9114 }
0x151f   :  { %1226 = vrot.lane.b32.xlu0 %v9115_v23, %s9414_s25 }
0x1591   :  { %v1227_v24 = vpop.permute.xlu0 %1226 }
0x1592   :  { %v1229_v25 = vmul.f32 %v9113_v10, %v1227_v24 }
0x1594   :  { %1231 = vrot.lane.b32.xlu1 %v1229_v25, %s9415_s26 }
0x1606   :  { %v1232_v26 = vpop.permute.xlu1 %1231 }
0x1607   :  { %1234 = vst.msk [vmem:[#allocation5] sm:$0x3] %vm256_vm2, %v1232_v26  ;;  %8232 = vmatmul.mubr.msk.f32.vlgmr.msra.gmra.mrb[12].mxu1 %vm153_vm3, %v1232_v26  ;;  %v1551_v26 = vld [vmem:[#allocation3 + $0x8] sm:$0x3] }
0x1608   :  { %8706 = vmatpush3.bf16.msra.mxu1 %v9589_v44  ;;  %8253 = vmatprep.mubr.msk.f32.mxu1 %vm9411_vm1, %v9412_v4 }
0x1609   :  { %8707 = vmatprep.subr.bf16.mxu1 %v9410_v3 }
0x160c   :  { %8709 = vmatpush3.bf16.msra.mxu1 %v9599_v47 }
0x160d   :  { %8716 = vmatprep.subr.bf16.mxu1 %v9410_v3 }
0x16da   :  { %v1305_v28 = vpop.f32.mrb[12].mxu1 }
0x16db   :  { %v1309_v29 = vadd.f32 %v1305_v28, %v1236_v27  ;;  %v8233_v30 = vpop.f32.mrb[13].mxu1 }
0x16dd   :  { %9116 = vtanh.f32 %v1309_v29  ;;  %v7712_v32 = vmul.f32 -1.442695, %v1309_v29 }
0x16df   :  { %9118 = vpow2.f32 %v7712_v32 }
0x16e7   :  { %v9117_v31 = vpop.eup %9116 }
0x16e8   :  { %1319 = vrot.lane.b32.xlu0 %v9117_v31, %s9414_s25 }
0x16e9   :  { %v9119_v33 = vpop.eup %9118 }
0x16ea   :  { %v1313_v34 = vadd.f32 1.0, %v9119_v33 }
0x16ec   :  { %9120 = vrcp.f32 %v1313_v34 }
0x16f6   :  { %v9121_v35 = vpop.eup %9120 }
0x16f7   :  { %v1317_v39 = vmul.f32 %v9121_v35, %v1223_v22 }
0x175a   :  { %v1320_v36 = vpop.permute.xlu0 %1319 }
0x175b   :  { %v1322_v38 = vmul.f32 %v9121_v35, %v1320_v36 }
0x175d   :  { %1324 = vrot.lane.b32.xlu1 %v1322_v38, %s9415_s26 }
0x17cf   :  { %v1325_v40 = vpop.permute.xlu1 %1324 }
0x17d0   :  { %v1327_v41 = vadd.f32 %v1325_v40, %v1317_v39 }
0x17d2   :  { %9122 = vtanh.f32 %v1327_v41 }
0x17dc   :  { %v9123_v42 = vpop.eup %9122 }
0x17dd   :  { %1330 = vrot.lane.b32.xlu0 %v9123_v42, %s9414_s25 }
0x184f   :  { %v1331_v43 = vpop.permute.xlu0 %1330 }
0x1850   :  { %v1333_v45 = vmul.f32 %v9121_v35, %v1331_v43 }
0x1852   :  { %1335 = vrot.lane.b32.xlu1 %v1333_v45, %s9415_s26 }
0x18c4   :  { %v1336_v46 = vpop.permute.xlu1 %1335 }
0x18c5   :  { %1339 = vst.msk [vmem:[#allocation5 + $0x2] sm:$0x3] %vm256_vm2, %v1336_v46  ;;  %8243 = vmatmul.mubr.msk.f32.vlgmr.msra.gmra.mrb[10].mxu0 %vm153_vm3, %v1336_v46  ;;  %v1656_v46 = vld [vmem:[#allocation3 + $0xa] sm:$0x3] }
0x18c6   :  { %8712 = vmatpush3.bf16.msra.mxu0 %v9589_v44  ;;  %8264 = vmatprep.mubr.msk.f32.mxu0 %vm9411_vm1, %v9412_v4 }
0x18c7   :  { %8713 = vmatprep.subr.bf16.mxu0 %v9410_v3 }
0x18ca   :  { %8715 = vmatpush3.bf16.msra.mxu0 %v9599_v47 }
0x18cb   :  { %8722 = vmatprep.subr.bf16.mxu0 %v9410_v3 }
0x1998   :  { %v1410_v49 = vpop.f32.mrb[10].mxu0 }
0x1999   :  { %v1414_v50 = vadd.f32 %v1410_v49, %v1341_v48  ;;  %v8244_v51 = vpop.f32.mrb[11].mxu0 }
0x199b   :  { %9124 = vtanh.f32 %v1414_v50  ;;  %v7714_v53 = vmul.f32 -1.442695, %v1414_v50 }
0x199d   :  { %9126 = vpow2.f32 %v7714_v53 }
0x19a5   :  { %v9125_v52 = vpop.eup %9124 }
0x19a6   :  { %1424 = vrot.lane.b32.xlu0 %v9125_v52, %s9414_s25 }
0x19a7   :  { %v9127_v54 = vpop.eup %9126 }
0x19a8   :  { %v1418_v55 = vadd.f32 1.0, %v9127_v54 }
0x19aa   :  { %9128 = vrcp.f32 %v1418_v55 }
0x19b4   :  { %v9129_v56 = vpop.eup %9128 }
0x19b5   :  { %v1422_v59 = vmul.f32 %v9129_v56, %v1327_v41 }
0x1a18   :  { %v1425_v57 = vpop.permute.xlu0 %1424 }
0x1a19   :  { %v1427_v58 = vmul.f32 %v9129_v56, %v1425_v57 }
0x1a1b   :  { %1429 = vrot.lane.b32.xlu1 %v1427_v58, %s9415_s26 }
0x1a8d   :  { %v1430_v60 = vpop.permute.xlu1 %1429 }
0x1a8e   :  { %v1432_v61 = vadd.f32 %v1430_v60, %v1422_v59 }
0x1a90   :  { %9130 = vtanh.f32 %v1432_v61 }
0x1a9a   :  { %v9131_v62 = vpop.eup %9130 }
0x1a9b   :  { %1435 = vrot.lane.b32.xlu0 %v9131_v62, %s9414_s25 }
0x1b0d   :  { %v1436_v63 = vpop.permute.xlu0 %1435 }
0x1b0e   :  { %v1438_v0 = vmul.f32 %v9129_v56, %v1436_v63  ;;  %v1761_v63 = vld [vmem:[#allocation3 + $0xc] sm:$0x3] }
0x1b10   :  { %1440 = vrot.lane.b32.xlu1 %v1438_v0, %s9415_s26 }
0x1b82   :  { %v1441_v1 = vpop.permute.xlu1 %1440 }
0x1b83   :  { %1444 = vst.msk [vmem:[#allocation5 + $0x4] sm:$0x3] %vm256_vm2, %v1441_v1  ;;  %8254 = vmatmul.mubr.msk.f32.vlgmr.msra.gmra.mrb[14].mxu1 %vm153_vm3, %v1441_v1 }
0x1b84   :  { %8718 = vmatpush3.bf16.msra.mxu1 %v9589_v44  ;;  %8275 = vmatprep.mubr.msk.f32.mxu1 %vm9411_vm1, %v9412_v4 }
0x1b85   :  { %8719 = vmatprep.subr.bf16.mxu1 %v9410_v3 }
0x1b88   :  { %8721 = vmatpush3.bf16.msra.mxu1 %v9599_v47 }
0x1b89   :  { %8728 = vmatprep.subr.bf16.mxu1 %v9410_v3 }
0x1c56   :  { %v1515_v6 = vpop.f32.mrb[14].mxu1 }
0x1c57   :  { %v1519_v7 = vadd.f32 %v1515_v6, %v1446_v5  ;;  %v8255_v9 = vpop.f32.mrb[15].mxu1 }
0x1c59   :  { %9132 = vtanh.f32 %v1519_v7  ;;  %v7716_v11 = vmul.f32 -1.442695, %v1519_v7 }
0x1c5b   :  { %9134 = vpow2.f32 %v7716_v11 }
0x1c63   :  { %v9133_v8 = vpop.eup %9132 }
0x1c64   :  { %1529 = vrot.lane.b32.xlu0 %v9133_v8, %s9414_s25 }
0x1c65   :  { %v9135_v12 = vpop.eup %9134 }
0x1c66   :  { %v1523_v14 = vadd.f32 1.0, %v9135_v12 }
0x1c68   :  { %9136 = vrcp.f32 %v1523_v14 }
0x1c72   :  { %v9137_v16 = vpop.eup %9136 }
0x1c73   :  { %v1527_v19 = vmul.f32 %v9137_v16, %v1432_v61 }
0x1cd6   :  { %v1530_v10 = vpop.permute.xlu0 %1529 }
0x1cd7   :  { %v1532_v18 = vmul.f32 %v9137_v16, %v1530_v10 }
0x1cd9   :  { %1534 = vrot.lane.b32.xlu1 %v1532_v18, %s9415_s26 }
0x1d4b   :  { %v1535_v20 = vpop.permute.xlu1 %1534 }
0x1d4c   :  { %v1537_v21 = vadd.f32 %v1535_v20, %v1527_v19  ;;  %v889_v20 = vld [vmem:[#allocation2 + $0xe] sm:$0x3] }
0x1d4e   :  { %9138 = vtanh.f32 %v1537_v21 }
0x1d58   :  { %v9139_v22 = vpop.eup %9138 }
0x1d59   :  { %1540 = vrot.lane.b32.xlu0 %v9139_v22, %s9414_s25 }
0x1dcb   :  { %v1541_v23 = vpop.permute.xlu0 %1540 }
0x1dcc   :  { %v1543_v24 = vmul.f32 %v9137_v16, %v1541_v23 }
0x1dce   :  { %1545 = vrot.lane.b32.xlu1 %v1543_v24, %s9415_s26 }
0x1e40   :  { %v1546_v25 = vpop.permute.xlu1 %1545 }
0x1e41   :  { %1549 = vst.msk [vmem:[#allocation5 + $0x6] sm:$0x3] %vm256_vm2, %v1546_v25  ;;  %8265 = vmatmul.mubr.msk.f32.vlgmr.msra.gmra.mrb[12].mxu0 %vm153_vm3, %v1546_v25 }
0x1e42   :  { %8724 = vmatpush3.bf16.msra.mxu0 %v9589_v44  ;;  %8286 = vmatprep.mubr.msk.f32.mxu0 %vm9411_vm1, %v9412_v4 }
0x1e43   :  { %8725 = vmatprep.subr.bf16.mxu0 %v9410_v3 }
0x1e46   :  { %8727 = vmatpush3.bf16.msra.mxu0 %v9599_v47 }
0x1f14   :  { %v1620_v27 = vpop.f32.mrb[12].mxu0 }
0x1f15   :  { %v1624_v28 = vadd.f32 %v1620_v27, %v1551_v26  ;;  %v8266_v29 = vpop.f32.mrb[13].mxu0 }
0x1f17   :  { %9140 = vtanh.f32 %v1624_v28  ;;  %v7718_v31 = vmul.f32 -1.442695, %v1624_v28 }
0x1f19   :  { %9142 = vpow2.f32 %v7718_v31 }
0x1f21   :  { %v9141_v30 = vpop.eup %9140 }
0x1f22   :  { %1634 = vrot.lane.b32.xlu0 %v9141_v30, %s9414_s25 }
0x1f23   :  { %v9143_v32 = vpop.eup %9142 }
0x1f24   :  { %v1628_v33 = vadd.f32 1.0, %v9143_v32 }
0x1f26   :  { %9144 = vrcp.f32 %v1628_v33 }
0x1f30   :  { %v9145_v34 = vpop.eup %9144 }
0x1f31   :  { %v1632_v38 = vmul.f32 %v9145_v34, %v1537_v21  ;;  %v962_v21 = vadd.f32 %v9626_v2, %v889_v20 }
0x1f33   :  { %v7703_v25 = vmul.f32 -1.442695, %v962_v21 }
0x1f94   :  { %v1635_v35 = vpop.permute.xlu0 %1634 }
0x1f95   :  { %v1637_v36 = vmul.f32 %v9145_v34, %v1635_v35  ;;  %v1866_v35 = vld [vmem:[#allocation3 + $0xe] sm:$0x3] }
0x1f97   :  { %1639 = vrot.lane.b32.xlu1 %v1637_v36, %s9415_s26 }
0x2009   :  { %v1640_v39 = vpop.permute.xlu1 %1639 }
0x200a   :  { %v1642_v40 = vadd.f32 %v1640_v39, %v1632_v38 }
0x200c   :  { %9146 = vtanh.f32 %v1642_v40 }
0x2016   :  { %v9147_v41 = vpop.eup %9146 }
0x2017   :  { %1645 = vrot.lane.b32.xlu0 %v9147_v41, %s9414_s25 }
0x2089   :  { %v1646_v42 = vpop.permute.xlu0 %1645 }
0x208a   :  { %v1648_v43 = vmul.f32 %v9145_v34, %v1646_v42 }
0x208c   :  { %1650 = vrot.lane.b32.xlu1 %v1648_v43, %s9415_s26 }
0x20fe   :  { %v1651_v45 = vpop.permute.xlu1 %1650 }
0x20ff   :  { %1654 = vst.msk [vmem:[#allocation5 + $0x8] sm:$0x3] %vm256_vm2, %v1651_v45  ;;  %8276 = vmatmul.mubr.msk.f32.vlgmr.msra.gmra.mrb[16].mxu1 %vm153_vm3, %v1651_v45 }
0x2100   :  { %8730 = vmatpush3.bf16.msra.mxu1 %v9589_v44  ;;  %8297 = vmatprep.mubr.msk.f32.mxu1 %vm9411_vm1, %v9412_v4 }
0x2101   :  { %8731 = vmatprep.subr.bf16.mxu1 %v9410_v3 }
0x2104   :  { %8733 = vmatpush3.bf16.msra.mxu1 %v9599_v47 }
0x21d2   :  { %v1725_v48 = vpop.f32.mrb[16].mxu1 }
0x21d3   :  { %v1729_v49 = vadd.f32 %v1725_v48, %v1656_v46  ;;  %v8277_v50 = vpop.f32.mrb[17].mxu1 }
0x21d5   :  { %9148 = vtanh.f32 %v1729_v49  ;;  %v7720_v52 = vmul.f32 -1.442695, %v1729_v49 }
0x21d7   :  { %9150 = vpow2.f32 %v7720_v52 }
0x21df   :  { %v9149_v51 = vpop.eup %9148 }
0x21e0   :  { %1739 = vrot.lane.b32.xlu0 %v9149_v51, %s9414_s25 }
0x21e1   :  { %v9151_v53 = vpop.eup %9150 }
0x21e2   :  { %v1733_v54 = vadd.f32 1.0, %v9151_v53 }
0x21e4   :  { %9152 = vrcp.f32 %v1733_v54 }
0x21ee   :  { %v9153_v44 = vpop.eup %9152 }
0x21ef   :  { %v1737_v57 = vmul.f32 %v9153_v44, %v1642_v40 }
0x2252   :  { %v1740_v55 = vpop.permute.xlu0 %1739 }
0x2253   :  { %v1742_v56 = vmul.f32 %v9153_v44, %v1740_v55 }
0x2255   :  { %1744 = vrot.lane.b32.xlu1 %v1742_v56, %s9415_s26  ;;  %v9416_v56 = vmov 1966171168  }
0x22c7   :  { %v1745_v47 = vpop.permute.xlu1 %1744 }
0x22c8   :  { %v1747_v58 = vadd.f32 %v1745_v47, %v1737_v57  ;;  %v1988_v57 = vunpack.c.l.s4 %v9416_v56 }
0x22ca   :  { %9154 = vtanh.f32 %v1747_v58  ;;  %v1989_v47 = vunpack.c.0.s8 %v1988_v57 }
0x22d4   :  { %v9155_v59 = vpop.eup %9154 }
0x22d5   :  { %1750 = vrot.lane.b32.xlu0 %v9155_v59, %s9414_s25  ;;  %v9715_v59 = vsub.s32 %v1989_v47, %v9486_v15 }
0x2347   :  { %v1751_v60 = vpop.permute.xlu0 %1750 }
0x2348   :  { %v1753_v61 = vmul.f32 %v9153_v44, %v1751_v60  ;;  %v7734_v60 = vld.sshfl [vmem:[#allocation5 + $0x2] sm:$0x11 pattern:$0x75316420] }
0x234a   :  { %1755 = vrot.lane.b32.xlu1 %v1753_v61, %s9415_s26  ;;  %v9717_v61 = vld.sshfl [vmem:[#allocation4] sm:$0x11 pattern:$0x75316420] }
0x23bc   :  { %v1756_v62 = vpop.permute.xlu1 %1755 }
0x23bd   :  { %1759 = vst.msk [vmem:[#allocation5 + $0xa] sm:$0x3] %vm256_vm2, %v1756_v62  ;;  %8287 = vmatmul.mubr.msk.f32.vlgmr.msra.gmra.mrb[14].mxu0 %vm153_vm3, %v1756_v62  ;;  %v9720_v62 = vsub.s32 0, %v9486_v15 }
0x2490   :  { %v1830_v0 = vpop.f32.mrb[14].mxu0 }
0x2491   :  { %v1834_v1 = vadd.f32 %v1830_v0, %v1761_v63  ;;  %v8288_v5 = vpop.f32.mrb[15].mxu0  ;;  %v7735_v63 = vld.sshfl [vmem:[#allocation5 + $0x4] sm:$0x11 pattern:$0x75316420] }
0x2492   :  { %v2296_v5 = vcombine.high %v7734_v60, %v7734_v60 }
0x2493   :  { %9156 = vtanh.f32 %v1834_v1  ;;  %v7722_v7 = vmul.f32 -1.442695, %v1834_v1  ;;  %v7736_v1 = vld.sshfl [vmem:[#allocation5 + $0x6] sm:$0x11 pattern:$0x75316420] }
0x2495   :  { %9158 = vpow2.f32 %v7722_v7  ;;  %v7733_v7 = vld.sshfl [vmem:[#allocation5] sm:$0x11 pattern:$0x75316420] }
0x249d   :  { %v9157_v6 = vpop.eup %9156 }
0x249e   :  { %1844 = vrot.lane.b32.xlu0 %v9157_v6, %s9414_s25  ;;  %v9724_v6 = vld.sshfl [vmem:[#allocation4 + $0x4] sm:$0x11 pattern:$0x75316420] }
0x249f   :  { %v9159_v9 = vpop.eup %9158 }
0x24a0   :  { %v1838_v8 = vadd.f32 1.0, %v9159_v9  ;;  %v7737_v9 = vld.sshfl [vmem:[#allocation5 + $0x8] sm:$0x11 pattern:$0x75316420] }
0x24a2   :  { %9160 = vrcp.f32 %v1838_v8  ;;  %v7738_v8 = vld.sshfl [vmem:[#allocation5 + $0xa] sm:$0x11 pattern:$0x75316420] }
0x24ac   :  { %v9161_v11 = vpop.eup %9160 }
0x24ad   :  { %v1842_v16 = vmul.f32 %v9161_v11, %v1747_v58  ;;  %v9712_v58 = vld.sshfl [vmem:[#allocation4 + $0x2] sm:$0x11 pattern:$0x75316420] }
0x24ae   :  { %v2018_v0 = vrot.slane %v9712_v58, %v9715_v59 }
0x2510   :  { %v1845_v12 = vpop.permute.xlu0 %1844 }
0x2511   :  { %v1847_v14 = vmul.f32 %v9161_v11, %v1845_v12  ;;  %v1986_v12 = vcombine.high %v9717_v61, %v9717_v61 }
0x2513   :  { %1849 = vrot.lane.b32.xlu1 %v1847_v14, %s9415_s26 }
0x2585   :  { %v1850_v10 = vpop.permute.xlu1 %1849 }
0x2586   :  { %v1852_v18 = vadd.f32 %v1850_v10, %v1842_v16  ;;  %v2303_v16 = vrot.slane %v7734_v60, %v9715_v59  ;;  %v2342_v10 = vcombine.high %v7736_v1, %v7736_v1  ;;  %v7728_v60 = vld.sshfl [vmem:[#allocation4 + $0x6] sm:$0x11 pattern:$0x75316420] }
0x2588   :  { %9162 = vtanh.f32 %v1852_v18 }
0x2589   :  { %9164 = vtanh.f32 %v962_v21  ;;  %v2326_v21 = vrot.slane %v7735_v63, %v9715_v59 }
0x258a   :  { %9166 = vpow2.f32 %v7703_v25  ;;  %v2388_v25 = vcombine.high %v7738_v8, %v7738_v8 }
0x2592   :  { %v9163_v19 = vpop.eup %9162 }
0x2593   :  { %1855 = vrot.lane.b32.xlu0 %v9163_v19, %s9414_s25  ;;  %v9165_v24 = vpop.eup %9164  ;;  %v2011_v19 = vcombine.high %v9712_v58, %v9712_v58 }
0x2594   :  { %v9167_v26 = vpop.eup %9166 }
0x2595   :  { %v966_v27 = vadd.f32 1.0, %v9167_v26  ;;  %v2041_v26 = vrot.slane %v9724_v6, %v9715_v59 }
0x2597   :  { %9168 = vrcp.f32 %v966_v27  ;;  %v2034_v27 = vcombine.high %v9724_v6, %v9724_v6 }
0x25a1   :  { %v9169_v29 = vpop.eup %9168 }
0x25a2   :  { %v970_v31 = vmul.f32 %v9169_v29, %v9565_v37 }
0x2605   :  { %v1856_v22 = vpop.permute.xlu0 %1855 }
0x2606   :  { %v1858_v23 = vmul.f32 %v9161_v11, %v1856_v22  ;;  %v2319_v11 = vcombine.high %v7735_v63, %v7735_v63  ;;  %v2310_v22 = vrot.slane %v2296_v5, %v9715_v59  ;;  %v7729_v5 = vld.sshfl [vmem:[#allocation4 + $0x8] sm:$0x11 pattern:$0x75316420] }
0x2608   :  { %1860 = vrot.lane.b32.xlu1 %v1858_v23, %s9415_s26  ;;  %v2365_v23 = vcombine.high %v7737_v9, %v7737_v9 }
0x260c   :  { %972 = vrot.lane.b32.xlu1 %v9165_v24, %s9414_s25  ;;  %v2349_v24 = vrot.slane %v7736_v1, %v9715_v59 }
0x267a   :  { %v1861_v28 = vpop.permute.xlu1 %1860 }
0x267b   :  { %1864 = vst.msk [vmem:[#allocation5 + $0xc] sm:$0x3] %vm256_vm2, %v1861_v28  ;;  %8298 = vmatmul.mubr.msk.f32.vlgmr.msra.gmra.mrb[18].mxu1 %vm153_vm3, %v1861_v28  ;;  %v2372_v28 = vrot.slane %v7737_v9, %v9715_v59 }
0x267e   :  { %v973_v2 = vpop.permute.xlu1 %972 }
0x267f   :  { %v975_v30 = vmul.f32 %v9169_v29, %v973_v2  ;;  %v2333_v2 = vrot.slane %v2319_v11, %v9715_v59 }
0x2681   :  { %977 = vrot.lane.b32.xlu1 %v975_v30, %s9415_s26 }
0x2682   :  { %v7739_v14 = vld.sshfl [vmem:[#allocation5 + $0xc] sm:$0x11 pattern:$0x75316420] }
0x2683   :  { %v2411_v30 = vcombine.high %v7739_v14, %v7739_v14 }
0x26f3   :  { %v978_v32 = vpop.permute.xlu1 %977 }
0x26f4   :  { %v980_v33 = vadd.f32 %v978_v32, %v970_v31  ;;  %v2395_v31 = vrot.slane %v7738_v8, %v9715_v59  ;;  %v2452_v32 = vrot.slane %v2303_v16, %v9720_v62 }
0x26f6   :  { %9170 = vtanh.f32 %v980_v33  ;;  %v2356_v33 = vrot.slane %v2342_v10, %v9715_v59 }
0x2700   :  { %v9171_v34 = vpop.eup %9170 }
0x2701   :  { %983 = vrot.lane.b32.xlu1 %v9171_v34, %s9414_s25  ;;  %v2418_v34 = vrot.slane %v7739_v14, %v9715_v59  ;;  %v7730_v14 = vld.sshfl [vmem:[#allocation4 + $0xa] sm:$0x11 pattern:$0x75316420] }
0x274e   :  { %v1935_v36 = vpop.f32.mrb[18].mxu1 }
0x274f   :  { %v1939_v38 = vadd.f32 %v1935_v36, %v1866_v35  ;;  %v8299_v39 = vpop.f32.mrb[19].mxu1  ;;  %v2462_v35 = vrot.slane %v2326_v21, %v9720_v62  ;;  %v2379_v36 = vrot.slane %v2365_v23, %v9715_v59  ;;  %v7731_v21 = vld.sshfl [vmem:[#allocation4 + $0xc] sm:$0x11 pattern:$0x75316420] }
0x2750   :  { %v2278_v39 = vrot.slane %v7733_v7, %v9715_v59 }
0x2751   :  { %9172 = vtanh.f32 %v1939_v38  ;;  %v7724_v43 = vmul.f32 -1.442695, %v1939_v38  ;;  %v2456_v38 = vrot.slane %v2310_v22, %v9720_v62  ;;  %v2057_v22 = vcombine.high %v7728_v60, %v7728_v60 }
0x2753   :  { %9174 = vpow2.f32 %v7724_v43  ;;  %v2071_v58 = vrot.slane %v2057_v22, %v9715_v59 }
0x275b   :  { %v9173_v40 = vpop.eup %9172 }
0x275c   :  { %1949 = vrot.lane.b32.xlu0 %v9173_v40, %s9414_s25  ;;  %v2472_v40 = vrot.slane %v2349_v24, %v9720_v62 }
0x275d   :  { %v9175_v37 = vpop.eup %9174 }
0x275e   :  { %v1943_v45 = vadd.f32 1.0, %v9175_v37  ;;  %v2425_v37 = vrot.slane %v2411_v30, %v9715_v59  ;;  %v2064_v30 = vrot.slane %v7728_v60, %v9715_v59 }
0x2760   :  { %9176 = vrcp.f32 %v1943_v45  ;;  %v2466_v45 = vrot.slane %v2333_v2, %v9720_v62 }
0x276a   :  { %v9177_v46 = vpop.eup %9176 }
0x276b   :  { %v1947_v51 = vmul.f32 %v9177_v46, %v1852_v18  ;;  %v9730_v18 = vrot.slane %v2018_v0, %v9720_v62  ;;  %v2506_v0 = vrot.slane %v2425_v37, %v9720_v62  ;;  %v2187_v37 = vrot.slane %v2064_v30, %v9720_v62 }
0x2773   :  { %v984_v41 = vpop.permute.xlu1 %983 }
0x2774   :  { %v986_v42 = vmul.f32 %v9169_v29, %v984_v41  ;;  %v2271_v29 = vcombine.high %v7733_v7, %v7733_v7  ;;  %v2402_v41 = vrot.slane %v2388_v25, %v9715_v59 }
0x2776   :  { %988 = vrot.lane.b32.xlu1 %v986_v42, %s9415_s26  ;;  %v2482_v42 = vrot.slane %v2372_v28, %v9720_v62  ;;  %v2285_v43 = vrot.slane %v2271_v29, %v9715_v59  ;;  %v2496_v47 = vrot.slane %v2402_v41, %v9720_v62  ;;  %v2080_v29 = vcombine.high %v7729_v5, %v7729_v5 }
0x2777   :  { %v2133_v41 = vrot.slane %v7731_v21, %v9715_v59 }
0x27ce   :  { %v1950_v48 = vpop.permute.xlu0 %1949 }
0x27cf   :  { %v1952_v49 = vmul.f32 %v9177_v46, %v1950_v48  ;;  %v2519_v48 = vsel %vm2234_vm4, %v2278_v39, %v2452_v32  ;;  %v2103_v32 = vcombine.high %v7730_v14, %v7730_v14  ;;  %v2110_v39 = vrot.slane %v7730_v14, %v9715_v59 }
0x27d1   :  { %1954 = vrot.lane.b32.xlu0 %v1952_v49, %s9415_s26  ;;  %v2476_v49 = vrot.slane %v2356_v33, %v9720_v62 }
0x27e8   :  { %v9706_v50 = vpop.permute.xlu1 %988 }
0x27e9   :  { %992 = vst.msk [vmem:[#allocation4 + $0xe] sm:$0x3] %vm256_vm2, %v9706_v50 }
0x27f0   :  { %v7732_v28 = vld.sshfl [vmem:[#allocation4 + $0xe] sm:$0x11 pattern:$0x75316420] }
0x2843   :  { %v1955_v52 = vpop.permute.xlu0 %1954 }
0x2844   :  { %v1957_v53 = vadd.f32 %v1955_v52, %v1947_v51  ;;  %v2502_v52 = vrot.slane %v2418_v34, %v9720_v62  ;;  %v2087_v34 = vrot.slane %v7729_v5, %v9715_v59 }
0x2846   :  { %9178 = vtanh.f32 %v1957_v53  ;;  %v2521_v53 = vsel %vm2237_vm5, %v2519_v48, %v2462_v35  ;;  %v2048_v35 = vrot.slane %v2034_v27, %v9715_v59  ;;  %v2177_v27 = vrot.slane %v2041_v26, %v9720_v62 }
0x2847   :  { %v2523_v56 = vsel %vm2240_vm6, %v2521_v53, %v2472_v40  ;;  %v1993_v40 = vrot.slane %v9717_v61, %v9715_v59  ;;  %v2197_v48 = vrot.slane %v2087_v34, %v9720_v62 }
0x2848   :  { %v2525_v63 = vsel %vm2243_vm7, %v2523_v56, %v2482_v42  ;;  %v2094_v42 = vrot.slane %v2080_v29, %v9715_v59  ;;  %v2181_v26 = vrot.slane %v2048_v35, %v9720_v62 }
0x284a   :  { %v2201_v61 = vrot.slane %v2094_v42, %v9720_v62 }
0x2850   :  { %v9179_v54 = vpop.eup %9178 }
0x2851   :  { %1960 = vrot.lane.b32.xlu0 %v9179_v54, %s9414_s25  ;;  %v2486_v54 = vrot.slane %v2379_v36, %v9720_v62  ;;  %v2126_v36 = vcombine.high %v7731_v21, %v7731_v21 }
0x2853   :  { %v2140_v6 = vrot.slane %v2126_v36, %v9715_v59 }
0x2855   :  { %v2221_v60 = vrot.slane %v2140_v6, %v9720_v62 }
0x28c3   :  { %v1961_v44 = vpop.permute.xlu0 %1960 }
0x28c4   :  { %v1963_v55 = vmul.f32 %v9177_v46, %v1961_v44  ;;  %v2492_v46 = vrot.slane %v2395_v31, %v9720_v62  ;;  %v2520_v44 = vsel %vm2234_vm4, %v2285_v43, %v2456_v38  ;;  %v2025_v31 = vrot.slane %v2011_v19, %v9715_v59  ;;  %v2791_v38 = vld [vmem:[%s10901_s0 + $0x130] sm:$0xff] }
0x28c5   :  { %v2522_v1 = vsel %vm2237_vm5, %v2520_v44, %v2466_v45  ;;  %v2149_v19 = vcombine.high %v7732_v28, %v7732_v28  ;;  %8314 = vmatprep.subr.mxu1 %v2791_v38  ;;  %v2156_v43 = vrot.slane %v7732_v28, %v9715_v59  ;;  %v2117_v45 = vrot.slane %v2103_v32, %v9715_v59 }
0x28c6   :  { %1965 = vrot.lane.b32.xlu0 %v1963_v55, %s9415_s26  ;;  %v2527_v9 = vsel %vm2246_vm8, %v2525_v63, %v2492_v46  ;;  %v2524_v11 = vsel %vm2240_vm6, %v2522_v1, %v2476_v49  ;;  %8315 = vmatpush3.msra.mxu1 %v2791_v38  ;;  %v2171_v46 = vrot.slane %v2025_v31, %v9720_v62 }
0x28c7   :  { %v2529_v16 = vsel %vm2249_vm9, %v2527_v9, %v2502_v52  ;;  %v2526_v10 = vsel %vm2243_vm7, %v2524_v11, %v2486_v54  ;;  %v2000_v49 = vrot.slane %v1986_v12, %v9715_v59  ;;  %v2235_v52 = vsel %vm2234_vm4, %v1993_v40, %v9730_v18 }
0x28c8   :  { %v2528_v25 = vsel %vm2246_vm8, %v2526_v10, %v2496_v47  ;;  %v2163_v53 = vrot.slane %v2149_v19, %v9715_v59  ;;  %v2191_v54 = vrot.slane %v2071_v58, %v9720_v62  ;;  %v2217_v44 = vrot.slane %v2133_v41, %v9720_v62  ;;  %v2661_v10 = vld [vmem:[%s10901_s0 + $0x120] sm:$0xff] }
0x28c9   :  { %v2530_v2 = vsel %vm2249_vm9, %v2528_v25, %v2506_v0  ;;  %v2227_v12 = vrot.slane %v2156_v43, %v9720_v62  ;;  %v2236_v47 = vsel %vm2234_vm4, %v2000_v49, %v2171_v46  ;;  %8300 = vmatprep.subr.mxu0 %v2661_v10  ;;  %v2792_v19 = vld [vmem:[%s10901_s0 + $0x140] ss:$0 sm:$0xff] }
0x28ca   :  { %v2239_v63 = vsel %vm2237_vm5, %v2236_v47, %v2181_v26  ;;  %v2231_v1 = vrot.slane %v2163_v53, %v9720_v62  ;;  %8301 = vmatpush3.msra.mxu0 %v2661_v10 }
0x28cb   :  { %v2242_v5 = vsel %vm2240_vm6, %v2239_v63, %v2191_v54 }
0x28cc   :  { %v2245_v9 = vsel %vm2243_vm7, %v2242_v5, %v2201_v61 }
0x2938   :  { %v9734_v20 = vpop.permute.xlu0 %1965 }
0x2939   :  { %1969 = vst.msk [vmem:[#allocation5 + $0xe] sm:$0x3] %vm256_vm2, %v9734_v20 }
0x2940   :  { %v7740_v51 = vld.sshfl [vmem:[#allocation5 + $0xe] sm:$0x11 pattern:$0x75316420] }
0x2941   :  { %v2441_v55 = vrot.slane %v7740_v51, %v9715_v59  ;;  %v2434_v57 = vcombine.high %v7740_v51, %v7740_v51  ;;  %v2207_v51 = vrot.slane %v2110_v39, %v9720_v62 }
0x2943   :  { %v2512_v7 = vrot.slane %v2441_v55, %v9720_v62  ;;  %v2448_v8 = vrot.slane %v2434_v57, %v9715_v59  ;;  %v2238_v55 = vsel %vm2237_vm5, %v2235_v52, %v2177_v27  ;;  %v2211_v57 = vrot.slane %v2117_v45, %v9720_v62 }
0x2944   :  { %v2241_v56 = vsel %vm2240_vm6, %v2238_v55, %v2187_v37 }
0x2945   :  { %v9781_v23 = vsel %vm2252_vm10, %v2529_v16, %v2512_v7  ;;  %v2516_v24 = vrot.slane %v2448_v8, %v9720_v62  ;;  %v2244_v18 = vsel %vm2243_vm7, %v2241_v56, %v2197_v48  ;;  %v2248_v11 = vsel %vm2246_vm8, %v2245_v9, %v2211_v57 }
0x2946   :  { %2597 = vxpose.xlu0.b32.start.end [1/1] (short) (narrow) %v9781_v23, 32  ;;  %v2247_v0 = vsel %vm2246_vm8, %v2244_v18, %v2207_v51  ;;  %v2251_v14 = vsel %vm2249_vm9, %v2248_v11, %v2221_v60 }
0x2947   :  { %v9793_v33 = vsel %vm2252_vm10, %v2530_v2, %v2516_v24  ;;  %v2250_v7 = vsel %vm2249_vm9, %v2247_v0, %v2217_v44  ;;  %v9849_v16 = vsel %vm2252_vm10, %v2251_v14, %v2231_v1 }
0x2948   :  { %2629 = vxpose.xlu1.b32.start.end [1/1] (short) (narrow) %v9793_v33, 32  ;;  %v9843_v8 = vsel %vm2252_vm10, %v2250_v7, %v2227_v12 }
0x2953   :  { %2533 = vxpose.xlu0.b32.start.end [1/1] (short) (narrow) %v9843_v8, 32 }
0x2955   :  { %2565 = vxpose.xlu1.b32.start.end [1/1] (short) (narrow) %v9849_v16, 32 }
0x29c6   :  { %v2613_v21 = vpop.trf.xlu0 }
0x29c7   :  { %8316 = vmatprep.mubr.msk.f32.mxu1 %vm18_vm0, %v2613_v21 }
0x29c8   :  { %v2645_v22 = vpop.trf.xlu1 }
0x29ca   :  { %v2614_v24 = vpop.trf.xlu0 }
0x29cb   :  { %8317 = vmatmul.mubr.msk.f32.vlgmr.msra.gmra.mrb[20].mxu1 %vm18_vm0, %v2614_v24 }
0x29cc   :  { %v2646_v25 = vpop.trf.xlu1 }
0x29ce   :  { %v2615_v28 = vpop.trf.xlu0 }
0x29cf   :  { %8319 = vmatprep.mubr.msk.f32.mxu1 %vm18_vm0, %v2615_v28 }
0x29d0   :  { %v2647_v29 = vpop.trf.xlu1 }
0x29d2   :  { %v2616_v2 = vpop.trf.xlu0 }
0x29d3   :  { %8320 = vmatmul.mubr.msk.f32.gmra.mrb[22].mxu1 %vm18_vm0, %v2616_v2 }
0x29d4   :  { %8322 = vmatprep.mubr.msk.f32.mxu1 %vm18_vm0, %v2645_v22  ;;  %v2648_v30 = vpop.trf.xlu1 }
0x29d6   :  { %v2549_v31 = vpop.trf.xlu0 }
0x29d7   :  { %8302 = vmatprep.mubr.msk.f32.mxu0 %vm18_vm0, %v2549_v31  ;;  %8323 = vmatmul.mubr.msk.f32.gmra.mrb[24].mxu1 %vm18_vm0, %v2646_v25 }
0x29d8   :  { %8325 = vmatprep.mubr.msk.f32.mxu1 %vm18_vm0, %v2647_v29  ;;  %v2581_v32 = vpop.trf.xlu1 }
0x29da   :  { %v2550_v34 = vpop.trf.xlu0 }
0x29db   :  { %8303 = vmatmul.mubr.msk.f32.vlgmr.msra.gmra.mrb[16].mxu0 %vm18_vm0, %v2550_v34  ;;  %8326 = vmatmul.mubr.msk.f32.gmra.mrb[26].mxu1 %vm18_vm0, %v2648_v30 }
0x29dc   :  { %v2582_v35 = vpop.trf.xlu1 }
0x29de   :  { %v2551_v36 = vpop.trf.xlu0 }
0x29df   :  { %8305 = vmatprep.mubr.msk.f32.mxu0 %vm18_vm0, %v2551_v36 }
0x29e0   :  { %v2583_v39 = vpop.trf.xlu1 }
0x29e2   :  { %v2552_v38 = vpop.trf.xlu0 }
0x29e3   :  { %8306 = vmatmul.mubr.msk.f32.gmra.mrb[18].mxu0 %vm18_vm0, %v2552_v38 }
0x29e4   :  { %8308 = vmatprep.mubr.msk.f32.mxu0 %vm18_vm0, %v2581_v32  ;;  %v2584_v58 = vpop.trf.xlu1 }
0x29e7   :  { %8309 = vmatmul.mubr.msk.f32.gmra.mrb[20].mxu0 %vm18_vm0, %v2582_v35 }
0x29e8   :  { %8311 = vmatprep.mubr.msk.f32.mxu0 %vm18_vm0, %v2583_v39 }
0x29eb   :  { %8312 = vmatmul.mubr.msk.f32.gmra.mrb[22].mxu0 %vm18_vm0, %v2584_v58 }
0x2a9e   :  { %v8318_v40 = vpop.f32.mrb[20].mxu1 }
0x2a9f   :  { %v2889_v41 = vadd.f32 %v8318_v40, %v2792_v19  ;;  %v2883_v27 = vpop.f32.mrb[21].mxu1 }
0x2aa0   :  { %v2884_v42 = vadd.f32 %v2883_v27, %v2792_v19 }
0x2aa2   :  { %v8734_v37 = vpack.c.bf16 %v2889_v41, %v2884_v42  ;;  %v9880_v45 = vpack.i.bf16 %v2889_v41, %v2884_v42 }
0x2aa4   :  { %8736 = vmatprep.subr.msk.bf16.mxu0 %vm9876_vm12, %v8734_v37  ;;  %8991 = vrot.lane.b32.xlu1 %v9880_v45, %s9417_s21 }
0x2aa5   :  { %8739 = vmatpush3.bf16.xpose.msk.msra.mxu0 %vm9876_vm12, %v8734_v37 }
0x2aa6   :  { %v8321_v46 = vpop.f32.mrb[22].mxu1 }
0x2aa7   :  { %v2899_v48 = vadd.f32 %v8321_v46, %v2792_v19  ;;  %v2893_v49 = vpop.f32.mrb[23].mxu1 }
0x2aa8   :  { %v2894_v6 = vadd.f32 %v2893_v49, %v2792_v19  ;;  %8996 = vrot.lane.b32.xlu1 %v9880_v45, %s9418_s22 }
0x2aaa   :  { %v8324_v26 = vpop.f32.mrb[24].mxu1  ;;  %v9890_v51 = vpack.i.bf16 %v2899_v48, %v2894_v6  ;;  %v8740_v52 = vpack.c.bf16 %v2899_v48, %v2894_v6 }
0x2aab   :  { %v2909_v53 = vadd.f32 %v8324_v26, %v2792_v19  ;;  %v2903_v54 = vpop.f32.mrb[25].mxu1 }
0x2aac   :  { %v2904_v44 = vadd.f32 %v2903_v54, %v2792_v19  ;;  %9001 = vrot.lane.b32.xlu0 %v9890_v51, %s9417_s21  ;;  %8742 = vmatprep.subr.msk.bf16.mxu0 %vm9876_vm12, %v8740_v52 }
0x2aad   :  { %9006 = vrot.lane.b32.xlu1 %v9890_v51, %s9418_s22  ;;  %8745 = vmatpush3.bf16.xpose.msk.msra.mxu0 %vm9876_vm12, %v8740_v52 }
0x2aae   :  { %v9900_v55 = vpop.f32.mrb[16].mxu0  ;;  %v8746_v61 = vpack.c.bf16 %v2909_v53, %v2904_v44  ;;  %v8327_v12 = vpop.f32.mrb[26].mxu1  ;;  %v9902_v56 = vpack.i.bf16 %v2909_v53, %v2904_v44 }
0x2aaf   :  { %v9904_v57 = vpop.f32.mrb[17].mxu0  ;;  %v2919_v47 = vadd.f32 %v8327_v12, %v2792_v19  ;;  %v2913_v18 = vpop.f32.mrb[27].mxu1 }
0x2ab0   :  { %8336 = vmatprep.mubr.msk.f32.mxu0 %vm2922_vm11, %v9904_v57  ;;  %8748 = vmatprep.subr.msk.bf16.mxu1 %vm9876_vm12, %v8746_v61  ;;  %v2914_v60 = vadd.f32 %v2913_v18, %v2792_v19 }
0x2ab1   :  { %8751 = vmatpush3.bf16.xpose.msk.msra.mxu1 %vm9876_vm12, %v8746_v61  ;;  %9016 = vrot.lane.b32.xlu0 %v9902_v56, %s9418_s22 }
0x2ab2   :  { %v8752_v63 = vpack.c.bf16 %v2919_v47, %v2914_v60  ;;  %9011 = vrot.lane.b32.xlu1 %v9902_v56, %s9417_s21  ;;  %v9916_v0 = vpack.i.bf16 %v2919_v47, %v2914_v60 }
0x2ab4   :  { %8337 = vmatmul.mubr.msk.f32.vlgmr.msra.gmra.mrb[24].mxu0 %vm2922_vm11, %v9900_v55  ;;  %8754 = vmatprep.subr.msk.bf16.mxu1 %vm9876_vm12, %v8752_v63 }
0x2ab5   :  { %9021 = vrot.lane.b32.xlu0 %v9916_v0, %s9417_s21 }
0x2ab6   :  { %v9924_v1 = vpop.f32.mrb[18].mxu0  ;;  %9026 = vrot.lane.b32.xlu1 %v9916_v0, %s9418_s22 }
0x2ab7   :  { %v9928_v5 = vpop.f32.mrb[19].mxu0 }
0x2ab8   :  { %8339 = vmatprep.mubr.msk.f32.mxu0 %vm2922_vm11, %v9928_v5 }
0x2ab9   :  { %8340 = vmatmul.mubr.msk.f32.gmra.mrb[26].mxu0 %vm2922_vm11, %v9924_v1  ;;  %8757 = vmatpush3.bf16.xpose.msk.msra.mxu1 %vm9876_vm12, %v8752_v63 }
0x2aba   :  { %v9936_v7 = vpop.f32.mrb[20].mxu0 }
0x2abb   :  { %v9938_v9 = vpop.f32.mrb[21].mxu0 }
0x2abc   :  { %8350 = vmatprep.mubr.msk.f32.mxu1 %vm2922_vm11, %v9938_v9 }
0x2abe   :  { %v9942_v11 = vpop.f32.mrb[22].mxu0 }
0x2abf   :  { %v9944_v14 = vpop.f32.mrb[23].mxu0 }
0x2ac0   :  { %8351 = vmatmul.mubr.msk.f32.vlgmr.msra.gmra.mrb[28].mxu1 %vm2922_vm11, %v9936_v7 }
0x2ac1   :  { %8353 = vmatprep.mubr.msk.f32.mxu1 %vm2922_vm11, %v9944_v14 }
0x2ac4   :  { %8354 = vmatmul.mubr.msk.f32.gmra.mrb[30].mxu1 %vm2922_vm11, %v9942_v11 }
0x2b16   :  { %v8992_v10 = vpop.permute.xlu1 %8991 }
0x2b17   :  { %v8994_v21 = vunpack.i.h.bf16 %v8992_v10  ;;  %v8993_v22 = vunpack.i.l.bf16 %v8992_v10 }
0x2b19   :  { %v8758_v24 = vpack.c.bf16 %v8994_v21, %v8993_v22 }
0x2b1a   :  { %v8997_v25 = vpop.permute.xlu1 %8996 }
0x2b1b   :  { %8759 = vmatprep.subr.bf16.mxu0 %v8758_v24  ;;  %v8999_v29 = vunpack.i.h.bf16 %v8997_v25  ;;  %v8998_v2 = vunpack.i.l.bf16 %v8997_v25 }
0x2b1c   :  { %8761 = vmatpush3.bf16.msra.mxu0 %v8758_v24 }
0x2b1d   :  { %v9954_v35 = vpack.c.bf16 %v8999_v29, %v8998_v2 }
0x2b1e   :  { %v9002_v28 = vpop.permute.xlu0 %9001 }
0x2b1f   :  { %v9004_v30 = vunpack.i.h.bf16 %v9002_v28  ;;  %v9003_v31 = vunpack.i.l.bf16 %v9002_v28  ;;  %v9952_v32 = vpop.permute.xlu1 %9006 }
0x2b21   :  { %v8762_v34 = vpack.c.bf16 %v9004_v30, %v9003_v31 }
0x2b23   :  { %8763 = vmatprep.subr.bf16.mxu0 %v8762_v34  ;;  %v9017_v36 = vpop.permute.xlu0 %9016 }
0x2b24   :  { %8765 = vmatpush3.bf16.msra.mxu0 %v8762_v34  ;;  %v9012_v38 = vpop.permute.xlu1 %9011  ;;  %v9019_v19 = vunpack.i.h.bf16 %v9017_v36  ;;  %v9018_v40 = vunpack.i.l.bf16 %v9017_v36 }
0x2b25   :  { %8776 = vmatprep.subr.msk.bf16.mxu0 %vm9876_vm12, %v9954_v35  ;;  %v9014_v39 = vunpack.i.h.bf16 %v9012_v38  ;;  %v9013_v58 = vunpack.i.l.bf16 %v9012_v38 }
0x2b26   :  { %v9959_v48 = vpack.c.bf16 %v9019_v19, %v9018_v40 }
0x2b27   :  { %v9022_v41 = vpop.permute.xlu0 %9021  ;;  %v8766_v27 = vpack.c.bf16 %v9014_v39, %v9013_v58 }
0x2b28   :  { %v9024_v42 = vunpack.i.h.bf16 %v9022_v41  ;;  %v9023_v37 = vunpack.i.l.bf16 %v9022_v41  ;;  %v9976_v36 = vpop.permute.xlu1 %9026 }
0x2b29   :  { %8767 = vmatprep.subr.bf16.mxu1 %v8766_v27 }
0x2b2a   :  { %8769 = vmatpush3.bf16.msra.mxu1 %v8766_v27  ;;  %v8770_v46 = vpack.c.bf16 %v9024_v42, %v9023_v37 }
0x2b2c   :  { %8771 = vmatprep.subr.bf16.mxu1 %v8770_v46 }
0x2b2e   :  { %8773 = vmatpush3.bf16.msra.mxu1 %v8770_v46 }
0x2b2f   :  { %8788 = vmatprep.subr.msk.bf16.mxu1 %vm9876_vm12, %v9959_v48 }
0x2b87   :  { %v8338_v49 = vpop.f32.mrb[24].mxu0 }
0x2b88   :  { %v3142_v6 = vmul.f32 0.5, %v8338_v49  ;;  %v3013_v26 = vpop.f32.mrb[25].mxu0 }
0x2b89   :  { %v3141_v52 = vmul.f32 0.5, %v3013_v26 }
0x2b8a   :  { %v3152_v53 = vsel %vm153_vm3, %v3142_v6, -inf }
0x2b8b   :  { %3153 = vmax.xlane.f32.xlu1 %v3152_v53  ;;  %v3149_v54 = vsel %vm153_vm3, %v3141_v52, -inf }
0x2b8c   :  { %3150 = vmax.xlane.f32.xlu0 %v3149_v54  ;;  %v8341_v44 = vpop.f32.mrb[26].mxu0 }
0x2b8d   :  { %v3144_v61 = vmul.f32 0.5, %v8341_v44  ;;  %v3023_v12 = vpop.f32.mrb[27].mxu0 }
0x2b8e   :  { %v3143_v47 = vmul.f32 0.5, %v3023_v12 }
0x2b8f   :  { %v3158_v18 = vsel %vm153_vm3, %v3144_v61, -inf }
0x2b90   :  { %3159 = vmax.xlane.f32.xlu0 %v3158_v18  ;;  %v3155_v60 = vsel %vm153_vm3, %v3143_v47, -inf }
0x2b91   :  { %3156 = vmax.xlane.f32.xlu1 %v3155_v60 }
0x2b93   :  { %v8352_v63 = vpop.f32.mrb[28].mxu1 }
0x2b94   :  { %v3146_v10 = vmul.f32 0.5, %v8352_v63  ;;  %v3122_v21 = vpop.f32.mrb[29].mxu1 }
0x2b95   :  { %v3145_v22 = vmul.f32 0.5, %v3122_v21 }
0x2b96   :  { %v3164_v24 = vsel %vm153_vm3, %v3146_v10, -inf }
0x2b97   :  { %3165 = vmax.xlane.f32.xlu0 %v3164_v24  ;;  %v8355_v25 = vpop.f32.mrb[30].mxu1  ;;  %v3161_v29 = vsel %vm153_vm3, %v3145_v22, -inf }
0x2b98   :  { %v3148_v28 = vmul.f32 0.5, %v8355_v25  ;;  %v3132_v2 = vpop.f32.mrb[31].mxu1 }
0x2b99   :  { %v3147_v31 = vmul.f32 0.5, %v3132_v2 }
0x2b9a   :  { %v3170_v30 = vsel %vm153_vm3, %v3148_v28, -inf }
0x2b9b   :  { %3162 = vmax.xlane.f32.xlu0 %v3161_v29  ;;  %v3167_v34 = vsel %vm153_vm3, %v3147_v31, -inf }
0x2b9f   :  { %3171 = vmax.xlane.f32.xlu0 %v3170_v30 }
0x2ba2   :  { %3457 = vrot.lane.b32.xlu1 %v9900_v55, %s9418_s22 }
0x2bb5   :  { %3455 = vrot.lane.b32.xlu0 %v9904_v57, %s9418_s22 }
0x2bc6   :  { %3168 = vmax.xlane.f32.xlu1 %v3167_v34 }
0x2c18   :  { %v3154_v38 = vpop.xlane.xlu1 %3153 }
0x2c19   :  { %v3174_v39 = vsub.f32 %v3142_v6, %v3154_v38  ;;  %v3151_v58 = vpop.xlane.xlu0 %3150 }
0x2c1a   :  { %v3173_v19 = vsub.f32 %v3141_v52, %v3151_v58 }
0x2c1b   :  { %v3183_v40 = vmul.f32 1.442695, %v3174_v39 }
0x2c1c   :  { %v3181_v41 = vmul.f32 1.442695, %v3173_v19 }
0x2c1d   :  { %9180 = vpow2.f32 %v3183_v40  ;;  %v3160_v27 = vpop.xlane.xlu0 %3159 }
0x2c1e   :  { %9182 = vpow2.f32 %v3181_v41  ;;  %v3176_v42 = vsub.f32 %v3144_v61, %v3160_v27  ;;  %v3157_v55 = vpop.xlane.xlu1 %3156 }
0x2c1f   :  { %v3175_v37 = vsub.f32 %v3143_v47, %v3157_v55  ;;  %v9008_v55 = vunpack.i.l.bf16 %v9952_v32 }
0x2c20   :  { %v3187_v46 = vmul.f32 1.442695, %v3176_v42  ;;  %v9009_v42 = vunpack.i.h.bf16 %v9952_v32 }
0x2c21   :  { %v3185_v57 = vmul.f32 1.442695, %v3175_v37 }
0x2c22   :  { %9184 = vpow2.f32 %v3187_v46 }
0x2c23   :  { %9186 = vpow2.f32 %v3185_v57  ;;  %v8780_v57 = vpack.c.bf16 %v9009_v42, %v9008_v55 }
0x2c24   :  { %v3166_v49 = vpop.xlane.xlu0 %3165 }
0x2c25   :  { %v3178_v26 = vsub.f32 %v3146_v10, %v3166_v49 }
0x2c27   :  { %v9181_v53 = vpop.eup %9180  ;;  %v3191_v54 = vmul.f32 1.442695, %v3178_v26 }
0x2c28   :  { %v9183_v44 = vpop.eup %9182  ;;  %v3200_v6 = vsel %vm153_vm3, %v9181_v53, 0.0  ;;  %v3163_v10 = vpop.xlane.xlu0 %3162 }
0x2c29   :  { %9188 = vpow2.f32 %v3191_v54  ;;  %3201 = vadd.xlane.f32.xlu0 %v3200_v6  ;;  %v3197_v52 = vsel %vm153_vm3, %v9183_v44, 0.0  ;;  %v3177_v21 = vsub.f32 %v3145_v22, %v3163_v10 }
0x2c2a   :  { %3198 = vadd.xlane.f32.xlu1 %v3197_v52 }
0x2c2b   :  { %v3189_v25 = vmul.f32 1.442695, %v3177_v21 }
0x2c2c   :  { %v9185_v12 = vpop.eup %9184  ;;  %v3172_v24 = vpop.xlane.xlu0 %3171 }
0x2c2d   :  { %v9187_v61 = vpop.eup %9186  ;;  %v3206_v47 = vsel %vm153_vm3, %v9185_v12, 0.0  ;;  %v3180_v29 = vsub.f32 %v3148_v28, %v3172_v24  ;;  %9190 = vpow2.f32 %v3189_v25 }
0x2c2e   :  { %3207 = vadd.xlane.f32.xlu0 %v3206_v47  ;;  %v3203_v18 = vsel %vm153_vm3, %v9187_v61, 0.0 }
0x2c2f   :  { %3204 = vadd.xlane.f32.xlu1 %v3203_v18  ;;  %v3195_v2 = vmul.f32 1.442695, %v3180_v29 }
0x2c30   :  { %v3456_v40 = vpop.permute.xlu0 %3455 }
0x2c31   :  { %9192 = vpow2.f32 %v3195_v2 }
0x2c33   :  { %v9982_v60 = vpop.eup %9188 }
0x2c34   :  { %v3212_v63 = vsel %vm153_vm3, %v9982_v60, 0.0 }
0x2c35   :  { %3213 = vadd.xlane.f32.xlu0 %v3212_v63 }
0x2c37   :  { %v9191_v30 = vpop.eup %9190 }
0x2c38   :  { %v3209_v34 = vsel %vm153_vm3, %v9191_v30, 0.0 }
0x2c3b   :  { %v9991_v38 = vpop.eup %9192 }
0x2c40   :  { %3461 = vrot.lane.b32.xlu1 %v9924_v1, %s9418_s22  ;;  %v3218_v1 = vsel %vm153_vm3, %v9991_v38, 0.0 }
0x2c4b   :  { %3459 = vrot.lane.b32.xlu0 %v9928_v5, %s9418_s22  ;;  %v3458_v5 = vpop.permute.xlu1 %3457 }
0x2c53   :  { %v3169_v22 = vpop.xlane.xlu1 %3168 }
0x2c54   :  { %v3179_v28 = vsub.f32 %v3147_v31, %v3169_v22 }
0x2c56   :  { %v3193_v39 = vmul.f32 1.442695, %v3179_v28 }
0x2c58   :  { %9194 = vpow2.f32 %v3193_v39 }
0x2c62   :  { %v9195_v58 = vpop.eup %9194 }
0x2c63   :  { %v3215_v19 = vsel %vm153_vm3, %v9195_v58, 0.0 }
0x2c64   :  { %3210 = vadd.xlane.f32.xlu1 %v3209_v34 }
0x2c6a   :  { %3219 = vadd.xlane.f32.xlu0 %v3218_v1 }
0x2c75   :  { %3574 = vrot.lane.b32.xlu1 %v9936_v7, %s9418_s22 }
0x2c80   :  { %3572 = vrot.lane.b32.xlu0 %v9938_v9, %s9418_s22 }
0x2c84   :  { %3576 = vrot.lane.b32.xlu0 %v9944_v14, %s9418_s22 }
0x2c99   :  { %3216 = vadd.xlane.f32.xlu1 %v3215_v19 }
0x2caa   :  { %3578 = vrot.lane.b32.xlu1 %v9942_v11, %s9418_s22 }
0x2cb6   :  { %v3202_v7 = vpop.xlane.xlu0 %3201 }
0x2cb7   :  { %9196 = vrcp.f32 %v3202_v7  ;;  %v3199_v41 = vpop.xlane.xlu1 %3198 }
0x2cb8   :  { %9198 = vrcp.f32 %v3199_v41 }
0x2cbb   :  { %v3208_v27 = vpop.xlane.xlu0 %3207 }
0x2cbc   :  { %9200 = vrcp.f32 %v3208_v27  ;;  %v3205_v9 = vpop.xlane.xlu1 %3204 }
0x2cbd   :  { %9202 = vrcp.f32 %v3205_v9 }
0x2cc1   :  { %v9197_v31 = vpop.eup %9196 }
0x2cc2   :  { %v9199_v14 = vpop.eup %9198  ;;  %v3224_v46 = vmul.f32 %v9197_v31, %v9181_v53  ;;  %v3214_v32 = vpop.xlane.xlu0 %3213 }
0x2cc3   :  { %v3222_v37 = vmul.f32 %v9199_v14, %v9183_v44  ;;  %9204 = vrcp.f32 %v3214_v32 }
0x2cc5   :  { %8364 = vmatprep.mubr.msk.f32.mxu0 %vm153_vm3, %v3222_v37 }
0x2cc6   :  { %v9201_v11 = vpop.eup %9200  ;;  %8365 = vmatmul.mubr.msk.f32.vlgmr.msra.gmra.mrb[28].mxu0 %vm153_vm3, %v3224_v46  ;;  %v3460_v53 = vpop.permute.xlu0 %3459 }
0x2cc7   :  { %v9203_v49 = vpop.eup %9202  ;;  %8779 = vmatpush3.bf16.xpose.msk.msra.mxu0 %vm9876_vm12, %v9954_v35  ;;  %v3228_v54 = vmul.f32 %v9201_v11, %v9185_v12  ;;  %v3462_v35 = vpop.permute.xlu1 %3461  ;;  %v9029_v12 = vunpack.i.h.bf16 %v9976_v36 }
0x2cc8   :  { %8782 = vmatprep.subr.msk.bf16.mxu0 %vm9876_vm12, %v8780_v57  ;;  %v3226_v26 = vmul.f32 %v9203_v49, %v9187_v61  ;;  %v9028_v61 = vunpack.i.l.bf16 %v9976_v36 }
0x2cca   :  { %8367 = vmatprep.mubr.msk.f32.mxu0 %vm153_vm3, %v3226_v26  ;;  %v8792_v63 = vpack.c.bf16 %v9029_v12, %v9028_v61 }
0x2ccb   :  { %8368 = vmatmul.mubr.msk.f32.gmra.mrb[30].mxu0 %vm153_vm3, %v3228_v54 }
0x2ccc   :  { %8392 = vmatprep.mubr.msk.f32.mxu0 %vm2922_vm11, %v3456_v40 }
0x2ccd   :  { %v9205_v6 = vpop.eup %9204 }
0x2cce   :  { %v3232_v18 = vmul.f32 %v9205_v6, %v9982_v60 }
0x2ccf   :  { %8785 = vmatpush3.bf16.xpose.msk.msra.mxu0 %vm9876_vm12, %v8780_v57 }
0x2cd6   :  { %8393 = vmatmul.mubr.msk.f32.vlgmr.msra.gmra.mrb[32].mxu0 %vm2922_vm11, %v3458_v5 }
0x2cd7   :  { %8395 = vmatprep.mubr.msk.f32.mxu0 %vm2922_vm11, %v3460_v53 }
0x2cda   :  { %8396 = vmatmul.mubr.msk.f32.gmra.mrb[34].mxu0 %vm2922_vm11, %v3462_v35 }
0x2cf1   :  { %v3211_v44 = vpop.xlane.xlu1 %3210 }
0x2cf2   :  { %9206 = vrcp.f32 %v3211_v44 }
0x2cf5   :  { %v3575_v10 = vpop.permute.xlu1 %3574 }
0x2cf7   :  { %v3220_v36 = vpop.xlane.xlu0 %3219 }
0x2cf8   :  { %9208 = vrcp.f32 %v3220_v36 }
0x2cfb   :  { %v3573_v29 = vpop.permute.xlu0 %3572 }
0x2cfc   :  { %v9207_v52 = vpop.eup %9206 }
0x2cfd   :  { %v3230_v47 = vmul.f32 %v9207_v52, %v9191_v30 }
0x2cff   :  { %8378 = vmatprep.mubr.msk.f32.mxu1 %vm153_vm3, %v3230_v47 }
0x2d00   :  { %8379 = vmatmul.mubr.msk.f32.vlgmr.msra.gmra.mrb[32].mxu1 %vm153_vm3, %v3232_v18 }
0x2d01   :  { %8791 = vmatpush3.bf16.xpose.msk.msra.mxu1 %vm9876_vm12, %v9959_v48  ;;  %v3577_v48 = vpop.permute.xlu0 %3576 }
0x2d02   :  { %8794 = vmatprep.subr.msk.bf16.mxu1 %vm9876_vm12, %v8792_v63  ;;  %v9209_v60 = vpop.eup %9208 }
0x2d03   :  { %v3236_v2 = vmul.f32 %v9209_v60, %v9991_v38 }
0x2d09   :  { %8797 = vmatpush3.bf16.xpose.msk.msra.mxu1 %vm9876_vm12, %v8792_v63 }
0x2d26   :  { %v3217_v21 = vpop.xlane.xlu1 %3216 }
0x2d27   :  { %9210 = vrcp.f32 %v3217_v21 }
0x2d2a   :  { %v3579_v43 = vpop.permute.xlu1 %3578 }
0x2d31   :  { %v9211_v24 = vpop.eup %9210 }
0x2d32   :  { %v3234_v25 = vmul.f32 %v9211_v24, %v9195_v58 }
0x2d34   :  { %8381 = vmatprep.mubr.msk.f32.mxu1 %vm153_vm3, %v3234_v25 }
0x2d35   :  { %8382 = vmatmul.mubr.msk.f32.gmra.mrb[34].mxu1 %vm153_vm3, %v3236_v2 }
0x2d36   :  { %8406 = vmatprep.mubr.msk.f32.mxu1 %vm2922_vm11, %v3573_v29 }
0x2d39   :  { %8407 = vmatmul.mubr.msk.f32.vlgmr.msra.gmra.mrb[36].mxu1 %vm2922_vm11, %v3575_v10 }
0x2d3a   :  { %8409 = vmatprep.mubr.msk.f32.mxu1 %vm2922_vm11, %v3577_v48 }
0x2d3d   :  { %8410 = vmatmul.mubr.msk.f32.gmra.mrb[38].mxu1 %vm2922_vm11, %v3579_v43 }
0x2d99   :  { %v10040_v30 = vpop.f32.mrb[28].mxu0 }
0x2d9a   :  { %v10042_v34 = vpop.f32.mrb[29].mxu0 }
0x2d9e   :  { %v10044_v1 = vpop.f32.mrb[30].mxu0 }
0x2d9f   :  { %v10046_v38 = vpop.f32.mrb[31].mxu0 }
0x2da9   :  { %v8394_v5 = vpop.f32.mrb[32].mxu0 }
0x2daa   :  { %v3690_v22 = vmul.f32 0.5, %v8394_v5  ;;  %v3553_v28 = vpop.f32.mrb[33].mxu0 }
0x2dab   :  { %v3689_v39 = vmul.f32 0.5, %v3553_v28 }
0x2dac   :  { %v3700_v58 = vsel %vm153_vm3, %v3690_v22, -inf }
0x2dad   :  { %3701 = vmax.xlane.f32.xlu1 %v3700_v58  ;;  %v8397_v19 = vpop.f32.mrb[34].mxu0  ;;  %v3697_v40 = vsel %vm153_vm3, %v3689_v39, -inf }
0x2dae   :  { %3698 = vmax.xlane.f32.xlu0 %v3697_v40  ;;  %v3563_v7 = vpop.f32.mrb[35].mxu0  ;;  %v3692_v27 = vmul.f32 0.5, %v8397_v19 }
0x2daf   :  { %v3691_v41 = vmul.f32 0.5, %v3563_v7 }
0x2db0   :  { %v3706_v31 = vsel %vm153_vm3, %v3692_v27, -inf }
0x2db1   :  { %v3703_v9 = vsel %vm153_vm3, %v3691_v41, -inf }
0x2db2   :  { %3704 = vmax.xlane.f32.xlu0 %v3703_v9 }
0x2db6   :  { %3707 = vmax.xlane.f32.xlu0 %v3706_v31 }
0x2dd3   :  { %v10052_v14 = vpop.f32.mrb[32].mxu1 }
0x2dd4   :  { %v10054_v42 = vpop.f32.mrb[33].mxu1 }
0x2e08   :  { %v10056_v55 = vpop.f32.mrb[34].mxu1 }
0x2e09   :  { %v10058_v37 = vpop.f32.mrb[35].mxu1 }
0x2e0c   :  { %v8408_v46 = vpop.f32.mrb[36].mxu1 }
0x2e0d   :  { %v3694_v11 = vmul.f32 0.5, %v8408_v46  ;;  %v3670_v57 = vpop.f32.mrb[37].mxu1 }
0x2e0e   :  { %v3693_v49 = vmul.f32 0.5, %v3670_v57 }
0x2e0f   :  { %v3712_v26 = vsel %vm153_vm3, %v3694_v11, -inf }
0x2e10   :  { %v8411_v54 = vpop.f32.mrb[38].mxu1  ;;  %3713 = vmax.xlane.f32.xlu0 %v3712_v26  ;;  %v3709_v32 = vsel %vm153_vm3, %v3693_v49, -inf }
0x2e11   :  { %v3696_v53 = vmul.f32 0.5, %v8411_v54  ;;  %v3680_v35 = vpop.f32.mrb[39].mxu1  ;;  %3710 = vmax.xlane.f32.xlu1 %v3709_v32 }
0x2e12   :  { %v10062_v44 = vmul.f32 0.5, %v3680_v35 }
0x2e13   :  { %v3718_v6 = vsel %vm153_vm3, %v3696_v53, -inf }
0x2e14   :  { %3719 = vmax.xlane.f32.xlu0 %v3718_v6  ;;  %v3715_v52 = vsel %vm153_vm3, %v10062_v44, -inf }
0x2e15   :  { %3716 = vmax.xlane.f32.xlu1 %v3715_v52 }
0x2e26   :  { %9031 = vrot.lane.b32.xlu1 %v9880_v45, %s9419_s23 }
0x2e3a   :  { %v3702_v12 = vpop.xlane.xlu1 %3701 }
0x2e3b   :  { %v3722_v61 = vsub.f32 %v3690_v22, %v3702_v12  ;;  %v3699_v47 = vpop.xlane.xlu0 %3698 }
0x2e3c   :  { %v3721_v18 = vsub.f32 %v3689_v39, %v3699_v47 }
0x2e3d   :  { %v3731_v63 = vmul.f32 1.442695, %v3722_v61 }
0x2e3e   :  { %v3729_v10 = vmul.f32 1.442695, %v3721_v18 }
0x2e3f   :  { %9212 = vpow2.f32 %v3731_v63  ;;  %v3705_v36 = vpop.xlane.xlu0 %3704 }
0x2e40   :  { %9214 = vpow2.f32 %v3729_v10  ;;  %v3723_v21 = vsub.f32 %v3691_v41, %v3705_v36 }
0x2e42   :  { %v3733_v60 = vmul.f32 1.442695, %v3723_v21 }
0x2e43   :  { %v3708_v24 = vpop.xlane.xlu0 %3707 }
0x2e44   :  { %9216 = vpow2.f32 %v3733_v60  ;;  %v3724_v25 = vsub.f32 %v3692_v27, %v3708_v24 }
0x2e46   :  { %v3735_v29 = vmul.f32 1.442695, %v3724_v25 }
0x2e48   :  { %9218 = vpow2.f32 %v3735_v29 }
0x2e49   :  { %v10069_v2 = vpop.eup %9212 }
0x2e4a   :  { %v9215_v48 = vpop.eup %9214  ;;  %v3748_v45 = vsel %vm153_vm3, %v10069_v2, 0.0 }
0x2e4b   :  { %3749 = vadd.xlane.f32.xlu0 %v3748_v45  ;;  %v3745_v43 = vsel %vm153_vm3, %v9215_v48, 0.0 }
0x2e4c   :  { %3746 = vadd.xlane.f32.xlu1 %v3745_v43 }
0x2e4e   :  { %v10074_v5 = vpop.eup %9216 }
0x2e4f   :  { %v3751_v22 = vsel %vm153_vm3, %v10074_v5, 0.0 }
0x2e50   :  { %3752 = vadd.xlane.f32.xlu1 %v3751_v22 }
0x2e52   :  { %v10078_v28 = vpop.eup %9218 }
0x2e53   :  { %v3754_v39 = vsel %vm153_vm3, %v10078_v28, 0.0 }
0x2e54   :  { %3755 = vadd.xlane.f32.xlu0 %v3754_v39 }
0x2e9d   :  { %v3714_v58 = vpop.xlane.xlu0 %3713 }
0x2e9e   :  { %v3726_v19 = vsub.f32 %v3694_v11, %v3714_v58  ;;  %v3711_v40 = vpop.xlane.xlu1 %3710 }
0x2e9f   :  { %v3725_v7 = vsub.f32 %v3693_v49, %v3711_v40 }
0x2ea0   :  { %v3739_v41 = vmul.f32 1.442695, %v3726_v19 }
0x2ea1   :  { %v3737_v27 = vmul.f32 1.442695, %v3725_v7  ;;  %v3720_v9 = vpop.xlane.xlu0 %3719 }
0x2ea2   :  { %9220 = vpow2.f32 %v3739_v41  ;;  %v3728_v31 = vsub.f32 %v3696_v53, %v3720_v9  ;;  %v3717_v46 = vpop.xlane.xlu1 %3716 }
0x2ea3   :  { %9222 = vpow2.f32 %v3737_v27  ;;  %v3727_v61 = vsub.f32 %v10062_v44, %v3717_v46 }
0x2ea4   :  { %v3743_v57 = vmul.f32 1.442695, %v3728_v31 }
0x2ea5   :  { %v3741_v47 = vmul.f32 1.442695, %v3727_v61  ;;  %v4242_v61 = vld [vmem:[%s10901_s0 + $0x190] sm:$0xff] }
0x2ea6   :  { %9224 = vpow2.f32 %v3743_v57  ;;  %v9032_v26 = vpop.permute.xlu1 %9031 }
0x2ea7   :  { %v9034_v54 = vunpack.i.h.bf16 %v9032_v26  ;;  %v9033_v32 = vunpack.i.l.bf16 %v9032_v26  ;;  %9226 = vpow2.f32 %v3741_v47 }
0x2ea9   :  { %v8798_v35 = vpack.c.bf16 %v9034_v54, %v9033_v32 }
0x2eab   :  { %8799 = vmatprep.subr.bf16.mxu0 %v8798_v35 }
0x2eac   :  { %v10082_v6 = vpop.eup %9220  ;;  %8801 = vmatpush3.bf16.msra.mxu0 %v8798_v35  ;;  %v4240_v35 = vld [vmem:[%s10901_s0 + $0x170] sm:$0xff] }
0x2ead   :  { %v9223_v11 = vpop.eup %9222  ;;  %v3760_v49 = vsel %vm153_vm3, %v10082_v6, 0.0 }
0x2eae   :  { %3761 = vadd.xlane.f32.xlu0 %v3760_v49  ;;  %v3757_v52 = vsel %vm153_vm3, %v9223_v11, 0.0 }
0x2eaf   :  { %3758 = vadd.xlane.f32.xlu1 %v3757_v52 }
0x2eb0   :  { %v10087_v53 = vpop.eup %9224 }
0x2eb1   :  { %v3766_v12 = vsel %vm153_vm3, %v10087_v53, 0.0  ;;  %v9227_v63 = vpop.eup %9226 }
0x2eb2   :  { %3767 = vadd.xlane.f32.xlu0 %v3766_v12  ;;  %v3763_v10 = vsel %vm153_vm3, %v9227_v63, 0.0  ;;  %v4241_v12 = vld [vmem:[%s10901_s0 + $0x180] sm:$0xff] }
0x2ec0   :  { %9041 = vrot.lane.b32.xlu1 %v9902_v56, %s9419_s23 }
0x2ec8   :  { %9036 = vrot.lane.b32.xlu0 %v9890_v51, %s9419_s23 }
0x2ed8   :  { %v3750_v56 = vpop.xlane.xlu0 %3749 }
0x2ed9   :  { %v3747_v18 = vpop.xlane.xlu1 %3746 }
0x2eda   :  { %9228 = vrcp.f32 %v3747_v18 }
0x2edb   :  { %9230 = vrcp.f32 %v3750_v56  ;;  %v4320_v56 = vld [vmem:[%s10901_s0 + $0x1e0] sm:$0xff] }
0x2edd   :  { %v3753_v51 = vpop.xlane.xlu1 %3752 }
0x2ee1   :  { %v3756_v60 = vpop.xlane.xlu0 %3755 }
0x2ee4   :  { %v9229_v36 = vpop.eup %9228  ;;  %3764 = vadd.xlane.f32.xlu1 %v3763_v10  ;;  %v8818_v10 = vpack.c.bf16 %v4242_v61, %v4241_v12 }
0x2ee5   :  { %v3770_v21 = vmul.f32 %v9229_v36, %v9215_v48  ;;  %v9231_v19 = vpop.eup %9230  ;;  %v4317_v36 = vld [vmem:[%s10901_s0 + $0x1b0] sm:$0xff] }
0x2ee6   :  { %v3772_v27 = vmul.f32 %v9231_v19, %v10069_v2 }
0x2ee7   :  { %8420 = vmatprep.mubr.msk.f32.mxu0 %vm153_vm3, %v3770_v21  ;;  %v4318_v21 = vld [vmem:[%s10901_s0 + $0x1c0] sm:$0xff] }
0x2ef5   :  { %9046 = vrot.lane.b32.xlu1 %v9916_v0, %s9419_s23 }
0x2f3b   :  { %v3762_v24 = vpop.xlane.xlu0 %3761 }
0x2f3c   :  { %v3759_v44 = vpop.xlane.xlu1 %3758 }
0x2f3d   :  { %9232 = vrcp.f32 %v3759_v44  ;;  %v4395_v44 = vld [vmem:[%s10901_s0 + $0x200] sm:$0xff] }
0x2f3e   :  { %9234 = vrcp.f32 %v3753_v51  ;;  %v4414_v51 = vld [vmem:[%s10901_s0 + $0x40] sm:$0xff] }
0x2f3f   :  { %v3768_v25 = vpop.xlane.xlu0 %3767  ;;  %9236 = vrcp.f32 %v3756_v60 }
0x2f40   :  { %v9042_v29 = vpop.permute.xlu1 %9041  ;;  %9238 = vrcp.f32 %v3762_v24  ;;  %v4396_v24 = vld [vmem:[%s10901_s0 + $0x208] sm:$0xff] }
0x2f41   :  { %v9044_v45 = vunpack.i.h.bf16 %v9042_v29  ;;  %v9043_v43 = vunpack.i.l.bf16 %v9042_v29 }
0x2f43   :  { %v9037_v22 = vpop.permute.xlu0 %9036  ;;  %v8806_v48 = vpack.c.bf16 %v9044_v45, %v9043_v43  ;;  %v4400_v43 = vld [vmem:[%s10901_s0 + $0x228] sm:$0xff] }
0x2f44   :  { %v9039_v39 = vunpack.i.h.bf16 %v9037_v22  ;;  %v9038_v58 = vunpack.i.l.bf16 %v9037_v22  ;;  %v4402_v22 = vld [vmem:[%s10901_s0 + $0x238] sm:$0xff] }
0x2f45   :  { %8807 = vmatprep.subr.bf16.mxu1 %v8806_v48 }
0x2f46   :  { %8809 = vmatpush3.bf16.msra.mxu1 %v8806_v48  ;;  %v8802_v0 = vpack.c.bf16 %v9039_v39, %v9038_v58  ;;  %v10183_v48 = vpack.c.bf16 %v4402_v22, %v4400_v43  ;;  %v4399_v39 = vld [vmem:[%s10901_s0 + $0x220] sm:$0xff]  ;;  %v4401_v58 = vld [vmem:[%s10901_s0 + $0x230] sm:$0xff] }
0x2f47   :  { %v9233_v40 = vpop.eup %9232  ;;  %v10191_v19 = vpack.c.bf16 %v4401_v58, %v4399_v39 }
0x2f48   :  { %v9235_v7 = vpop.eup %9234  ;;  %8803 = vmatprep.subr.bf16.mxu0 %v8802_v0  ;;  %v3778_v41 = vmul.f32 %v9233_v40, %v9223_v11 }
0x2f49   :  { %8805 = vmatpush3.bf16.msra.mxu0 %v8802_v0  ;;  %v9237_v9 = vpop.eup %9236  ;;  %v3774_v31 = vmul.f32 %v9235_v7, %v10074_v5  ;;  %v4239_v5 = vld [vmem:[%s10901_s0 + $0x160] sm:$0xff]  ;;  %v4043_v0 = vld [vmem:[%s10901_s0 + $0x150] sm:$0xff] }
0x2f4a   :  { %8434 = vmatprep.mubr.msk.f32.mxu1 %vm153_vm3, %v3778_v41  ;;  %v3776_v46 = vmul.f32 %v9237_v9, %v10078_v28  ;;  %v9239_v11 = vpop.eup %9238  ;;  %v8815_v28 = vpack.c.bf16 %v4240_v35, %v4239_v5  ;;  %8440 = vmatprep.subr.mxu0 %v4043_v0 }
0x2f4b   :  { %v3780_v52 = vmul.f32 %v9239_v11, %v10082_v6 }
0x2f4c   :  { %8421 = vmatmul.mubr.msk.f32.vlgmr.msra.gmra.mrb[36].mxu0 %vm153_vm3, %v3772_v27 }
0x2f4d   :  { %8423 = vmatprep.mubr.msk.f32.mxu0 %vm153_vm3, %v3774_v31  ;;  %8441 = vmatpush3.msra.mxu0 %v4043_v0  ;;  %v4403_v0 = vld [vmem:[%s10901_s0 + $0x240] sm:$0xff] }
0x2f50   :  { %8424 = vmatmul.mubr.msk.f32.gmra.mrb[38].mxu0 %vm153_vm3, %v3776_v46 }
0x2f71   :  { %v3765_v57 = vpop.xlane.xlu1 %3764 }
0x2f72   :  { %9240 = vrcp.f32 %v3765_v57 }
0x2f73   :  { %9242 = vrcp.f32 %v3768_v25  ;;  %v4397_v25 = vld [vmem:[%s10901_s0 + $0x210] sm:$0xff] }
0x2f74   :  { %v10172_v45 = vpack.c.bf16 %v4397_v25, %v4395_v44 }
0x2f75   :  { %v9047_v26 = vpop.permute.xlu1 %9046 }
0x2f76   :  { %v9049_v54 = vunpack.i.h.bf16 %v9047_v26  ;;  %v9048_v2 = vunpack.i.l.bf16 %v9047_v26  ;;  %v4243_v26 = vld [vmem:[%s10901_s0 + $0x1a0] ss:$0 sm:$0xff] }
0x2f78   :  { %v8810_v32 = vpack.c.bf16 %v9049_v54, %v9048_v2 }
0x2f7a   :  { %8811 = vmatprep.subr.bf16.mxu1 %v8810_v32 }
0x2f7b   :  { %8813 = vmatpush3.bf16.msra.mxu1 %v8810_v32 }
0x2f7c   :  { %v9241_v49 = vpop.eup %9240  ;;  %8814 = vmatprep.subr.bf16.mxu1 %v9410_v3 }
0x2f7d   :  { %v9243_v47 = vpop.eup %9242  ;;  %v3782_v18 = vmul.f32 %v9241_v49, %v9227_v63  ;;  %v8821_v63 = vpack.c.bf16 %v4318_v21, %v4317_v36 }
0x2f7e   :  { %8435 = vmatmul.mubr.msk.f32.vlgmr.msra.gmra.mrb[40].mxu1 %vm153_vm3, %v3780_v52  ;;  %v3784_v6 = vmul.f32 %v9243_v47, %v10087_v53  ;;  %v4319_v53 = vld [vmem:[%s10901_s0 + $0x1d0] sm:$0xff] }
0x2f7f   :  { %8437 = vmatprep.mubr.msk.f32.mxu1 %vm153_vm3, %v3782_v18  ;;  %8816 = vmatpush3.bf16.msra.mxu1 %v8815_v28  ;;  %v8824_v60 = vpack.c.bf16 %v4320_v56, %v4319_v53 }
0x2f80   :  { %8817 = vmatprep.subr.bf16.mxu1 %v9410_v3 }
0x2f82   :  { %8438 = vmatmul.mubr.msk.f32.gmra.mrb[42].mxu1 %vm153_vm3, %v3784_v6 }
0x2f83   :  { %8819 = vmatpush3.bf16.msra.mxu1 %v8818_v10  ;;  %8462 = vmatprep.mubr.msk.f32.mxu1 %vm9411_vm1, %v9412_v4 }
0x2f84   :  { %8820 = vmatprep.subr.bf16.mxu1 %v9410_v3 }
0x2f86   :  { %8463 = vmatmul.mubr.msk.f32.vlgmr.msra.gmra.mrb[44].mxu1 %vm153_vm3, %v9706_v50  ;;  %v4408_v50 = vld [vmem:[%s10901_s0 + $0x290] sm:$0xff] }
0x2f87   :  { %8822 = vmatpush3.bf16.msra.mxu1 %v8821_v63  ;;  %8473 = vmatprep.mubr.msk.f32.mxu1 %vm9411_vm1, %v9412_v4 }
0x2f88   :  { %8823 = vmatprep.subr.bf16.mxu1 %v9410_v3 }
0x2f8b   :  { %8825 = vmatpush3.bf16.msra.mxu1 %v8824_v60 }
0x2f8c   :  { %8487 = vmatprep.subr.mxu1 %v9412_v4 }
0x2f8e   :  { %8474 = vmatmul.mubr.msk.f32.vlgmr.msra.gmra.mrb[46].mxu1 %vm153_vm3, %v9734_v20  ;;  %v4398_v20 = vld [vmem:[%s10901_s0 + $0x218] sm:$0xff] }
0x2f8f   :  { %8489 = vmatprep.mubr.msk.f32.mxu1 %vm9411_vm1, %v9412_v4  ;;  %8488 = vmatpush3.msra.mxu1 %v4408_v50  ;;  %v10170_v29 = vpack.c.bf16 %v4398_v20, %v4396_v24 }
0x2f91   :  { %8835 = vmatprep.subr.bf16.mxu1 %v10170_v29 }
0x2f92   :  { %8490 = vmatmul.mubr.msk.f32.vlgmr.msra.gmra.mrb[48].mxu1 %vm18_vm0, %v4414_v51 }
0x2f93   :  { %4662 = vmatprep.mubr.f32.mxu1 %v9412_v4  ;;  %8837 = vmatpush1.bf16.msra.mxu1 %v10172_v45 }
0x2f94   :  { %8839 = vmatprep.subr.bf16.mxu1 %v10183_v48 }
0x2f97   :  { %8841 = vmatpush1.bf16.msra.mxu1 %v10191_v19 }
0x2f98   :  { %8849 = vmatprep.subr.bf16.mxu1 %v10170_v29 }
0x301f   :  { %v8422_v40 = vpop.f32.mrb[36].mxu0 }
0x3020   :  { %4013 = vrot.lane.b32.xlu1 %v8422_v40, %s9420_s10  ;;  %v3875_v7 = vpop.f32.mrb[37].mxu0 }
0x3021   :  { %4011 = vrot.lane.b32.xlu0 %v3875_v7, %s9420_s10  ;;  %v4406_v7 = vld [vmem:[%s10901_s0 + $0x270] sm:$0xff] }
0x3023   :  { %v8425_v41 = vpop.f32.mrb[38].mxu0 }
0x3024   :  { %4017 = vrot.lane.b32.xlu1 %v8425_v41, %s9420_s10  ;;  %v3885_v27 = vpop.f32.mrb[39].mxu0 }
0x3025   :  { %4015 = vrot.lane.b32.xlu0 %v3885_v27, %s9420_s10 }
0x3051   :  { %v8436_v9 = vpop.f32.mrb[40].mxu1 }
0x3052   :  { %v3984_v31 = vpop.f32.mrb[41].mxu1  ;;  %4021 = vrot.lane.b32.xlu1 %v8436_v9, %s9420_s10 }
0x3053   :  { %4019 = vrot.lane.b32.xlu0 %v3984_v31, %s9420_s10 }
0x3055   :  { %v8439_v46 = vpop.f32.mrb[42].mxu1 }
0x3056   :  { %v3994_v57 = vpop.f32.mrb[43].mxu1  ;;  %4025 = vrot.lane.b32.xlu1 %v8439_v46, %s9420_s10 }
0x3057   :  { %4023 = vrot.lane.b32.xlu0 %v3994_v57, %s9420_s10 }
0x3059   :  { %v4312_v54 = vpop.f32.mrb[44].mxu1 }
0x305a   :  { %v4313_v2 = vadd.f32 %v4312_v54, %v4243_v26  ;;  %v8464_v32 = vpop.f32.mrb[45].mxu1 }
0x305c   :  { %9244 = vtanh.f32 %v4313_v2 }
0x3061   :  { %v10202_v5 = vpop.f32.mrb[46].mxu1 }
0x3062   :  { %v8475_v35 = vpop.f32.mrb[47].mxu1 }
0x3066   :  { %v9245_v11 = vpop.eup %9244 }
0x3067   :  { %7820 = vmatmul.mubr.msk.f32.vlgmr.msra.gmra.mrb[50].mxu1 %vm153_vm3, %v9245_v11 }
0x3068   :  { %8851 = vmatpush1.bf16.msra.mxu1 %v10172_v45  ;;  %4987 = vmatprep.mubr.f32.mxu1 %v9412_v4 }
0x3069   :  { %8853 = vmatprep.subr.bf16.mxu1 %v10183_v48 }
0x306c   :  { %8855 = vmatpush1.bf16.msra.mxu1 %v10191_v19 }
0x306d   :  { %8863 = vmatprep.subr.bf16.mxu1 %v10170_v29 }
0x3092   :  { %v4014_v28 = vpop.permute.xlu1 %4013 }
0x3093   :  { %v4012_v49 = vpop.permute.xlu0 %4011  ;;  %v4036_v12 = vsel %vm2922_vm11, %v10040_v30, %v4014_v28  ;;  %v4413_v30 = vld [vmem:[%s10901_s0 + $0x2e0] ss:$0 sm:$0xff] }
0x3094   :  { %v4035_v52 = vsel %vm2922_vm11, %v10042_v34, %v4012_v49  ;;  %v4565_v34 = vpop.f32.mrb[48].mxu1 }
0x3095   :  { %8442 = vmatprep.mubr.msk.f32.mxu0 %vm18_vm0, %v4035_v52  ;;  %v4566_v6 = vadd.f32 %v4565_v34, %v4413_v30  ;;  %v8491_v36 = vpop.f32.mrb[49].mxu1 }
0x3096   :  { %8443 = vmatmul.mubr.msk.f32.vlgmr.msra.gmra.mrb[40].mxu0 %vm18_vm0, %v4036_v12  ;;  %v4018_v61 = vpop.permute.xlu1 %4017 }
0x3097   :  { %v4016_v47 = vpop.permute.xlu0 %4015  ;;  %v4038_v10 = vsel %vm2922_vm11, %v10044_v1, %v4018_v61  ;;  %v4570_v21 = vcombine.high %v4566_v6, %v4566_v6  ;;  %v4577_v63 = vrot.slane %v4566_v6, %v9492_v17  ;;  %7818 = vst.sshfl [vmem:[#allocation6] sm:$0x3 pattern:$0x76325410] %v4566_v6 }
0x3098   :  { %v4037_v18 = vsel %vm2922_vm11, %v10046_v38, %v4016_v47  ;;  %v10280_v47 = vld [vmem:[%s10901_s0 + $0x280] ss:$0 sm:$0xff] }
0x3099   :  { %8445 = vmatprep.mubr.msk.f32.mxu0 %vm18_vm0, %v4037_v18  ;;  %v4584_v38 = vrot.slane %v4570_v21, %v9492_v17  ;;  %v4585_v53 = vcombine.high %v4577_v63, %v4577_v63  ;;  %7819 = vst.sshfl [vmem:[#allocation6 + $0x4] sm:$0x3 pattern:$0x76325410] %v4570_v21  ;;  %v4717_v21 = vand.u32 127, %v106_v13  ;;  %v10295_v13 = vsub.s32 1, %v9486_v15 }
0x309a   :  { %8446 = vmatmul.mubr.msk.f32.gmra.mrb[42].mxu0 %vm18_vm0, %v4038_v10 }
0x309b   :  { %v4586_v1 = vcombine.high %v4584_v38, %v4584_v38  ;;  %4592 = vst [vmem:[#allocation6 + $0x2] sm:$0x3] %v4585_v53  ;;  %v10288_v63 = vsub.s32 %v4717_v21, %v9486_v15 }
0x309d   :  { %4594 = vst [vmem:[#allocation6 + $0x6] sm:$0x3] %v4586_v1 }
0x30c4   :  { %v4022_v56 = vpop.permute.xlu1 %4021 }
0x30c5   :  { %v4020_v60 = vpop.permute.xlu0 %4019  ;;  %v4040_v51 = vsel %vm2922_vm11, %v10052_v14, %v4022_v56 }
0x30c6   :  { %v4039_v50 = vsel %vm2922_vm11, %v10054_v42, %v4020_v60 }
0x30c7   :  { %8448 = vmatprep.mubr.msk.f32.mxu0 %vm18_vm0, %v4039_v50 }
0x30c8   :  { %v4026_v24 = vpop.permute.xlu1 %4025  ;;  %8449 = vmatmul.mubr.msk.f32.gmra.mrb[44].mxu0 %vm18_vm0, %v4040_v51  ;;  %v9421_v51 = vmov 0  }
0x30c9   :  { %v4024_v20 = vpop.permute.xlu0 %4023  ;;  %v4042_v25 = vsel %vm2922_vm11, %v10056_v55, %v4026_v24  ;;  %v4404_v55 = vld [vmem:[%s10901_s0 + $0x250] sm:$0xff] }
0x30ca   :  { %v4041_v44 = vsel %vm2922_vm11, %v10058_v37, %v4024_v20  ;;  %v4405_v37 = vld [vmem:[%s10901_s0 + $0x260] sm:$0xff]  ;;  %v8826_v40 = vpack.c.bf16 %v4404_v55, %v4403_v0 }
0x30cb   :  { %8451 = vmatprep.mubr.msk.f32.mxu0 %vm18_vm0, %v4041_v44  ;;  %v8830_v41 = vpack.c.bf16 %v4406_v7, %v4405_v37 }
0x30cc   :  { %8452 = vmatmul.mubr.msk.f32.gmra.mrb[46].mxu0 %vm18_vm0, %v4042_v25  ;;  %8827 = vmatprep.subr.bf16.mxu0 %v8826_v40 }
0x30cd   :  { %8829 = vmatpush3.bf16.msra.mxu0 %v8826_v40 }
0x30ce   :  { %8831 = vmatprep.subr.bf16.mxu0 %v8830_v41 }
0x30d1   :  { %8833 = vmatpush3.bf16.msra.mxu0 %v8830_v41 }
0x30d2   :  { %8842 = vmatprep.subr.bf16.mxu0 %v9410_v3 }
0x313a   :  { %v10239_v42 = vpop.f32.mrb[50].mxu1 }
0x313b   :  { %v4666_v43 = vpop.f32.mrb[51].mxu1 }
0x313c   :  { %v4676_v32 = vrot.slane %v4666_v43, %v9715_v59 }
0x313e   :  { %v4677_v35 = vcombine.high %v4676_v32, %v4676_v32 }
0x3140   :  { %v4691_v11 = vrot.slane %v4677_v35, %v9715_v59  ;;  %v4410_v35 = vld [vmem:[%s10901_s0 + $0x2b0] sm:$0xff] }
0x3142   :  { %v4699_v28 = vrot.slane %v4691_v11, %v9720_v62 }
0x3169   :  { %v8444_v14 = vpop.f32.mrb[40].mxu0 }
0x316a   :  { %v4134_v22 = vpop.f32.mrb[41].mxu0 }
0x316b   :  { %4173 = vxpose.xlu0.b32.start [1/4] (short) (narrow) %v4134_v22, 8 }
0x316d   :  { %v8447_v39 = vpop.f32.mrb[42].mxu0 }
0x316e   :  { %v4144_v58 = vpop.f32.mrb[43].mxu0 }
0x316f   :  { %4174 = vxpose.xlu0.b32.cont [2/4] (short) (narrow) %v8444_v14, 8 }
0x3173   :  { %4175 = vxpose.xlu0.b32.cont [3/4] (short) (narrow) %v4144_v58, 8 }
0x3177   :  { %4176 = vxpose.xlu0.b32.end [4/4] (short) (narrow) %v8447_v39, 8 }
0x319b   :  { %v8450_v27 = vpop.f32.mrb[44].mxu0 }
0x319c   :  { %v4154_v9 = vpop.f32.mrb[45].mxu0 }
0x319d   :  { %4205 = vxpose.xlu1.b32.start [1/4] (short) (narrow) %v4154_v9, 8 }
0x319f   :  { %v8453_v31 = vpop.f32.mrb[46].mxu0 }
0x31a0   :  { %v4164_v46 = vpop.f32.mrb[47].mxu0  ;;  %9050 = vset.pattern.permute.xlu0 %v9421_v51 }
0x31a1   :  { %4206 = vxpose.xlu1.b32.cont [2/4] (short) (narrow) %v8450_v27, 8 }
0x31a5   :  { %4207 = vxpose.xlu1.b32.cont [3/4] (short) (narrow) %v4164_v46, 8 }
0x31a9   :  { %4208 = vxpose.xlu1.b32.end [4/4] (short) (narrow) %v8453_v31, 8 }
0x31c7   :  { %9051 = vset.pattern.permute.xlu1 %v9421_v51 }
0x31eb   :  { %v4189_v57 = vpop.trf.xlu0 }
0x31ec   :  { %v10255_v26 = vadd.f32 %v4189_v57, %v9843_v8  ;;  %v4684_v8 = vrot.slane %v4676_v32, %v9715_v59  ;;  %v4409_v32 = vld [vmem:[%s10901_s0 + $0x2a0] sm:$0xff] }
0x31ed   :  { %v10311_v11 = vpack.c.bf16 %v4410_v35, %v4409_v32 }
0x31ee   :  { %8484 = vmatprep.mubr.msk.f32.mxu0 %vm153_vm3, %v10255_v26  ;;  %v4695_v49 = vrot.slane %v4684_v8, %v9720_v62  ;;  %v4411_v8 = vld [vmem:[%s10901_s0 + $0x2c0] sm:$0xff] }
0x321d   :  { %v4221_v54 = vpop.trf.xlu1 }
0x321e   :  { %v10260_v2 = vadd.f32 %v4221_v54, %v9849_v16 }
0x3220   :  { %8485 = vmatmul.mubr.msk.f32.vlgmr.msra.gmra.mrb[48].mxu0 %vm153_vm3, %v10260_v2 }
0x3221   :  { %8500 = vmatprep.mubr.msk.f32.mxu0 %vm9411_vm1, %v9412_v4  ;;  %8844 = vmatpush3.bf16.msra.mxu0 %v10311_v11 }
0x3222   :  { %8845 = vmatprep.subr.bf16.mxu0 %v9410_v3 }
0x32f3   :  { %v10271_v52 = vpop.f32.mrb[48].mxu0 }
0x32f4   :  { %v4703_v16 = vadd.f32 %v10271_v52, %v4699_v28  ;;  %v10274_v12 = vpop.f32.mrb[49].mxu0  ;;  %v4412_v28 = vld [vmem:[%s10901_s0 + $0x2d0] sm:$0xff] }
0x32f5   :  { %v4702_v61 = vadd.f32 %v4695_v49, %v10274_v12  ;;  %v10321_v49 = vpack.c.bf16 %v4412_v28, %v4411_v8 }
0x32f6   :  { %9246 = vtanh.f32 %v4703_v16 }
0x32f7   :  { %9248 = vtanh.f32 %v4702_v61  ;;  %8847 = vmatpush3.bf16.msra.mxu0 %v10321_v49 }
0x32f8   :  { %8856 = vmatprep.subr.bf16.mxu0 %v9410_v3 }
0x3300   :  { %v9247_v18 = vpop.eup %9246 }
0x3301   :  { %v9249_v10 = vpop.eup %9248  ;;  %v4707_v30 = vmul.f32 %v9247_v18, %v10280_v47 }
0x3302   :  { %v4706_v34 = vmul.f32 %v9249_v10, %v10280_v47 }
0x3303   :  { %v4711_v6 = vsel %vm153_vm3, %v4707_v30, 0.0 }
0x3304   :  { %4712 = vadd.xlane.f32.xlu1 %v4711_v6  ;;  %v4708_v36 = vsel %vm153_vm3, %v4706_v34, 0.0 }
0x3305   :  { %4709 = vadd.xlane.f32.xlu0 %v4708_v36 }
0x3391   :  { %v4713_v38 = vpop.xlane.xlu1 %4712 }
0x3392   :  { %v4725_v53 = vrot.slane %v4713_v38, %v10288_v63  ;;  %v4710_v1 = vpop.xlane.xlu0 %4709 }
0x3393   :  { %v4721_v56 = vrot.slane %v4710_v1, %v10288_v63 }
0x3395   :  { %v4727_v60 = vsel %vm4726_vm13, %v4725_v53, %v4721_v56 }
0x3396   :  { %v4730_v50 = vsel %vm4729_vm14, %v4727_v60, -inf }
0x3397   :  { %4731 = vmax.xlane.f32.xlu0 %v4730_v50 }
0x3424   :  { %v4732_v24 = vpop.xlane.xlu0 %4731 }
0x3425   :  { %v4737_v20 = vrot.slane %v4732_v24, %v9720_v62  ;;  %v4741_v44 = vrot.slane %v4732_v24, %v10295_v13 }
0x3427   :  { %v4744_v25 = vsub.f32 %v4710_v1, %v4737_v20  ;;  %v4745_v43 = vsub.f32 %v4713_v38, %v4741_v44 }
0x3429   :  { %v4746_v14 = vmul.f32 1.442695, %v4744_v25  ;;  %v4748_v22 = vmul.f32 1.442695, %v4745_v43  ;;  %v4812_v25 = vld [vmem:[#allocation6] sm:$0x3] }
0x342a   :  { %v4813_v43 = vadd.f32 %v4812_v25, %v10239_v42 }
0x342b   :  { %9250 = vpow2.f32 %v4746_v14 }
0x342c   :  { %9252 = vpow2.f32 %v4748_v22 }
0x3435   :  { %v9251_v39 = vpop.eup %9250 }
0x3436   :  { %v9253_v58 = vpop.eup %9252  ;;  %4753 = vperm.xlu0 %9050, %v9251_v39  }
0x3437   :  { %4756 = vperm.xlu1 %9051, %v9253_v58  }
0x34b5   :  { %v4754_v0 = vpop.permute.xlu0 %4753 }
0x34b6   :  { %v4757_v55 = vpop.permute.xlu1 %4756  ;;  %v4761_v15 = vrot.slane %v4754_v0, %v10288_v63 }
0x34b7   :  { %v4765_v37 = vrot.slane %v4757_v55, %v10288_v63 }
0x34b9   :  { %v4766_v40 = vsel %vm4726_vm13, %v4765_v37, %v4761_v15 }
0x34ba   :  { %v4768_v7 = vsel %vm4729_vm14, %v4766_v40, 0.0 }
0x34bb   :  { %4769 = vadd.xlane.f32.xlu1 %v4768_v7 }
0x3548   :  { %v4770_v41 = vpop.xlane.xlu1 %4769 }
0x3549   :  { %v4775_v27 = vrot.slane %v4770_v41, %v9720_v62  ;;  %v4779_v9 = vrot.slane %v4770_v41, %v10295_v13 }
0x354b   :  { %9254 = vrcp.f32 %v4775_v27 }
0x354c   :  { %9256 = vrcp.f32 %v4779_v9 }
0x3555   :  { %v9255_v31 = vpop.eup %9254 }
0x3556   :  { %v4783_v46 = vmul.f32 %v9255_v31, %v9251_v39  ;;  %v9257_v57 = vpop.eup %9256 }
0x3557   :  { %v4785_v54 = vmul.f32 %v9257_v57, %v9253_v58 }
0x3558   :  { %4788 = vperm.xlu0 %9050, %v4783_v46  }
0x355c   :  { %4793 = vperm.xlu0 %9050, %v4785_v54  }
0x35d7   :  { %v4789_v16 = vpop.permute.xlu0 %4788 }
0x35d8   :  { %v4796_v61 = vmul.f32 %v4789_v16, %v10255_v26 }
0x35da   :  { %v4798_v18 = vsel %vm153_vm3, %v4796_v61, 0.0 }
0x35db   :  { %v4799_v10 = vrot.slane %v4798_v18, 4  ;;  %v4794_v30 = vpop.permute.xlu0 %4793 }
0x35dc   :  { %v4797_v34 = vmul.f32 %v4794_v30, %v10260_v2 }
0x35dd   :  { %v4800_v6 = vadd.f32 %v4799_v10, %v4798_v18 }
0x35de   :  { %v4805_v36 = vsel %vm153_vm3, %v4797_v34, 0.0 }
0x35df   :  { %v4801_v21 = vrot.slane %v4800_v6, 2  ;;  %v4806_v38 = vrot.slane %v4805_v36, 4 }
0x35e1   :  { %v4802_v53 = vadd.f32 %v4801_v21, %v4800_v6  ;;  %v4807_v1 = vadd.f32 %v4806_v38, %v4805_v36 }
0x35e3   :  { %v4808_v56 = vrot.slane %v4807_v1, 2  ;;  %v4803_v60 = vrot.slane %v4802_v53, 1 }
0x35e5   :  { %v4809_v50 = vadd.f32 %v4808_v56, %v4807_v1  ;;  %v4804_v24 = vadd.f32 %v4803_v60, %v4802_v53 }
0x35e7   :  { %v4810_v51 = vrot.slane %v4809_v50, 1 }
0x35e9   :  { %v4811_v20 = vadd.f32 %v4810_v51, %v4809_v50 }
0x35eb   :  { %v4816_v44 = vsel %vm4726_vm13, %v4811_v20, %v4804_v24 }
0x35ec   :  { %8501 = vmatmul.mubr.msk.f32.vlgmr.msra.gmra.mrb[50].mxu0 %vm153_vm3, %v4816_v44  ;;  %4920 = vst.msk [vmem:[#allocation9] sm:$0x3] %vm256_vm2, %v4816_v44 }
0x35ed   :  { %8858 = vmatpush3.bf16.msra.mxu0 %v10311_v11  ;;  %8511 = vmatprep.mubr.msk.f32.mxu0 %vm9411_vm1, %v9412_v4 }
0x35ee   :  { %8859 = vmatprep.subr.bf16.mxu0 %v9410_v3 }
0x35f1   :  { %8861 = vmatpush3.bf16.msra.mxu0 %v10321_v49 }
0x35f2   :  { %8870 = vmatprep.subr.bf16.mxu0 %v9410_v3 }
0x36bf   :  { %v4885_v14 = vpop.f32.mrb[50].mxu0 }
0x36c0   :  { %v4889_v22 = vadd.f32 %v4885_v14, %v4813_v43  ;;  %v8502_v39 = vpop.f32.mrb[51].mxu0 }
0x36c2   :  { %9258 = vtanh.f32 %v4889_v22  ;;  %v7822_v0 = vmul.f32 -1.442695, %v4889_v22 }
0x36c4   :  { %9260 = vpow2.f32 %v7822_v0 }
0x36cc   :  { %v9259_v58 = vpop.eup %9258 }
0x36cd   :  { %4899 = vrot.lane.b32.xlu0 %v9259_v58, %s9414_s25 }
0x36ce   :  { %v9261_v55 = vpop.eup %9260 }
0x36cf   :  { %v4893_v15 = vadd.f32 1.0, %v9261_v55 }
0x36d1   :  { %9262 = vrcp.f32 %v4893_v15 }
0x36db   :  { %v9263_v37 = vpop.eup %9262 }
0x36dc   :  { %v4897_v41 = vmul.f32 0.0, %v9263_v37 }
0x373f   :  { %v4900_v40 = vpop.permute.xlu0 %4899 }
0x3740   :  { %v4902_v7 = vmul.f32 %v9263_v37, %v4900_v40 }
0x3742   :  { %4904 = vrot.lane.b32.xlu1 %v4902_v7, %s9415_s26 }
0x37b4   :  { %v4905_v27 = vpop.permute.xlu1 %4904 }
0x37b5   :  { %v10341_v42 = vadd.f32 %v4905_v27, %v4897_v41 }
0x37b7   :  { %9264 = vtanh.f32 %v10341_v42 }
0x37c1   :  { %v9265_v9 = vpop.eup %9264 }
0x37c2   :  { %4910 = vrot.lane.b32.xlu0 %v9265_v9, %s9414_s25 }
0x3834   :  { %v4911_v31 = vpop.permute.xlu0 %4910 }
0x3835   :  { %v4913_v46 = vmul.f32 %v9263_v37, %v4911_v31 }
0x3837   :  { %4915 = vrot.lane.b32.xlu0 %v4913_v46, %s9415_s26 }
0x38a9   :  { %v4916_v57 = vpop.permute.xlu0 %4915 }
0x38aa   :  { %4918 = vst.msk [vmem:[#allocation8] sm:$0x3] %vm256_vm2, %v4916_v57  ;;  %7823 = vmatmul.mubr.msk.f32.vlgmr.msra.gmra.mrb[52].mxu1 %vm153_vm3, %v4916_v57 }
0x38ab   :  { %8865 = vmatpush1.bf16.msra.mxu1 %v10172_v45  ;;  %5311 = vmatprep.mubr.f32.mxu1 %v9412_v4 }
0x38ac   :  { %8867 = vmatprep.subr.bf16.mxu1 %v10183_v48 }
0x38af   :  { %8869 = vmatpush1.bf16.msra.mxu1 %v10191_v19 }
0x38b0   :  { %8877 = vmatprep.subr.bf16.mxu1 %v10170_v29 }
0x397d   :  { %v10353_v54 = vpop.f32.mrb[52].mxu1 }
0x397e   :  { %v4991_v32 = vpop.f32.mrb[53].mxu1 }
0x397f   :  { %v5001_v35 = vrot.slane %v4991_v32, %v9715_v59 }
0x3981   :  { %v5002_v8 = vcombine.high %v5001_v35, %v5001_v35  ;;  %v5009_v28 = vrot.slane %v5001_v35, %v9715_v59 }
0x3983   :  { %v5016_v16 = vrot.slane %v5002_v8, %v9715_v59  ;;  %v5020_v61 = vrot.slane %v5009_v28, %v9720_v62 }
0x3985   :  { %v5024_v18 = vrot.slane %v5016_v16, %v9720_v62  ;;  %v5027_v10 = vadd.f32 %v5020_v61, %v10274_v12 }
0x3987   :  { %v5028_v30 = vadd.f32 %v10271_v52, %v5024_v18  ;;  %9266 = vtanh.f32 %v5027_v10 }
0x3989   :  { %9268 = vtanh.f32 %v5028_v30 }
0x3991   :  { %v9267_v29 = vpop.eup %9266 }
0x3992   :  { %v5031_v34 = vmul.f32 %v9267_v29, %v10280_v47 }
0x3993   :  { %v9269_v6 = vpop.eup %9268 }
0x3994   :  { %v5033_v36 = vsel %vm153_vm3, %v5031_v34, 0.0  ;;  %v5032_v21 = vmul.f32 %v9269_v6, %v10280_v47 }
0x3995   :  { %5034 = vadd.xlane.f32.xlu0 %v5033_v36 }
0x3996   :  { %v5036_v38 = vsel %vm153_vm3, %v5032_v21, 0.0 }
0x3997   :  { %5037 = vadd.xlane.f32.xlu1 %v5036_v38 }
0x3a22   :  { %v5035_v53 = vpop.xlane.xlu0 %5034 }
0x3a23   :  { %v5044_v56 = vrot.slane %v5035_v53, %v10288_v63 }
0x3a24   :  { %v5038_v1 = vpop.xlane.xlu1 %5037 }
0x3a25   :  { %v5048_v60 = vrot.slane %v5038_v1, %v10288_v63 }
0x3a27   :  { %v5049_v50 = vsel %vm4726_vm13, %v5048_v60, %v5044_v56 }
0x3a28   :  { %v5051_v51 = vsel %vm4729_vm14, %v5049_v50, -inf }
0x3a29   :  { %5052 = vmax.xlane.f32.xlu0 %v5051_v51  ;;  %v5134_v51 = vld [vmem:[#allocation6 + $0x2] sm:$0x3] }
0x3ab6   :  { %v5053_v24 = vpop.xlane.xlu0 %5052 }
0x3ab7   :  { %v5058_v20 = vrot.slane %v5053_v24, %v9720_v62  ;;  %v5062_v44 = vrot.slane %v5053_v24, %v10295_v13  ;;  %v5135_v24 = vadd.f32 %v5134_v51, %v10353_v54 }
0x3ab9   :  { %v5065_v25 = vsub.f32 %v5035_v53, %v5058_v20  ;;  %v5066_v43 = vsub.f32 %v5038_v1, %v5062_v44 }
0x3abb   :  { %v5067_v14 = vmul.f32 1.442695, %v5065_v25  ;;  %v5069_v22 = vmul.f32 1.442695, %v5066_v43 }
0x3abd   :  { %9270 = vpow2.f32 %v5067_v14 }
0x3abe   :  { %9272 = vpow2.f32 %v5069_v22 }
0x3ac7   :  { %v9271_v39 = vpop.eup %9270 }
0x3ac8   :  { %v9273_v58 = vpop.eup %9272  ;;  %5074 = vperm.xlu0 %9050, %v9271_v39  }
0x3ac9   :  { %5077 = vperm.xlu1 %9051, %v9273_v58  }
0x3b47   :  { %v5075_v0 = vpop.permute.xlu0 %5074 }
0x3b48   :  { %v5078_v55 = vpop.permute.xlu1 %5077  ;;  %v5082_v15 = vrot.slane %v5075_v0, %v10288_v63 }
0x3b49   :  { %v5086_v37 = vrot.slane %v5078_v55, %v10288_v63 }
0x3b4b   :  { %v5087_v40 = vsel %vm4726_vm13, %v5086_v37, %v5082_v15 }
0x3b4c   :  { %v5089_v7 = vsel %vm4729_vm14, %v5087_v40, 0.0 }
0x3b4d   :  { %5090 = vadd.xlane.f32.xlu0 %v5089_v7 }
0x3bda   :  { %v5091_v41 = vpop.xlane.xlu0 %5090 }
0x3bdb   :  { %v5096_v27 = vrot.slane %v5091_v41, %v9720_v62  ;;  %v5100_v9 = vrot.slane %v5091_v41, %v10295_v13 }
0x3bdd   :  { %9274 = vrcp.f32 %v5096_v27 }
0x3bde   :  { %9276 = vrcp.f32 %v5100_v9 }
0x3be7   :  { %v9275_v31 = vpop.eup %9274 }
0x3be8   :  { %v5104_v46 = vmul.f32 %v9275_v31, %v9271_v39  ;;  %v9277_v57 = vpop.eup %9276 }
0x3be9   :  { %v5106_v32 = vmul.f32 %v9277_v57, %v9273_v58 }
0x3bea   :  { %5109 = vperm.xlu1 %9051, %v5104_v46  }
0x3bee   :  { %5114 = vperm.xlu1 %9051, %v5106_v32  }
0x3c69   :  { %v5110_v35 = vpop.permute.xlu1 %5109 }
0x3c6a   :  { %v5117_v8 = vmul.f32 %v5110_v35, %v10255_v26 }
0x3c6c   :  { %v5119_v28 = vsel %vm153_vm3, %v5117_v8, 0.0 }
0x3c6d   :  { %v5120_v16 = vrot.slane %v5119_v28, 4  ;;  %v5115_v61 = vpop.permute.xlu1 %5114 }
0x3c6e   :  { %v5118_v18 = vmul.f32 %v5115_v61, %v10260_v2 }
0x3c6f   :  { %v5121_v10 = vadd.f32 %v5120_v16, %v5119_v28 }
0x3c70   :  { %v5126_v30 = vsel %vm153_vm3, %v5118_v18, 0.0 }
0x3c71   :  { %v5122_v29 = vrot.slane %v5121_v10, 2  ;;  %v5127_v34 = vrot.slane %v5126_v30, 4 }
0x3c73   :  { %v5123_v6 = vadd.f32 %v5122_v29, %v5121_v10  ;;  %v5128_v36 = vadd.f32 %v5127_v34, %v5126_v30 }
0x3c75   :  { %v5129_v21 = vrot.slane %v5128_v36, 2  ;;  %v5124_v38 = vrot.slane %v5123_v6, 1 }
0x3c77   :  { %v5130_v53 = vadd.f32 %v5129_v21, %v5128_v36  ;;  %v5125_v56 = vadd.f32 %v5124_v38, %v5123_v6 }
0x3c79   :  { %v5131_v1 = vrot.slane %v5130_v53, 1 }
0x3c7b   :  { %v5132_v60 = vadd.f32 %v5131_v1, %v5130_v53 }
0x3c7d   :  { %v5138_v50 = vsel %vm4726_vm13, %v5132_v60, %v5125_v56 }
0x3c7e   :  { %8512 = vmatmul.mubr.msk.f32.vlgmr.msra.gmra.mrb[52].mxu0 %vm153_vm3, %v5138_v50  ;;  %5244 = vst.msk [vmem:[#allocation9 + $0x2] sm:$0x3] %vm256_vm2, %v5138_v50 }
0x3c7f   :  { %8872 = vmatpush3.bf16.msra.mxu0 %v10311_v11  ;;  %8522 = vmatprep.mubr.msk.f32.mxu0 %vm9411_vm1, %v9412_v4 }
0x3c80   :  { %8873 = vmatprep.subr.bf16.mxu0 %v9410_v3 }
0x3c83   :  { %8875 = vmatpush3.bf16.msra.mxu0 %v10321_v49 }
0x3c84   :  { %8884 = vmatprep.subr.bf16.mxu0 %v9410_v3 }
0x3d51   :  { %v5207_v20 = vpop.f32.mrb[52].mxu0 }
0x3d52   :  { %v5211_v44 = vadd.f32 %v5207_v20, %v5135_v24  ;;  %v8513_v25 = vpop.f32.mrb[53].mxu0 }
0x3d54   :  { %9278 = vtanh.f32 %v5211_v44  ;;  %v7825_v14 = vmul.f32 -1.442695, %v5211_v44 }
0x3d56   :  { %9280 = vpow2.f32 %v7825_v14 }
0x3d5e   :  { %v9279_v43 = vpop.eup %9278 }
0x3d5f   :  { %5221 = vrot.lane.b32.xlu1 %v9279_v43, %s9414_s25 }
0x3d60   :  { %v9281_v22 = vpop.eup %9280 }
0x3d61   :  { %v5215_v39 = vadd.f32 1.0, %v9281_v22 }
0x3d63   :  { %9282 = vrcp.f32 %v5215_v39 }
0x3d6d   :  { %v9283_v58 = vpop.eup %9282 }
0x3d6e   :  { %v5219_v15 = vmul.f32 %v9283_v58, %v10341_v42 }
0x3dd1   :  { %v5222_v0 = vpop.permute.xlu1 %5221 }
0x3dd2   :  { %v5224_v55 = vmul.f32 %v9283_v58, %v5222_v0 }
0x3dd4   :  { %5226 = vrot.lane.b32.xlu1 %v5224_v55, %s9415_s26 }
0x3e46   :  { %v5227_v54 = vpop.permute.xlu1 %5226 }
0x3e47   :  { %v10395_v37 = vadd.f32 %v5227_v54, %v5219_v15 }
0x3e49   :  { %9284 = vtanh.f32 %v10395_v37 }
0x3e53   :  { %v9285_v40 = vpop.eup %9284 }
0x3e54   :  { %5232 = vrot.lane.b32.xlu1 %v9285_v40, %s9414_s25 }
0x3ec6   :  { %v5233_v7 = vpop.permute.xlu1 %5232 }
0x3ec7   :  { %v5235_v41 = vmul.f32 %v9283_v58, %v5233_v7 }
0x3ec9   :  { %5237 = vrot.lane.b32.xlu1 %v5235_v41, %s9415_s26 }
0x3f3b   :  { %v5238_v27 = vpop.permute.xlu1 %5237 }
0x3f3c   :  { %5241 = vst.msk [vmem:[#allocation8 + $0x2] sm:$0x3] %vm256_vm2, %v5238_v27  ;;  %7826 = vmatmul.mubr.msk.f32.vlgmr.msra.gmra.mrb[54].mxu1 %vm153_vm3, %v5238_v27 }
0x3f3d   :  { %8879 = vmatpush1.bf16.msra.mxu1 %v10172_v45  ;;  %5635 = vmatprep.mubr.f32.mxu1 %v9412_v4 }
0x3f3e   :  { %8881 = vmatprep.subr.bf16.mxu1 %v10183_v48 }
0x3f41   :  { %8883 = vmatpush1.bf16.msra.mxu1 %v10191_v19 }
0x3f42   :  { %8890 = vmatprep.subr.bf16.mxu1 %v9410_v3 }
0x400f   :  { %v10407_v42 = vpop.f32.mrb[54].mxu1 }
0x4010   :  { %v5315_v9 = vpop.f32.mrb[55].mxu1 }
0x4011   :  { %v5325_v31 = vrot.slane %v5315_v9, %v9715_v59 }
0x4013   :  { %v5326_v46 = vcombine.high %v5325_v31, %v5325_v31  ;;  %v5333_v57 = vrot.slane %v5325_v31, %v9715_v59 }
0x4015   :  { %v5340_v32 = vrot.slane %v5326_v46, %v9715_v59  ;;  %v5344_v45 = vrot.slane %v5333_v57, %v9720_v62 }
0x4017   :  { %v5348_v35 = vrot.slane %v5340_v32, %v9720_v62  ;;  %v5351_v48 = vadd.f32 %v5344_v45, %v10274_v12 }
0x4019   :  { %v5352_v19 = vadd.f32 %v10271_v52, %v5348_v35  ;;  %9286 = vtanh.f32 %v5351_v48 }
0x401b   :  { %9288 = vtanh.f32 %v5352_v19 }
0x4023   :  { %v9287_v8 = vpop.eup %9286 }
0x4024   :  { %v5355_v28 = vmul.f32 %v9287_v8, %v10280_v47 }
0x4025   :  { %v9289_v16 = vpop.eup %9288 }
0x4026   :  { %v5357_v61 = vsel %vm153_vm3, %v5355_v28, 0.0  ;;  %v5356_v18 = vmul.f32 %v9289_v16, %v10280_v47 }
0x4027   :  { %5358 = vadd.xlane.f32.xlu1 %v5357_v61 }
0x4028   :  { %v5360_v10 = vsel %vm153_vm3, %v5356_v18, 0.0 }
0x4029   :  { %5361 = vadd.xlane.f32.xlu0 %v5360_v10 }
0x40b4   :  { %v5359_v30 = vpop.xlane.xlu1 %5358 }
0x40b5   :  { %v5368_v34 = vrot.slane %v5359_v30, %v10288_v63 }
0x40b6   :  { %v5362_v29 = vpop.xlane.xlu0 %5361 }
0x40b7   :  { %v5372_v6 = vrot.slane %v5362_v29, %v10288_v63 }
0x40b9   :  { %v5373_v36 = vsel %vm4726_vm13, %v5372_v6, %v5368_v34  ;;  %v5458_v34 = vld [vmem:[#allocation6 + $0x4] sm:$0x3] }
0x40ba   :  { %v5375_v21 = vsel %vm4729_vm14, %v5373_v36, -inf  ;;  %v5459_v6 = vadd.f32 %v5458_v34, %v10407_v42 }
0x40bb   :  { %5376 = vmax.xlane.f32.xlu0 %v5375_v21 }
0x4148   :  { %v5377_v38 = vpop.xlane.xlu0 %5376 }
0x4149   :  { %v5382_v53 = vrot.slane %v5377_v38, %v9720_v62  ;;  %v5386_v1 = vrot.slane %v5377_v38, %v10295_v13 }
0x414b   :  { %v5389_v56 = vsub.f32 %v5359_v30, %v5382_v53  ;;  %v5390_v60 = vsub.f32 %v5362_v29, %v5386_v1 }
0x414d   :  { %v5391_v50 = vmul.f32 1.442695, %v5389_v56  ;;  %v5393_v51 = vmul.f32 1.442695, %v5390_v60 }
0x414f   :  { %9290 = vpow2.f32 %v5391_v50 }
0x4150   :  { %9292 = vpow2.f32 %v5393_v51 }
0x4159   :  { %v9291_v24 = vpop.eup %9290 }
0x415a   :  { %5398 = vperm.xlu0 %9050, %v9291_v24   ;;  %v9293_v20 = vpop.eup %9292 }
0x415e   :  { %5401 = vperm.xlu0 %9050, %v9293_v20  }
0x41d9   :  { %v5399_v44 = vpop.permute.xlu0 %5398 }
0x41da   :  { %v5406_v43 = vrot.slane %v5399_v44, %v10288_v63 }
0x41dd   :  { %v5402_v25 = vpop.permute.xlu0 %5401 }
0x41de   :  { %v5410_v14 = vrot.slane %v5402_v25, %v10288_v63 }
0x41e0   :  { %v5411_v22 = vsel %vm4726_vm13, %v5410_v14, %v5406_v43 }
0x41e1   :  { %v5413_v39 = vsel %vm4729_vm14, %v5411_v22, 0.0 }
0x41e2   :  { %5414 = vadd.xlane.f32.xlu1 %v5413_v39 }
0x426f   :  { %v5415_v58 = vpop.xlane.xlu1 %5414 }
0x4270   :  { %v5420_v0 = vrot.slane %v5415_v58, %v9720_v62  ;;  %v5424_v55 = vrot.slane %v5415_v58, %v10295_v13 }
0x4272   :  { %9294 = vrcp.f32 %v5420_v0 }
0x4273   :  { %9296 = vrcp.f32 %v5424_v55 }
0x427c   :  { %v9295_v15 = vpop.eup %9294 }
0x427d   :  { %v9297_v54 = vpop.eup %9296  ;;  %v5428_v40 = vmul.f32 %v9295_v15, %v9291_v24 }
0x427e   :  { %v5430_v7 = vmul.f32 %v9297_v54, %v9293_v20 }
0x427f   :  { %5433 = vperm.xlu0 %9050, %v5428_v40  }
0x4280   :  { %5438 = vperm.xlu1 %9051, %v5430_v7  }
0x42fe   :  { %v5434_v41 = vpop.permute.xlu0 %5433 }
0x42ff   :  { %v5439_v27 = vpop.permute.xlu1 %5438  ;;  %v5441_v9 = vmul.f32 %v5434_v41, %v10255_v26 }
0x4300   :  { %v5442_v31 = vmul.f32 %v5439_v27, %v10260_v2 }
0x4301   :  { %v5443_v46 = vsel %vm153_vm3, %v5441_v9, 0.0 }
0x4302   :  { %v5450_v57 = vsel %vm153_vm3, %v5442_v31, 0.0  ;;  %v5444_v32 = vrot.slane %v5443_v46, 4 }
0x4303   :  { %v5451_v45 = vrot.slane %v5450_v57, 4 }
0x4304   :  { %v5445_v35 = vadd.f32 %v5444_v32, %v5443_v46 }
0x4305   :  { %v5452_v48 = vadd.f32 %v5451_v45, %v5450_v57 }
0x4306   :  { %v5446_v19 = vrot.slane %v5445_v35, 2 }
0x4307   :  { %v5453_v8 = vrot.slane %v5452_v48, 2 }
0x4308   :  { %v5447_v28 = vadd.f32 %v5446_v19, %v5445_v35 }
0x4309   :  { %v5454_v16 = vadd.f32 %v5453_v8, %v5452_v48 }
0x430a   :  { %v5448_v61 = vrot.slane %v5447_v28, 1 }
0x430b   :  { %v5455_v18 = vrot.slane %v5454_v16, 1 }
0x430c   :  { %v5449_v10 = vadd.f32 %v5448_v61, %v5447_v28 }
0x430d   :  { %v5456_v30 = vadd.f32 %v5455_v18, %v5454_v16 }
0x430f   :  { %v5462_v29 = vsel %vm4726_vm13, %v5456_v30, %v5449_v10 }
0x4310   :  { %8523 = vmatmul.mubr.msk.f32.vlgmr.msra.gmra.mrb[54].mxu0 %vm153_vm3, %v5462_v29  ;;  %5568 = vst.msk [vmem:[#allocation9 + $0x4] sm:$0x3] %vm256_vm2, %v5462_v29 }
0x4311   :  { %8886 = vmatpush3.bf16.msra.mxu0 %v10311_v11  ;;  %8533 = vmatprep.mubr.msk.f32.mxu0 %vm9411_vm1, %v9412_v4 }
0x4312   :  { %8887 = vmatprep.subr.bf16.mxu0 %v9410_v3 }
0x4315   :  { %8889 = vmatpush3.bf16.msra.mxu0 %v10321_v49 }
0x43e3   :  { %v5531_v36 = vpop.f32.mrb[54].mxu0 }
0x43e4   :  { %v5535_v21 = vadd.f32 %v5531_v36, %v5459_v6  ;;  %v8524_v38 = vpop.f32.mrb[55].mxu0 }
0x43e6   :  { %9298 = vtanh.f32 %v5535_v21  ;;  %v7828_v1 = vmul.f32 -1.442695, %v5535_v21 }
0x43e8   :  { %9300 = vpow2.f32 %v7828_v1 }
0x43f0   :  { %v9299_v53 = vpop.eup %9298 }
0x43f1   :  { %5545 = vrot.lane.b32.xlu0 %v9299_v53, %s9414_s25 }
0x43f2   :  { %v9301_v11 = vpop.eup %9300 }
0x43f3   :  { %v5539_v56 = vadd.f32 1.0, %v9301_v11 }
0x43f5   :  { %9302 = vrcp.f32 %v5539_v56 }
0x43ff   :  { %v9303_v60 = vpop.eup %9302 }
0x4400   :  { %v5543_v49 = vmul.f32 %v9303_v60, %v10395_v37 }
0x4463   :  { %v5546_v50 = vpop.permute.xlu0 %5545 }
0x4464   :  { %v5548_v51 = vmul.f32 %v9303_v60, %v5546_v50 }
0x4466   :  { %5550 = vrot.lane.b32.xlu0 %v5548_v51, %s9415_s26  ;;  %v6046_v51 = vld [vmem:[%s10901_s0 + $0x3d0] sm:$0xff] }
0x44d8   :  { %v5551_v42 = vpop.permute.xlu0 %5550 }
0x44d9   :  { %v10448_v24 = vadd.f32 %v5551_v42, %v5543_v49  ;;  %v6047_v49 = vld [vmem:[%s10901_s0 + $0x3e0] sm:$0xff] }
0x44da   :  { %v8902_v42 = vpack.c.bf16 %v6047_v49, %v6046_v51 }
0x44db   :  { %9304 = vtanh.f32 %v10448_v24 }
0x44dc   :  { %8903 = vmatprep.subr.bf16.mxu0 %v8902_v42 }
0x44e5   :  { %v9305_v20 = vpop.eup %9304 }
0x44e6   :  { %5556 = vrot.lane.b32.xlu0 %v9305_v20, %s9414_s25 }
0x4558   :  { %v5557_v44 = vpop.permute.xlu0 %5556 }
0x4559   :  { %v5559_v25 = vmul.f32 %v9303_v60, %v5557_v44 }
0x455b   :  { %5561 = vrot.lane.b32.xlu0 %v5559_v25, %s9415_s26 }
0x45cd   :  { %v5562_v43 = vpop.permute.xlu0 %5561 }
0x45ce   :  { %5565 = vst.msk [vmem:[#allocation8 + $0x4] sm:$0x3] %vm256_vm2, %v5562_v43  ;;  %7829 = vmatmul.mubr.msk.f32.vlgmr.msra.gmra.mrb[56].mxu1 %vm153_vm3, %v5562_v43 }
0x45cf   :  { %8554 = vmatprep.mubr.msk.f32.mxu1 %vm9411_vm1, %v9412_v4 }
0x46a1   :  { %v10457_v37 = vpop.f32.mrb[56].mxu1 }
0x46a2   :  { %v5639_v14 = vpop.f32.mrb[57].mxu1 }
0x46a3   :  { %v5649_v22 = vrot.slane %v5639_v14, %v9715_v59 }
0x46a5   :  { %v5650_v39 = vcombine.high %v5649_v22, %v5649_v22  ;;  %v5657_v58 = vrot.slane %v5649_v22, %v9715_v59 }
0x46a7   :  { %v5664_v0 = vrot.slane %v5650_v39, %v9715_v59  ;;  %v5668_v55 = vrot.slane %v5657_v58, %v9720_v62 }
0x46a9   :  { %v5672_v15 = vrot.slane %v5664_v0, %v9720_v62  ;;  %v5675_v54 = vadd.f32 %v5668_v55, %v10274_v12 }
0x46ab   :  { %v5676_v40 = vadd.f32 %v10271_v52, %v5672_v15  ;;  %9306 = vtanh.f32 %v5675_v54 }
0x46ad   :  { %9308 = vtanh.f32 %v5676_v40 }
0x46b5   :  { %v9307_v7 = vpop.eup %9306 }
0x46b6   :  { %v5679_v41 = vmul.f32 %v9307_v7, %v10280_v47 }
0x46b7   :  { %v9309_v27 = vpop.eup %9308 }
0x46b8   :  { %v5681_v9 = vsel %vm153_vm3, %v5679_v41, 0.0  ;;  %v5680_v31 = vmul.f32 %v9309_v27, %v10280_v47 }
0x46b9   :  { %5682 = vadd.xlane.f32.xlu1 %v5681_v9  ;;  %v6049_v9 = vld [vmem:[%s10901_s0 + $0x400] sm:$0xff] }
0x46ba   :  { %v5684_v46 = vsel %vm153_vm3, %v5680_v31, 0.0 }
0x46bb   :  { %5685 = vadd.xlane.f32.xlu0 %v5684_v46 }
0x4746   :  { %v5683_v57 = vpop.xlane.xlu1 %5682 }
0x4747   :  { %v5692_v12 = vrot.slane %v5683_v57, %v10288_v63 }
0x4748   :  { %v5686_v32 = vpop.xlane.xlu0 %5685 }
0x4749   :  { %v5696_v52 = vrot.slane %v5686_v32, %v10288_v63 }
0x474b   :  { %v5697_v45 = vsel %vm4726_vm13, %v5696_v52, %v5692_v12  ;;  %v6039_v12 = vld [vmem:[%s10901_s0 + $0x398] sm:$0xff]  ;;  %v6041_v52 = vld [vmem:[%s10901_s0 + $0x3a8] sm:$0xff] }
0x474c   :  { %v5699_v35 = vsel %vm4729_vm14, %v5697_v45, -inf }
0x474d   :  { %5700 = vmax.xlane.f32.xlu0 %v5699_v35  ;;  %v6051_v35 = vld [vmem:[%s10901_s0 + $0x420] sm:$0xff] }
0x47da   :  { %v5701_v48 = vpop.xlane.xlu0 %5700 }
0x47db   :  { %v5706_v19 = vrot.slane %v5701_v48, %v9720_v62  ;;  %v5710_v47 = vrot.slane %v5701_v48, %v10295_v13  ;;  %v10517_v48 = vpack.c.bf16 %v6041_v52, %v6039_v12 }
0x47dd   :  { %v5713_v8 = vsub.f32 %v5683_v57, %v5706_v19  ;;  %v5714_v28 = vsub.f32 %v5686_v32, %v5710_v47  ;;  %v4321_v32 = vld [vmem:[%s10901_s0 + $0x1f0] ss:$0 sm:$0xff]  ;;  %v6040_v47 = vld [vmem:[%s10901_s0 + $0x3a0] sm:$0xff] }
0x47de   :  { %v4391_v45 = vadd.f32 %v10202_v5, %v4321_v32  ;;  %v6038_v19 = vld [vmem:[%s10901_s0 + $0x390] sm:$0xff]  ;;  %v6043_v5 = vld [vmem:[%s10901_s0 + $0x3b8] sm:$0xff] }
0x47df   :  { %v5715_v16 = vmul.f32 1.442695, %v5713_v8  ;;  %v5717_v61 = vmul.f32 1.442695, %v5714_v28  ;;  %v6045_v8 = vld [vmem:[%s10901_s0 + $0x3c8] sm:$0xff]  ;;  %v6057_v28 = vld [vmem:[%s10901_s0 + $0x50] sm:$0xff] }
0x47e1   :  { %9310 = vpow2.f32 %v5715_v16  ;;  %v10538_v16 = vpack.c.bf16 %v6040_v47, %v6038_v19 }
0x47e2   :  { %9312 = vpow2.f32 %v5717_v61  ;;  %v10541_v61 = vpack.c.bf16 %v6045_v8, %v6043_v5 }
0x47eb   :  { %v9311_v18 = vpop.eup %9310 }
0x47ec   :  { %v9313_v10 = vpop.eup %9312  ;;  %5722 = vperm.xlu0 %9050, %v9311_v18  }
0x47ed   :  { %5725 = vperm.xlu1 %9051, %v9313_v10  }
0x486b   :  { %v5723_v30 = vpop.permute.xlu0 %5722 }
0x486c   :  { %v5726_v29 = vpop.permute.xlu1 %5725  ;;  %v5730_v34 = vrot.slane %v5723_v30, %v10288_v63 }
0x486d   :  { %v5734_v6 = vrot.slane %v5726_v29, %v10288_v63 }
0x486f   :  { %v5735_v36 = vsel %vm4726_vm13, %v5734_v6, %v5730_v34  ;;  %v5782_v34 = vld [vmem:[#allocation6 + $0x6] sm:$0x3] }
0x4870   :  { %v5737_v21 = vsel %vm4729_vm14, %v5735_v36, 0.0  ;;  %v5783_v6 = vadd.f32 %v5782_v34, %v10457_v37 }
0x4871   :  { %5738 = vadd.xlane.f32.xlu1 %v5737_v21 }
0x48fe   :  { %v5739_v38 = vpop.xlane.xlu1 %5738 }
0x48ff   :  { %v5744_v53 = vrot.slane %v5739_v38, %v9720_v62  ;;  %v5748_v1 = vrot.slane %v5739_v38, %v10295_v13 }
0x4901   :  { %9314 = vrcp.f32 %v5744_v53 }
0x4902   :  { %9316 = vrcp.f32 %v5748_v1 }
0x4903   :  { %9318 = vtanh.f32 %v4391_v45 }
0x490b   :  { %v9315_v11 = vpop.eup %9314 }
0x490c   :  { %v5752_v56 = vmul.f32 %v9315_v11, %v9311_v18  ;;  %v9317_v60 = vpop.eup %9316  ;;  %v6042_v18 = vld [vmem:[%s10901_s0 + $0x3b0] sm:$0xff] }
0x490d   :  { %v5754_v50 = vmul.f32 %v9317_v60, %v9313_v10  ;;  %v6044_v10 = vld [vmem:[%s10901_s0 + $0x3c0] sm:$0xff]  ;;  %v9319_v29 = vpop.eup %9318  ;;  %v6056_v11 = vld [vmem:[%s10901_s0 + $0x470] ss:$0 sm:$0xff] }
0x490e   :  { %5757 = vperm.xlu0 %9050, %v5752_v56   ;;  %v10551_v30 = vpack.c.bf16 %v6044_v10, %v6042_v18 }
0x4912   :  { %5762 = vperm.xlu0 %9050, %v5754_v50  }
0x498d   :  { %v5758_v20 = vpop.permute.xlu0 %5757 }
0x498e   :  { %v5765_v44 = vmul.f32 %v5758_v20, %v10255_v26  ;;  %v6048_v26 = vld [vmem:[%s10901_s0 + $0x3f0] sm:$0xff] }
0x498f   :  { %v8906_v46 = vpack.c.bf16 %v6049_v9, %v6048_v26 }
0x4990   :  { %v5767_v25 = vsel %vm153_vm3, %v5765_v44, 0.0 }
0x4991   :  { %v5768_v43 = vrot.slane %v5767_v25, 4  ;;  %v5763_v14 = vpop.permute.xlu0 %5762 }
0x4992   :  { %v5766_v22 = vmul.f32 %v5763_v14, %v10260_v2 }
0x4993   :  { %v5769_v39 = vadd.f32 %v5768_v43, %v5767_v25 }
0x4994   :  { %v5774_v58 = vsel %vm153_vm3, %v5766_v22, 0.0 }
0x4995   :  { %v5770_v0 = vrot.slane %v5769_v39, 2  ;;  %v5775_v55 = vrot.slane %v5774_v58, 4 }
0x4997   :  { %v5771_v15 = vadd.f32 %v5770_v0, %v5769_v39  ;;  %v5776_v54 = vadd.f32 %v5775_v55, %v5774_v58 }
0x4999   :  { %v5777_v40 = vrot.slane %v5776_v54, 2  ;;  %v5772_v7 = vrot.slane %v5771_v15, 1 }
0x499b   :  { %v5778_v41 = vadd.f32 %v5777_v40, %v5776_v54  ;;  %v5773_v2 = vadd.f32 %v5772_v7, %v5771_v15  ;;  %v10585_v54 = vld [vmem:[%s10901_s0 + $0x410] ss:$0 sm:$0xff] }
0x499d   :  { %v5779_v27 = vrot.slane %v5778_v41, 1 }
0x499f   :  { %v5780_v31 = vadd.f32 %v5779_v27, %v5778_v41 }
0x49a1   :  { %v5786_v57 = vsel %vm4726_vm13, %v5780_v31, %v5773_v2 }
0x49a2   :  { %8534 = vmatmul.mubr.msk.f32.vlgmr.msra.gmra.mrb[56].mxu0 %vm153_vm3, %v5786_v57  ;;  %5892 = vst.msk [vmem:[#allocation9 + $0x6] sm:$0x3] %vm256_vm2, %v5786_v57 }
0x49a3   :  { %8905 = vmatpush3.bf16.msra.mxu0 %v8902_v42  ;;  %8565 = vmatprep.mubr.msk.f32.mxu0 %vm153_vm3, %v9781_v23 }
0x49a4   :  { %8907 = vmatprep.subr.bf16.mxu0 %v8906_v46 }
0x49a7   :  { %8909 = vmatpush3.bf16.msra.mxu0 %v8906_v46 }
0x49a8   :  { %8568 = vmatprep.subr.mxu0 %v9412_v4 }
0x49aa   :  { %8566 = vmatmul.mubr.msk.f32.vlgmr.msra.gmra.mrb[58].mxu0 %vm153_vm3, %v9793_v33 }
0x49ab   :  { %8569 = vmatpush3.msra.mxu0 %v6051_v35  ;;  %8570 = vmatprep.mubr.msk.f32.mxu0 %vm9411_vm1, %v9412_v4 }
0x49ac   :  { %8911 = vmatprep.subr.bf16.mxu0 %v10517_v48 }
0x49ae   :  { %8571 = vmatmul.mubr.msk.f32.vlgmr.msra.gmra.mrb[60].mxu0 %vm18_vm0, %v6057_v28  ;;  %vm5963_vm0 = vcmask 588800  }
0x49af   :  { %8913 = vmatpush1.bf16.msra.mxu0 %v10538_v16  ;;  %6305 = vmatprep.mubr.f32.mxu0 %v9412_v4 }
0x49b0   :  { %8915 = vmatprep.subr.bf16.mxu0 %v10541_v61 }
0x49b3   :  { %8917 = vmatpush1.bf16.msra.mxu0 %v10551_v30 }
0x49b4   :  { %8925 = vmatprep.subr.bf16.mxu0 %v10517_v48 }
0x49b6   :  { %7838 = vmatmul.mubr.msk.f32.vlgmr.msra.gmra.mrb[62].mxu0 %vm153_vm3, %v9319_v29 }
0x49b7   :  { %8927 = vmatpush1.bf16.msra.mxu0 %v10538_v16  ;;  %6626 = vmatprep.mubr.f32.mxu0 %v9412_v4 }
0x49b8   :  { %8929 = vmatprep.subr.bf16.mxu0 %v10541_v61 }
0x49bb   :  { %8931 = vmatpush1.bf16.msra.mxu0 %v10551_v30 }
0x49bc   :  { %8939 = vmatprep.subr.bf16.mxu0 %v10517_v48 }
0x4a75   :  { %v5855_v36 = vpop.f32.mrb[56].mxu0 }
0x4a76   :  { %v5859_v21 = vadd.f32 %v5855_v36, %v5783_v6  ;;  %v8535_v38 = vpop.f32.mrb[57].mxu0 }
0x4a78   :  { %v7831_v45 = vmul.f32 -1.442695, %v5859_v21 }
0x4a7d   :  { %v10564_v53 = vpop.f32.mrb[58].mxu0 }
0x4a7e   :  { %v10566_v1 = vpop.f32.mrb[59].mxu0 }
0x4a81   :  { %v6208_v56 = vpop.f32.mrb[60].mxu0 }
0x4a82   :  { %v6209_v60 = vadd.f32 %v6208_v56, %v6056_v11  ;;  %v8572_v50 = vpop.f32.mrb[61].mxu0 }
0x4a84   :  { %v6213_v51 = vcombine.high %v6209_v60, %v6209_v60  ;;  %v6220_v49 = vrot.slane %v6209_v60, %v9492_v17  ;;  %7836 = vst.sshfl [vmem:[#allocation7] sm:$0x3 pattern:$0x76325410] %v6209_v60 }
0x4a86   :  { %v6227_v37 = vrot.slane %v6213_v51, %v9492_v17  ;;  %v6228_v42 = vcombine.high %v6220_v49, %v6220_v49  ;;  %7837 = vst.sshfl [vmem:[#allocation7 + $0x4] sm:$0x3 pattern:$0x76325410] %v6213_v51 }
0x4a88   :  { %v6229_v20 = vcombine.high %v6227_v37, %v6227_v37  ;;  %6235 = vst [vmem:[#allocation7 + $0x2] sm:$0x3] %v6228_v42 }
0x4a89   :  { %v10573_v44 = vpop.f32.mrb[62].mxu0 }
0x4a8a   :  { %6237 = vst [vmem:[#allocation7 + $0x6] sm:$0x3] %v6229_v20  ;;  %v6309_v25 = vpop.f32.mrb[63].mxu0 }
0x4a8b   :  { %v6319_v43 = vrot.slane %v6309_v25, %v9715_v59 }
0x4a8d   :  { %v6320_v14 = vcombine.high %v6319_v43, %v6319_v43  ;;  %v6327_v22 = vrot.slane %v6319_v43, %v9715_v59  ;;  %v5953_v43 = vld [vmem:[%s10901_s0 + $0x2f0] sm:$0xff] }
0x4a8f   :  { %v6334_v39 = vrot.slane %v6320_v14, %v9715_v59  ;;  %v6338_v58 = vrot.slane %v6327_v22, %v9720_v62  ;;  %v5954_v14 = vld [vmem:[%s10901_s0 + $0x300] sm:$0xff] }
0x4a90   :  { %v8891_v22 = vpack.c.bf16 %v5954_v14, %v5953_v43 }
0x4a91   :  { %v6342_v0 = vrot.slane %v6334_v39, %v9720_v62  ;;  %v6345_v55 = vadd.f32 %v6338_v58, %v10566_v1  ;;  %v5956_v39 = vld [vmem:[%s10901_s0 + $0x320] sm:$0xff] }
0x4a92   :  { %8892 = vmatpush3.bf16.msra.mxu1 %v8891_v22 }
0x4a93   :  { %v6346_v15 = vadd.f32 %v10564_v53, %v6342_v0  ;;  %9320 = vtanh.f32 %v6345_v55  ;;  %8893 = vmatprep.subr.bf16.mxu1 %v9410_v3 }
0x4a95   :  { %9322 = vtanh.f32 %v6346_v15 }
0x4a96   :  { %9324 = vtanh.f32 %v5859_v21 }
0x4a97   :  { %9326 = vpow2.f32 %v7831_v45 }
0x4a9d   :  { %v9321_v40 = vpop.eup %9320 }
0x4a9e   :  { %v6349_v7 = vmul.f32 %v9321_v40, %v10585_v54 }
0x4a9f   :  { %v9323_v41 = vpop.eup %9322 }
0x4aa0   :  { %v6351_v27 = vsel %vm153_vm3, %v6349_v7, 0.0  ;;  %v6350_v26 = vmul.f32 %v9323_v41, %v10585_v54  ;;  %v9325_v2 = vpop.eup %9324  ;;  %v5900_v41 = vld [vmem:[#allocation9 + $0x6] sm:$0x3] }
0x4aa1   :  { %6352 = vadd.xlane.f32.xlu0 %v6351_v27  ;;  %v9327_v18 = vpop.eup %9326 }
0x4aa2   :  { %v6354_v9 = vsel %vm153_vm3, %v6350_v26, 0.0  ;;  %v5863_v29 = vadd.f32 1.0, %v9327_v18  ;;  %v5898_v26 = vld [vmem:[#allocation9 + $0x2] sm:$0x3] }
0x4aa3   :  { %6355 = vadd.xlane.f32.xlu1 %v6354_v9  ;;  %v5899_v9 = vld [vmem:[#allocation9 + $0x4] sm:$0x3] }
0x4ab7   :  { %5869 = vrot.lane.b32.xlu0 %v9325_v2, %s9414_s25 }
0x4b2e   :  { %v6353_v31 = vpop.xlane.xlu0 %6352 }
0x4b2f   :  { %v6362_v57 = vrot.slane %v6353_v31, %v10288_v63 }
0x4b30   :  { %v6356_v46 = vpop.xlane.xlu1 %6355 }
0x4b31   :  { %v6366_v32 = vrot.slane %v6356_v46, %v10288_v63 }
0x4b32   :  { %v5870_v36 = vpop.permute.xlu0 %5869 }
0x4b33   :  { %v6367_v12 = vsel %vm4726_vm13, %v6366_v32, %v6362_v57  ;;  %v5897_v57 = vld [vmem:[#allocation9] sm:$0x3] }
0x4b34   :  { %v6369_v52 = vsel %vm4729_vm14, %v6367_v12, -inf  ;;  %v5927_v32 = vcombine.low %v5897_v57, %v5898_v26  ;;  %v5957_v12 = vld [vmem:[%s10901_s0 + $0x330] sm:$0xff] }
0x4b35   :  { %6370 = vmax.xlane.f32.xlu1 %v6369_v52  ;;  %v5958_v52 = vld [vmem:[%s10901_s0 + $0x340] sm:$0xff] }
0x4bc2   :  { %v6371_v35 = vpop.xlane.xlu1 %6370 }
0x4bc3   :  { %v6376_v19 = vrot.slane %v6371_v35, %v9720_v62  ;;  %v6380_v47 = vrot.slane %v6371_v35, %v10295_v13 }
0x4bc5   :  { %v6383_v5 = vsub.f32 %v6353_v31, %v6376_v19  ;;  %v6384_v8 = vsub.f32 %v6356_v46, %v6380_v47  ;;  %v5928_v31 = vcombine.low %v5899_v9, %v5900_v41  ;;  %v8897_v19 = vpack.c.bf16 %v5958_v52, %v5957_v12  ;;  %v6054_v9 = vld [vmem:[%s10901_s0 + $0x450] sm:$0xff] }
0x4bc6   :  { %v5935_v47 = vrot.slane %v5927_v32, %v9492_v17 }
0x4bc7   :  { %v6385_v28 = vmul.f32 1.442695, %v6383_v5  ;;  %v6387_v10 = vmul.f32 1.442695, %v6384_v8  ;;  %v5942_v35 = vrot.slane %v5928_v31, %v9492_v17  ;;  %v5959_v5 = vld [vmem:[%s10901_s0 + $0x350] sm:$0xff]  ;;  %v5960_v8 = vld [vmem:[%s10901_s0 + $0x360] sm:$0xff] }
0x4bc8   :  { %v8900_v18 = vpack.c.bf16 %v5960_v8, %v5959_v5 }
0x4bc9   :  { %9328 = vpow2.f32 %v6385_v28  ;;  %v5943_v28 = vcombine.low %v5935_v47, %v5942_v35 }
0x4bca   :  { %9330 = vpow2.f32 %v6387_v10  ;;  %v5961_v10 = vld [vmem:[%s10901_s0 + $0x370] sm:$0xff] }
0x4bcb   :  { %9332 = vrcp.f32 %v5863_v29  ;;  %v9408_v29 = vld [vmem:[%s10901_s0 + $0x40] sm:$0xff] }
0x4bd3   :  { %v9329_v34 = vpop.eup %9328 }
0x4bd4   :  { %6392 = vperm.xlu1 %9051, %v9329_v34   ;;  %v9331_v6 = vpop.eup %9330 }
0x4bd5   :  { %v9333_v21 = vpop.eup %9332 }
0x4bd6   :  { %v5872_v38 = vmul.f32 %v9333_v21, %v5870_v36  ;;  %v5867_v51 = vmul.f32 %v9333_v21, %v10448_v24  ;;  %v5955_v24 = vld [vmem:[%s10901_s0 + $0x310] sm:$0xff] }
0x4bd7   :  { %v8894_v58 = vpack.c.bf16 %v5956_v39, %v5955_v24 }
0x4bd8   :  { %6395 = vperm.xlu1 %9051, %v9331_v6  }
0x4bd9   :  { %8895 = vmatpush3.bf16.msra.mxu1 %v8894_v58  ;;  %v6052_v58 = vld [vmem:[%s10901_s0 + $0x430] sm:$0xff] }
0x4bda   :  { %8896 = vmatprep.subr.bf16.mxu1 %v9410_v3 }
0x4bdc   :  { %5874 = vrot.lane.b32.xlu1 %v5872_v38, %s9415_s26  ;;  %v5894_v38 = vld [vmem:[#allocation8 + $0x2] sm:$0x3] }
0x4bdd   :  { %8898 = vmatpush3.bf16.msra.mxu1 %v8897_v19  ;;  %v5962_v19 = vld [vmem:[%s10901_s0 + $0x380] ss:$0 sm:$0xff] }
0x4bde   :  { %8899 = vmatprep.subr.bf16.mxu1 %v9410_v3 }
0x4be1   :  { %8901 = vmatpush3.bf16.msra.mxu1 %v8900_v18 }
0x4be2   :  { %8552 = vmatprep.subr.mxu1 %v9412_v4 }
0x4be5   :  { %8553 = vmatpush3.msra.mxu1 %v5961_v10 }
0x4be6   :  { %8918 = vmatprep.subr.bf16.mxu1 %v9410_v3 }
0x4c53   :  { %v6393_v11 = vpop.permute.xlu1 %6392 }
0x4c54   :  { %v6400_v60 = vrot.slane %v6393_v11, %v10288_v63  ;;  %v5895_v11 = vld [vmem:[#allocation8 + $0x4] sm:$0x3] }
0x4c57   :  { %v6396_v56 = vpop.permute.xlu1 %6395 }
0x4c58   :  { %v6404_v50 = vrot.slane %v6396_v56, %v10288_v63 }
0x4c5a   :  { %v6405_v49 = vsel %vm4726_vm13, %v6404_v50, %v6400_v60  ;;  %v5893_v50 = vld [vmem:[#allocation8] sm:$0x3] }
0x4c5b   :  { %v5875_v37 = vpop.permute.xlu1 %5874  ;;  %v6407_v42 = vsel %vm4729_vm14, %v6405_v49, 0.0 }
0x4c5c   :  { %v5877_v20 = vadd.f32 %v5875_v37, %v5867_v51  ;;  %6408 = vadd.xlane.f32.xlu0 %v6407_v42  ;;  %v5905_v37 = vcombine.low %v5893_v50, %v5894_v38 }
0x4c5e   :  { %9334 = vtanh.f32 %v5877_v20  ;;  %v5913_v22 = vrot.slane %v5905_v37, %v9492_v17 }
0x4c68   :  { %v9335_v25 = vpop.eup %9334 }
0x4c69   :  { %5880 = vrot.lane.b32.xlu1 %v9335_v25, %s9414_s25 }
0x4cdb   :  { %v5881_v0 = vpop.permute.xlu1 %5880 }
0x4cdc   :  { %v5883_v55 = vmul.f32 %v9333_v21, %v5881_v0  ;;  %v6053_v0 = vld [vmem:[%s10901_s0 + $0x440] sm:$0xff] }
0x4cde   :  { %5885 = vrot.lane.b32.xlu1 %v5883_v55, %s9415_s26 }
0x4ce9   :  { %v6409_v15 = vpop.xlane.xlu0 %6408 }
0x4cea   :  { %v6414_v40 = vrot.slane %v6409_v15, %v9720_v62  ;;  %v6418_v7 = vrot.slane %v6409_v15, %v10295_v13 }
0x4cec   :  { %9336 = vrcp.f32 %v6414_v40 }
0x4ced   :  { %9338 = vrcp.f32 %v6418_v7  ;;  %v10660_v7 = vpack.c.bf16 %v6053_v0, %v6052_v58 }
0x4cf6   :  { %v9337_v27 = vpop.eup %9336 }
0x4cf7   :  { %v6422_v2 = vmul.f32 %v9337_v27, %v9329_v34  ;;  %v9339_v46 = vpop.eup %9338 }
0x4cf8   :  { %v6424_v45 = vmul.f32 %v9339_v46, %v9331_v6 }
0x4cf9   :  { %6427 = vperm.xlu1 %9051, %v6422_v2   ;;  %v6055_v2 = vld [vmem:[%s10901_s0 + $0x460] sm:$0xff] }
0x4cfa   :  { %v10672_v32 = vpack.c.bf16 %v6055_v2, %v6054_v9 }
0x4cfd   :  { %6432 = vperm.xlu1 %9051, %v6424_v45  }
0x4d01   :  { %5944 = vrot.lane.b32.xlu1 %v5943_v28, %s9415_s26  ;;  %v6451_v28 = vld [vmem:[#allocation7] sm:$0x3] }
0x4d02   :  { %v6452_v18 = vadd.f32 %v6451_v28, %v10573_v44 }
0x4d05   :  { %5947 = vrot.lane.b32.xlu1 %v9408_v29, %s9414_s25 }
0x4d50   :  { %v5886_v34 = vpop.permute.xlu1 %5885 }
0x4d51   :  { %5889 = vst.msk [vmem:[#allocation8 + $0x6] sm:$0x3] %vm256_vm2, %v5886_v34 }
0x4d58   :  { %v5896_v6 = vld [vmem:[#allocation8 + $0x6] sm:$0x3] }
0x4d59   :  { %v5906_v56 = vcombine.low %v5895_v11, %v5896_v6 }
0x4d5b   :  { %v5920_v25 = vrot.slane %v5906_v56, %v9492_v17 }
0x4d5d   :  { %v5921_v40 = vcombine.low %v5913_v22, %v5920_v25 }
0x4d78   :  { %v6428_v36 = vpop.permute.xlu1 %6427 }
0x4d79   :  { %v6435_v21 = vmul.f32 %v6428_v36, %v9781_v23 }
0x4d7b   :  { %v6437_v60 = vsel %vm153_vm3, %v6435_v21, 0.0 }
0x4d7c   :  { %v6438_v51 = vrot.slane %v6437_v60, 4  ;;  %v6433_v49 = vpop.permute.xlu1 %6432 }
0x4d7d   :  { %v6436_v42 = vmul.f32 %v6433_v49, %v9793_v33 }
0x4d7e   :  { %v6439_v20 = vadd.f32 %v6438_v51, %v6437_v60 }
0x4d7f   :  { %v6444_v43 = vsel %vm153_vm3, %v6436_v42, 0.0 }
0x4d80   :  { %v6440_v14 = vrot.slane %v6439_v20, 2  ;;  %v6445_v24 = vrot.slane %v6444_v43, 4  ;;  %v5945_v39 = vpop.permute.xlu1 %5944 }
0x4d81   :  { %v5950_v27 = vsel %vm153_vm3, %v5921_v40, %v5945_v39 }
0x4d82   :  { %v6441_v55 = vadd.f32 %v6440_v14, %v6439_v20  ;;  %v6446_v15 = vadd.f32 %v6445_v24, %v6444_v43 }
0x4d84   :  { %v6447_v41 = vrot.slane %v6446_v15, 2  ;;  %v5948_v26 = vpop.permute.xlu1 %5947  ;;  %v6442_v46 = vrot.slane %v6441_v55, 1 }
0x4d85   :  { %v5952_v31 = vsel %vm5951_vm15, %v5950_v27, %v5948_v26 }
0x4d86   :  { %v6448_v57 = vadd.f32 %v6447_v41, %v6446_v15  ;;  %8555 = vmatmul.mubr.msk.f32.vlgmr.msra.gmra.mrb[58].mxu1 %vm5963_vm0, %v5952_v31  ;;  %v6443_v52 = vadd.f32 %v6442_v46, %v6441_v55 }
0x4d87   :  { %8920 = vmatpush3.bf16.msra.mxu1 %v10660_v7  ;;  %8581 = vmatprep.mubr.msk.f32.mxu1 %vm9411_vm1, %v9412_v4 }
0x4d88   :  { %v6449_v12 = vrot.slane %v6448_v57, 1  ;;  %8921 = vmatprep.subr.bf16.mxu1 %v9410_v3 }
0x4d8a   :  { %v6450_v45 = vadd.f32 %v6449_v12, %v6448_v57 }
0x4d8b   :  { %8923 = vmatpush3.bf16.msra.mxu1 %v10672_v32 }
0x4d8c   :  { %v6455_v35 = vsel %vm4726_vm13, %v6450_v45, %v6443_v52  ;;  %8932 = vmatprep.subr.bf16.mxu1 %v9410_v3 }
0x4d8d   :  { %6559 = vst.msk [vmem:[#allocation11] sm:$0x3] %vm256_vm2, %v6455_v35 }
0x4d8e   :  { %8582 = vmatmul.mubr.msk.f32.vlgmr.msra.gmra.mrb[60].mxu1 %vm153_vm3, %v6455_v35 }
0x4d8f   :  { %8934 = vmatpush3.bf16.msra.mxu1 %v10660_v7  ;;  %8592 = vmatprep.mubr.msk.f32.mxu1 %vm9411_vm1, %v9412_v4 }
0x4d90   :  { %8935 = vmatprep.subr.bf16.mxu1 %v9410_v3 }
0x4d93   :  { %8937 = vmatpush3.bf16.msra.mxu1 %v10672_v32 }
0x4d94   :  { %8946 = vmatprep.subr.bf16.mxu1 %v9410_v3 }
0x4e59   :  { %v6033_v47 = vpop.f32.mrb[58].mxu1 }
0x4e5a   :  { %v6034_v5 = vadd.f32 %v6033_v47, %v5962_v19  ;;  %v8556_v8 = vpop.f32.mrb[59].mxu1 }
0x4e5c   :  { %6037 = vst [vmem:[%s10902_s1] sm:$0xff] %v6034_v5 }
0x4e61   :  { %v6524_v10 = vpop.f32.mrb[60].mxu1 }
0x4e62   :  { %v6528_v29 = vadd.f32 %v6524_v10, %v6452_v18  ;;  %v8583_v34 = vpop.f32.mrb[61].mxu1 }
0x4e64   :  { %9340 = vtanh.f32 %v6528_v29  ;;  %v7840_v36 = vmul.f32 -1.442695, %v6528_v29 }
0x4e66   :  { %9342 = vpow2.f32 %v7840_v36 }
0x4e6e   :  { %v9341_v6 = vpop.eup %9340 }
0x4e6f   :  { %6538 = vrot.lane.b32.xlu1 %v9341_v6, %s9414_s25 }
0x4e70   :  { %v9343_v21 = vpop.eup %9342 }
0x4e71   :  { %v6532_v38 = vadd.f32 1.0, %v9343_v21 }
0x4e73   :  { %9344 = vrcp.f32 %v6532_v38 }
0x4e7d   :  { %v9345_v11 = vpop.eup %9344 }
0x4e7e   :  { %v6536_v50 = vmul.f32 0.0, %v9345_v11 }
0x4ee1   :  { %v6539_v56 = vpop.permute.xlu1 %6538 }
0x4ee2   :  { %v6541_v60 = vmul.f32 %v9345_v11, %v6539_v56 }
0x4ee4   :  { %6543 = vrot.lane.b32.xlu0 %v6541_v60, %s9415_s26 }
0x4f56   :  { %v6544_v51 = vpop.permute.xlu0 %6543 }
0x4f57   :  { %v10697_v44 = vadd.f32 %v6544_v51, %v6536_v50 }
0x4f59   :  { %9346 = vtanh.f32 %v10697_v44 }
0x4f63   :  { %v9347_v49 = vpop.eup %9346 }
0x4f64   :  { %6549 = vrot.lane.b32.xlu1 %v9347_v49, %s9414_s25 }
0x4fd6   :  { %v6550_v37 = vpop.permute.xlu1 %6549 }
0x4fd7   :  { %v6552_v42 = vmul.f32 %v9345_v11, %v6550_v37 }
0x4fd9   :  { %6554 = vrot.lane.b32.xlu1 %v6552_v42, %s9415_s26 }
0x504b   :  { %v6555_v20 = vpop.permute.xlu1 %6554 }
0x504c   :  { %6557 = vst.msk [vmem:[#allocation10] sm:$0x3] %vm256_vm2, %v6555_v20  ;;  %7841 = vmatmul.mubr.msk.f32.vlgmr.msra.gmra.mrb[64].mxu0 %vm153_vm3, %v6555_v20 }
0x504d   :  { %8941 = vmatpush1.bf16.msra.mxu0 %v10538_v16  ;;  %6950 = vmatprep.mubr.f32.mxu0 %v9412_v4 }
0x504e   :  { %8943 = vmatprep.subr.bf16.mxu0 %v10541_v61 }
0x5051   :  { %8945 = vmatpush1.bf16.msra.mxu0 %v10551_v30 }
0x5052   :  { %8953 = vmatprep.subr.bf16.mxu0 %v10517_v48 }
0x511f   :  { %v10709_v25 = vpop.f32.mrb[64].mxu0 }
0x5120   :  { %v6630_v43 = vpop.f32.mrb[65].mxu0 }
0x5121   :  { %v6640_v14 = vrot.slane %v6630_v43, %v9715_v59 }
0x5123   :  { %v6641_v24 = vcombine.high %v6640_v14, %v6640_v14  ;;  %v6648_v22 = vrot.slane %v6640_v14, %v9715_v59 }
0x5125   :  { %v6655_v39 = vrot.slane %v6641_v24, %v9715_v59  ;;  %v6659_v58 = vrot.slane %v6648_v22, %v9720_v62 }
0x5127   :  { %v6663_v0 = vrot.slane %v6655_v39, %v9720_v62  ;;  %v6666_v55 = vadd.f32 %v6659_v58, %v10566_v1 }
0x5129   :  { %v6667_v15 = vadd.f32 %v10564_v53, %v6663_v0  ;;  %9348 = vtanh.f32 %v6666_v55 }
0x512b   :  { %9350 = vtanh.f32 %v6667_v15 }
0x5133   :  { %v9349_v48 = vpop.eup %9348 }
0x5134   :  { %v6670_v40 = vmul.f32 %v9349_v48, %v10585_v54 }
0x5135   :  { %v9351_v41 = vpop.eup %9350 }
0x5136   :  { %v6672_v27 = vsel %vm153_vm3, %v6670_v40, 0.0  ;;  %v6671_v26 = vmul.f32 %v9351_v41, %v10585_v54 }
0x5137   :  { %6673 = vadd.xlane.f32.xlu1 %v6672_v27 }
0x5138   :  { %v6675_v9 = vsel %vm153_vm3, %v6671_v26, 0.0 }
0x5139   :  { %6676 = vadd.xlane.f32.xlu0 %v6675_v9 }
0x51c4   :  { %v6674_v2 = vpop.xlane.xlu1 %6673 }
0x51c5   :  { %v6683_v46 = vrot.slane %v6674_v2, %v10288_v63 }
0x51c6   :  { %v6677_v31 = vpop.xlane.xlu0 %6676 }
0x51c7   :  { %v6687_v57 = vrot.slane %v6677_v31, %v10288_v63 }
0x51c9   :  { %v6688_v12 = vsel %vm4726_vm13, %v6687_v57, %v6683_v46  ;;  %v6773_v46 = vld [vmem:[#allocation7 + $0x2] sm:$0x3] }
0x51ca   :  { %v6690_v52 = vsel %vm4729_vm14, %v6688_v12, -inf  ;;  %v6774_v57 = vadd.f32 %v6773_v46, %v10709_v25 }
0x51cb   :  { %6691 = vmax.xlane.f32.xlu1 %v6690_v52 }
0x5258   :  { %v6692_v45 = vpop.xlane.xlu1 %6691 }
0x5259   :  { %v6697_v35 = vrot.slane %v6692_v45, %v9720_v62  ;;  %v6701_v19 = vrot.slane %v6692_v45, %v10295_v13 }
0x525b   :  { %v6704_v47 = vsub.f32 %v6674_v2, %v6697_v35  ;;  %v6705_v5 = vsub.f32 %v6677_v31, %v6701_v19 }
0x525d   :  { %v6706_v8 = vmul.f32 1.442695, %v6704_v47  ;;  %v6708_v28 = vmul.f32 1.442695, %v6705_v5 }
0x525f   :  { %9352 = vpow2.f32 %v6706_v8 }
0x5260   :  { %9354 = vpow2.f32 %v6708_v28 }
0x5269   :  { %v9353_v18 = vpop.eup %9352 }
0x526a   :  { %v9355_v10 = vpop.eup %9354  ;;  %6713 = vperm.xlu1 %9051, %v9353_v18  }
0x526b   :  { %6716 = vperm.xlu0 %9050, %v9355_v10  }
0x52e9   :  { %v6714_v29 = vpop.permute.xlu1 %6713 }
0x52ea   :  { %v6717_v34 = vpop.permute.xlu0 %6716  ;;  %v6721_v6 = vrot.slane %v6714_v29, %v10288_v63 }
0x52eb   :  { %v6725_v36 = vrot.slane %v6717_v34, %v10288_v63 }
0x52ed   :  { %v6726_v21 = vsel %vm4726_vm13, %v6725_v36, %v6721_v6 }
0x52ee   :  { %v6728_v38 = vsel %vm4729_vm14, %v6726_v21, 0.0 }
0x52ef   :  { %6729 = vadd.xlane.f32.xlu1 %v6728_v38 }
0x537c   :  { %v6730_v11 = vpop.xlane.xlu1 %6729 }
0x537d   :  { %v6735_v56 = vrot.slane %v6730_v11, %v9720_v62  ;;  %v6739_v60 = vrot.slane %v6730_v11, %v10295_v13 }
0x537f   :  { %9356 = vrcp.f32 %v6735_v56 }
0x5380   :  { %9358 = vrcp.f32 %v6739_v60 }
0x5389   :  { %v9357_v50 = vpop.eup %9356 }
0x538a   :  { %v6743_v51 = vmul.f32 %v9357_v50, %v9353_v18  ;;  %v9359_v49 = vpop.eup %9358 }
0x538b   :  { %v6745_v37 = vmul.f32 %v9359_v49, %v9355_v10 }
0x538c   :  { %6748 = vperm.xlu0 %9050, %v6743_v51  }
0x5390   :  { %6753 = vperm.xlu0 %9050, %v6745_v37  }
0x540b   :  { %v6749_v42 = vpop.permute.xlu0 %6748 }
0x540c   :  { %v6756_v20 = vmul.f32 %v6749_v42, %v9781_v23 }
0x540e   :  { %v6758_v43 = vsel %vm153_vm3, %v6756_v20, 0.0 }
0x540f   :  { %v6759_v14 = vrot.slane %v6758_v43, 4  ;;  %v6754_v24 = vpop.permute.xlu0 %6753 }
0x5410   :  { %v6757_v22 = vmul.f32 %v6754_v24, %v9793_v33 }
0x5411   :  { %v6760_v39 = vadd.f32 %v6759_v14, %v6758_v43 }
0x5412   :  { %v6765_v58 = vsel %vm153_vm3, %v6757_v22, 0.0 }
0x5413   :  { %v6761_v0 = vrot.slane %v6760_v39, 2  ;;  %v6766_v55 = vrot.slane %v6765_v58, 4 }
0x5415   :  { %v6762_v15 = vadd.f32 %v6761_v0, %v6760_v39  ;;  %v6767_v48 = vadd.f32 %v6766_v55, %v6765_v58 }
0x5417   :  { %v6768_v40 = vrot.slane %v6767_v48, 2  ;;  %v6763_v41 = vrot.slane %v6762_v15, 1 }
0x5419   :  { %v6769_v27 = vadd.f32 %v6768_v40, %v6767_v48  ;;  %v6764_v9 = vadd.f32 %v6763_v41, %v6762_v15 }
0x541b   :  { %v6770_v26 = vrot.slane %v6769_v27, 1 }
0x541d   :  { %v6771_v2 = vadd.f32 %v6770_v26, %v6769_v27 }
0x541f   :  { %v6777_v31 = vsel %vm4726_vm13, %v6771_v2, %v6764_v9 }
0x5420   :  { %8593 = vmatmul.mubr.msk.f32.vlgmr.msra.gmra.mrb[62].mxu1 %vm153_vm3, %v6777_v31  ;;  %6883 = vst.msk [vmem:[#allocation11 + $0x2] sm:$0x3] %vm256_vm2, %v6777_v31 }
0x5421   :  { %8948 = vmatpush3.bf16.msra.mxu1 %v10660_v7  ;;  %8603 = vmatprep.mubr.msk.f32.mxu1 %vm9411_vm1, %v9412_v4 }
0x5422   :  { %8949 = vmatprep.subr.bf16.mxu1 %v9410_v3 }
0x5425   :  { %8951 = vmatpush3.bf16.msra.mxu1 %v10672_v32 }
0x5426   :  { %8960 = vmatprep.subr.bf16.mxu1 %v9410_v3 }
0x54f3   :  { %v6846_v12 = vpop.f32.mrb[62].mxu1 }
0x54f4   :  { %v6850_v52 = vadd.f32 %v6846_v12, %v6774_v57  ;;  %v8594_v45 = vpop.f32.mrb[63].mxu1 }
0x54f6   :  { %9360 = vtanh.f32 %v6850_v52  ;;  %v7843_v19 = vmul.f32 -1.442695, %v6850_v52 }
0x54f8   :  { %9362 = vpow2.f32 %v7843_v19 }
0x5500   :  { %v9361_v35 = vpop.eup %9360 }
0x5501   :  { %6860 = vrot.lane.b32.xlu0 %v9361_v35, %s9414_s25 }
0x5502   :  { %v9363_v47 = vpop.eup %9362 }
0x5503   :  { %v6854_v5 = vadd.f32 1.0, %v9363_v47 }
0x5505   :  { %9364 = vrcp.f32 %v6854_v5 }
0x550f   :  { %v9365_v8 = vpop.eup %9364 }
0x5510   :  { %v6858_v10 = vmul.f32 %v9365_v8, %v10697_v44 }
0x5573   :  { %v6861_v28 = vpop.permute.xlu0 %6860 }
0x5574   :  { %v6863_v18 = vmul.f32 %v9365_v8, %v6861_v28 }
0x5576   :  { %6865 = vrot.lane.b32.xlu0 %v6863_v18, %s9415_s26 }
0x55e8   :  { %v6866_v25 = vpop.permute.xlu0 %6865 }
0x55e9   :  { %v10751_v29 = vadd.f32 %v6866_v25, %v6858_v10 }
0x55eb   :  { %9366 = vtanh.f32 %v10751_v29 }
0x55f5   :  { %v9367_v34 = vpop.eup %9366 }
0x55f6   :  { %6871 = vrot.lane.b32.xlu0 %v9367_v34, %s9414_s25 }
0x5668   :  { %v6872_v6 = vpop.permute.xlu0 %6871 }
0x5669   :  { %v6874_v36 = vmul.f32 %v9365_v8, %v6872_v6 }
0x566b   :  { %6876 = vrot.lane.b32.xlu0 %v6874_v36, %s9415_s26 }
0x56dd   :  { %v6877_v21 = vpop.permute.xlu0 %6876 }
0x56de   :  { %6880 = vst.msk [vmem:[#allocation10 + $0x2] sm:$0x3] %vm256_vm2, %v6877_v21  ;;  %7844 = vmatmul.mubr.msk.f32.vlgmr.msra.gmra.mrb[66].mxu0 %vm153_vm3, %v6877_v21 }
0x56df   :  { %8955 = vmatpush1.bf16.msra.mxu0 %v10538_v16  ;;  %7274 = vmatprep.mubr.f32.mxu0 %v9412_v4 }
0x56e0   :  { %8957 = vmatprep.subr.bf16.mxu0 %v10541_v61 }
0x56e3   :  { %8959 = vmatpush1.bf16.msra.mxu0 %v10551_v30 }
0x56e4   :  { %8966 = vmatprep.subr.bf16.mxu0 %v9410_v3 }
0x57b1   :  { %v10763_v44 = vpop.f32.mrb[66].mxu0 }
0x57b2   :  { %v6954_v38 = vpop.f32.mrb[67].mxu0 }
0x57b3   :  { %v6964_v11 = vrot.slane %v6954_v38, %v9715_v59 }
0x57b5   :  { %v6965_v56 = vcombine.high %v6964_v11, %v6964_v11  ;;  %v6972_v60 = vrot.slane %v6964_v11, %v9715_v59 }
0x57b7   :  { %v6979_v50 = vrot.slane %v6965_v56, %v9715_v59  ;;  %v6983_v16 = vrot.slane %v6972_v60, %v9720_v62 }
0x57b9   :  { %v6987_v51 = vrot.slane %v6979_v50, %v9720_v62  ;;  %v6990_v61 = vadd.f32 %v6983_v16, %v10566_v1 }
0x57bb   :  { %v6991_v30 = vadd.f32 %v10564_v53, %v6987_v51  ;;  %9368 = vtanh.f32 %v6990_v61 }
0x57bd   :  { %9370 = vtanh.f32 %v6991_v30 }
0x57c5   :  { %v9369_v49 = vpop.eup %9368 }
0x57c6   :  { %v6994_v37 = vmul.f32 %v9369_v49, %v10585_v54 }
0x57c7   :  { %v9371_v42 = vpop.eup %9370 }
0x57c8   :  { %v6996_v20 = vsel %vm153_vm3, %v6994_v37, 0.0  ;;  %v6995_v43 = vmul.f32 %v9371_v42, %v10585_v54 }
0x57c9   :  { %6997 = vadd.xlane.f32.xlu0 %v6996_v20 }
0x57ca   :  { %v6999_v14 = vsel %vm153_vm3, %v6995_v43, 0.0 }
0x57cb   :  { %7000 = vadd.xlane.f32.xlu1 %v6999_v14  ;;  %v7097_v14 = vld [vmem:[#allocation7 + $0x4] sm:$0x3] }
0x5856   :  { %v6998_v24 = vpop.xlane.xlu0 %6997 }
0x5857   :  { %v7007_v39 = vrot.slane %v6998_v24, %v10288_v63 }
0x5858   :  { %v7001_v22 = vpop.xlane.xlu1 %7000 }
0x5859   :  { %v7011_v58 = vrot.slane %v7001_v22, %v10288_v63 }
0x585b   :  { %v7012_v0 = vsel %vm4726_vm13, %v7011_v58, %v7007_v39 }
0x585c   :  { %v7014_v55 = vsel %vm4729_vm14, %v7012_v0, -inf }
0x585d   :  { %7015 = vmax.xlane.f32.xlu1 %v7014_v55 }
0x58ea   :  { %v7016_v15 = vpop.xlane.xlu1 %7015 }
0x58eb   :  { %v7021_v48 = vrot.slane %v7016_v15, %v9720_v62  ;;  %v7025_v40 = vrot.slane %v7016_v15, %v10295_v13 }
0x58ed   :  { %v7028_v41 = vsub.f32 %v6998_v24, %v7021_v48  ;;  %v7029_v27 = vsub.f32 %v7001_v22, %v7025_v40  ;;  %v7098_v24 = vadd.f32 %v7097_v14, %v10763_v44 }
0x58ef   :  { %v7030_v26 = vmul.f32 1.442695, %v7028_v41  ;;  %v7032_v9 = vmul.f32 1.442695, %v7029_v27 }
0x58f1   :  { %9372 = vpow2.f32 %v7030_v26 }
0x58f2   :  { %9374 = vpow2.f32 %v7032_v9 }
0x58fb   :  { %v9373_v2 = vpop.eup %9372 }
0x58fc   :  { %7037 = vperm.xlu1 %9051, %v9373_v2   ;;  %v9375_v31 = vpop.eup %9374 }
0x5900   :  { %7040 = vperm.xlu1 %9051, %v9375_v31  }
0x597b   :  { %v7038_v46 = vpop.permute.xlu1 %7037 }
0x597c   :  { %v7045_v12 = vrot.slane %v7038_v46, %v10288_v63 }
0x597f   :  { %v7041_v57 = vpop.permute.xlu1 %7040 }
0x5980   :  { %v7049_v52 = vrot.slane %v7041_v57, %v10288_v63 }
0x5982   :  { %v7050_v45 = vsel %vm4726_vm13, %v7049_v52, %v7045_v12 }
0x5983   :  { %v7052_v35 = vsel %vm4729_vm14, %v7050_v45, 0.0 }
0x5984   :  { %7053 = vadd.xlane.f32.xlu0 %v7052_v35 }
0x5a11   :  { %v7054_v19 = vpop.xlane.xlu0 %7053 }
0x5a12   :  { %v7059_v47 = vrot.slane %v7054_v19, %v9720_v62  ;;  %v7063_v5 = vrot.slane %v7054_v19, %v10295_v13 }
0x5a14   :  { %9376 = vrcp.f32 %v7059_v47 }
0x5a15   :  { %9378 = vrcp.f32 %v7063_v5 }
0x5a1e   :  { %v9377_v8 = vpop.eup %9376 }
0x5a1f   :  { %v9379_v28 = vpop.eup %9378  ;;  %v7067_v18 = vmul.f32 %v9377_v8, %v9373_v2 }
0x5a20   :  { %v7069_v10 = vmul.f32 %v9379_v28, %v9375_v31 }
0x5a21   :  { %7072 = vperm.xlu1 %9051, %v7067_v18  }
0x5a22   :  { %7077 = vperm.xlu0 %9050, %v7069_v10  }
0x5aa0   :  { %v7073_v25 = vpop.permute.xlu1 %7072 }
0x5aa1   :  { %v7078_v34 = vpop.permute.xlu0 %7077  ;;  %v7080_v6 = vmul.f32 %v7073_v25, %v9781_v23 }
0x5aa2   :  { %v7081_v36 = vmul.f32 %v7078_v34, %v9793_v33 }
0x5aa3   :  { %v7082_v21 = vsel %vm153_vm3, %v7080_v6, 0.0 }
0x5aa4   :  { %v7089_v38 = vsel %vm153_vm3, %v7081_v36, 0.0  ;;  %v7083_v11 = vrot.slane %v7082_v21, 4 }
0x5aa5   :  { %v7090_v56 = vrot.slane %v7089_v38, 4 }
0x5aa6   :  { %v7084_v60 = vadd.f32 %v7083_v11, %v7082_v21 }
0x5aa7   :  { %v7091_v50 = vadd.f32 %v7090_v56, %v7089_v38 }
0x5aa8   :  { %v7085_v16 = vrot.slane %v7084_v60, 2 }
0x5aa9   :  { %v7092_v51 = vrot.slane %v7091_v50, 2 }
0x5aaa   :  { %v7086_v61 = vadd.f32 %v7085_v16, %v7084_v60 }
0x5aab   :  { %v7093_v30 = vadd.f32 %v7092_v51, %v7091_v50 }
0x5aac   :  { %v7087_v49 = vrot.slane %v7086_v61, 1 }
0x5aad   :  { %v7094_v37 = vrot.slane %v7093_v30, 1 }
0x5aae   :  { %v7088_v42 = vadd.f32 %v7087_v49, %v7086_v61 }
0x5aaf   :  { %v7095_v20 = vadd.f32 %v7094_v37, %v7093_v30 }
0x5ab1   :  { %v7101_v43 = vsel %vm4726_vm13, %v7095_v20, %v7088_v42 }
0x5ab2   :  { %8604 = vmatmul.mubr.msk.f32.vlgmr.msra.gmra.mrb[64].mxu1 %vm153_vm3, %v7101_v43  ;;  %7207 = vst.msk [vmem:[#allocation11 + $0x4] sm:$0x3] %vm256_vm2, %v7101_v43 }
0x5ab3   :  { %8962 = vmatpush3.bf16.msra.mxu1 %v10660_v7  ;;  %8614 = vmatprep.mubr.msk.f32.mxu1 %vm9411_vm1, %v9412_v4 }
0x5ab4   :  { %8963 = vmatprep.subr.bf16.mxu1 %v9410_v3 }
0x5ab7   :  { %8965 = vmatpush3.bf16.msra.mxu1 %v10672_v32 }
0x5b85   :  { %v7170_v22 = vpop.f32.mrb[64].mxu1 }
0x5b86   :  { %v7174_v39 = vadd.f32 %v7170_v22, %v7098_v24  ;;  %v8605_v58 = vpop.f32.mrb[65].mxu1 }
0x5b88   :  { %9380 = vtanh.f32 %v7174_v39  ;;  %v7846_v55 = vmul.f32 -1.442695, %v7174_v39 }
0x5b8a   :  { %9382 = vpow2.f32 %v7846_v55 }
0x5b92   :  { %v9381_v0 = vpop.eup %9380 }
0x5b93   :  { %7184 = vrot.lane.b32.xlu1 %v9381_v0, %s9414_s25 }
0x5b94   :  { %v9383_v7 = vpop.eup %9382 }
0x5b95   :  { %v7178_v15 = vadd.f32 1.0, %v9383_v7 }
0x5b97   :  { %9384 = vrcp.f32 %v7178_v15 }
0x5ba1   :  { %v9385_v48 = vpop.eup %9384 }
0x5ba2   :  { %v7182_v32 = vmul.f32 %v9385_v48, %v10751_v29 }
0x5c05   :  { %v7185_v40 = vpop.permute.xlu1 %7184 }
0x5c06   :  { %v7187_v41 = vmul.f32 %v9385_v48, %v7185_v40 }
0x5c08   :  { %7189 = vrot.lane.b32.xlu1 %v7187_v41, %s9415_s26 }
0x5c7a   :  { %v7190_v44 = vpop.permute.xlu1 %7189 }
0x5c7b   :  { %v10804_v27 = vadd.f32 %v7190_v44, %v7182_v32 }
0x5c7d   :  { %9386 = vtanh.f32 %v10804_v27 }
0x5c87   :  { %v9387_v26 = vpop.eup %9386 }
0x5c88   :  { %7195 = vrot.lane.b32.xlu1 %v9387_v26, %s9414_s25 }
0x5cfa   :  { %v7196_v9 = vpop.permute.xlu1 %7195 }
0x5cfb   :  { %v7198_v2 = vmul.f32 %v9385_v48, %v7196_v9 }
0x5cfd   :  { %7200 = vrot.lane.b32.xlu1 %v7198_v2, %s9415_s26 }
0x5d6f   :  { %v7201_v31 = vpop.permute.xlu1 %7200 }
0x5d70   :  { %7204 = vst.msk [vmem:[#allocation10 + $0x4] sm:$0x3] %vm256_vm2, %v7201_v31  ;;  %7847 = vmatmul.mubr.msk.f32.vlgmr.msra.gmra.mrb[68].mxu0 %vm153_vm3, %v7201_v31 }
0x5d71   :  { %8635 = vmatprep.mubr.msk.f32.mxu0 %vm9411_vm1, %v9412_v4 }
0x5e43   :  { %v10813_v29 = vpop.f32.mrb[68].mxu0 }
0x5e44   :  { %v7278_v46 = vpop.f32.mrb[69].mxu0 }
0x5e45   :  { %v7288_v57 = vrot.slane %v7278_v46, %v9715_v59 }
0x5e47   :  { %v7289_v12 = vcombine.high %v7288_v57, %v7288_v57  ;;  %v7296_v52 = vrot.slane %v7288_v57, %v9715_v59 }
0x5e49   :  { %v7303_v45 = vrot.slane %v7289_v12, %v9715_v59  ;;  %v7307_v35 = vrot.slane %v7296_v52, %v9720_v62 }
0x5e4b   :  { %v7311_v19 = vrot.slane %v7303_v45, %v9720_v62  ;;  %v7314_v47 = vadd.f32 %v7307_v35, %v10566_v1 }
0x5e4d   :  { %v7315_v5 = vadd.f32 %v10564_v53, %v7311_v19  ;;  %9388 = vtanh.f32 %v7314_v47 }
0x5e4f   :  { %9390 = vtanh.f32 %v7315_v5 }
0x5e57   :  { %v9389_v8 = vpop.eup %9388 }
0x5e58   :  { %v7318_v28 = vmul.f32 %v9389_v8, %v10585_v54 }
0x5e59   :  { %v9391_v18 = vpop.eup %9390 }
0x5e5a   :  { %v7320_v10 = vsel %vm153_vm3, %v7318_v28, 0.0  ;;  %v7319_v25 = vmul.f32 %v9391_v18, %v10585_v54 }
0x5e5b   :  { %7321 = vadd.xlane.f32.xlu1 %v7320_v10 }
0x5e5c   :  { %v7323_v59 = vsel %vm153_vm3, %v7319_v25, 0.0 }
0x5e5d   :  { %7324 = vadd.xlane.f32.xlu0 %v7323_v59 }
0x5ee8   :  { %v7322_v34 = vpop.xlane.xlu1 %7321 }
0x5ee9   :  { %v7331_v1 = vrot.slane %v7322_v34, %v10288_v63 }
0x5eea   :  { %v7325_v6 = vpop.xlane.xlu0 %7324 }
0x5eeb   :  { %v7335_v53 = vrot.slane %v7325_v6, %v10288_v63 }
0x5eed   :  { %v7336_v36 = vsel %vm4726_vm13, %v7335_v53, %v7331_v1  ;;  %v7591_v1 = vld [vmem:[%s10901_s0 + $0x480] sm:$0xff]  ;;  %v7592_v53 = vld [vmem:[%s10901_s0 + $0x490] sm:$0xff] }
0x5eee   :  { %v7338_v21 = vsel %vm4729_vm14, %v7336_v36, -inf  ;;  %v8967_v36 = vpack.c.bf16 %v7592_v53, %v7591_v1 }
0x5eef   :  { %7339 = vmax.xlane.f32.xlu1 %v7338_v21 }
0x5ef0   :  { %8968 = vmatpush3.bf16.msra.mxu0 %v8967_v36 }
0x5ef1   :  { %8969 = vmatprep.subr.bf16.mxu0 %v9410_v3 }
0x5f7c   :  { %v7340_v38 = vpop.xlane.xlu1 %7339 }
0x5f7d   :  { %v7345_v11 = vrot.slane %v7340_v38, %v9720_v62  ;;  %v7349_v54 = vrot.slane %v7340_v38, %v10295_v13  ;;  %v7594_v38 = vld [vmem:[%s10901_s0 + $0x4b0] sm:$0xff] }
0x5f7f   :  { %v7352_v56 = vsub.f32 %v7322_v34, %v7345_v11  ;;  %v7353_v60 = vsub.f32 %v7325_v6, %v7349_v54 }
0x5f81   :  { %v7354_v50 = vmul.f32 1.442695, %v7352_v56  ;;  %v7356_v16 = vmul.f32 1.442695, %v7353_v60  ;;  %v7595_v56 = vld [vmem:[%s10901_s0 + $0x4c0] sm:$0xff]  ;;  %v7596_v60 = vld [vmem:[%s10901_s0 + $0x4d0] sm:$0xff] }
0x5f83   :  { %9392 = vpow2.f32 %v7354_v50  ;;  %v7537_v50 = vld [vmem:[#allocation11 + $0x2] sm:$0x3] }
0x5f84   :  { %9394 = vpow2.f32 %v7356_v16  ;;  %v7538_v16 = vld [vmem:[#allocation11 + $0x4] sm:$0x3] }
0x5f8d   :  { %v9393_v51 = vpop.eup %9392 }
0x5f8e   :  { %v9395_v61 = vpop.eup %9394  ;;  %7361 = vperm.xlu0 %9050, %v9393_v51  }
0x5f8f   :  { %7364 = vperm.xlu1 %9051, %v9395_v61  }
0x600d   :  { %v7362_v30 = vpop.permute.xlu0 %7361 }
0x600e   :  { %v7365_v49 = vpop.permute.xlu1 %7364  ;;  %v7369_v37 = vrot.slane %v7362_v30, %v10288_v63  ;;  %v7536_v30 = vld [vmem:[#allocation11] sm:$0x3] }
0x600f   :  { %v7373_v42 = vrot.slane %v7365_v49, %v10288_v63  ;;  %v7566_v49 = vcombine.low %v7536_v30, %v7537_v50 }
0x6011   :  { %v7374_v20 = vsel %vm4726_vm13, %v7373_v42, %v7369_v37  ;;  %v7597_v37 = vld [vmem:[%s10901_s0 + $0x4e0] sm:$0xff]  ;;  %v7598_v42 = vld [vmem:[%s10901_s0 + $0x4f0] sm:$0xff] }
0x6012   :  { %v7376_v43 = vsel %vm4729_vm14, %v7374_v20, 0.0 }
0x6013   :  { %7377 = vadd.xlane.f32.xlu1 %v7376_v43  ;;  %v8976_v43 = vpack.c.bf16 %v7598_v42, %v7597_v37 }
0x60a0   :  { %v7378_v14 = vpop.xlane.xlu1 %7377 }
0x60a1   :  { %v7383_v24 = vrot.slane %v7378_v14, %v9720_v62  ;;  %v7387_v22 = vrot.slane %v7378_v14, %v10295_v13 }
0x60a3   :  { %9396 = vrcp.f32 %v7383_v24 }
0x60a4   :  { %9398 = vrcp.f32 %v7387_v22  ;;  %v7574_v22 = vrot.slane %v7566_v49, %v9492_v17 }
0x60ad   :  { %v9397_v39 = vpop.eup %9396 }
0x60ae   :  { %v7391_v58 = vmul.f32 %v9397_v39, %v9393_v51  ;;  %v9399_v0 = vpop.eup %9398  ;;  %v8973_v51 = vpack.c.bf16 %v7596_v60, %v7595_v56  ;;  %v7599_v39 = vld [vmem:[%s10901_s0 + $0x500] sm:$0xff] }
0x60af   :  { %v7393_v55 = vmul.f32 %v9399_v0, %v9395_v61 }
0x60b0   :  { %7396 = vperm.xlu0 %9050, %v7391_v58   ;;  %v9409_v58 = vld [vmem:[%s10901_s0 + $0x50] sm:$0xff] }
0x60b4   :  { %7401 = vperm.xlu0 %9050, %v7393_v55   ;;  %v7533_v55 = vld [vmem:[#allocation10 + $0x2] sm:$0x3] }
0x612f   :  { %v7397_v7 = vpop.permute.xlu0 %7396 }
0x6130   :  { %v7404_v63 = vmul.f32 %v7397_v7, %v9781_v23  ;;  %v7532_v7 = vld [vmem:[#allocation10] sm:$0x3] }
0x6132   :  { %v7406_v15 = vsel %vm153_vm3, %v7404_v63, 0.0  ;;  %v7534_v63 = vld [vmem:[#allocation10 + $0x4] sm:$0x3] }
0x6133   :  { %v7407_v48 = vrot.slane %v7406_v15, 4  ;;  %v7402_v40 = vpop.permute.xlu0 %7401 }
0x6134   :  { %v7405_v41 = vmul.f32 %v7402_v40, %v9793_v33  ;;  %v7421_v33 = vld [vmem:[#allocation7 + $0x6] sm:$0x3] }
0x6135   :  { %v7408_v62 = vadd.f32 %v7407_v48, %v7406_v15  ;;  %v7422_v45 = vadd.f32 %v7421_v33, %v10813_v29 }
0x6136   :  { %v7413_v13 = vsel %vm153_vm3, %v7405_v41, 0.0 }
0x6137   :  { %v7409_v32 = vrot.slane %v7408_v62, 2  ;;  %v7414_v44 = vrot.slane %v7413_v13, 4 }
0x6139   :  { %v7410_v26 = vadd.f32 %v7409_v32, %v7408_v62  ;;  %v7415_v9 = vadd.f32 %v7414_v44, %v7413_v13 }
0x613b   :  { %v7416_v2 = vrot.slane %v7415_v9, 2  ;;  %v7411_v31 = vrot.slane %v7410_v26, 1 }
0x613d   :  { %v7417_v46 = vadd.f32 %v7416_v2, %v7415_v9  ;;  %v7412_v12 = vadd.f32 %v7411_v31, %v7410_v26  ;;  %v7600_v9 = vld [vmem:[%s10901_s0 + $0x510] ss:$0 sm:$0xff] }
0x613f   :  { %v7418_v57 = vrot.slane %v7417_v46, 1 }
0x6141   :  { %v7419_v52 = vadd.f32 %v7418_v57, %v7417_v46 }
0x6143   :  { %v7425_v23 = vsel %vm4726_vm13, %v7419_v52, %v7412_v12 }
0x6144   :  { %8615 = vmatmul.mubr.msk.f32.vlgmr.msra.gmra.mrb[66].mxu1 %vm153_vm3, %v7425_v23  ;;  %7531 = vst.msk [vmem:[#allocation11 + $0x6] sm:$0x3] %vm256_vm2, %v7425_v23 }
0x614b   :  { %v7539_v54 = vld [vmem:[#allocation11 + $0x6] sm:$0x3] }
0x614c   :  { %v7567_v61 = vcombine.low %v7538_v16, %v7539_v54 }
0x614e   :  { %v7581_v24 = vrot.slane %v7567_v61, %v9492_v17 }
0x6217   :  { %v7494_v35 = vpop.f32.mrb[66].mxu1 }
0x6218   :  { %v7498_v19 = vadd.f32 %v7494_v35, %v7422_v45  ;;  %v8616_v47 = vpop.f32.mrb[67].mxu1 }
0x621a   :  { %9400 = vtanh.f32 %v7498_v19  ;;  %v7849_v8 = vmul.f32 -1.442695, %v7498_v19 }
0x621c   :  { %9402 = vpow2.f32 %v7849_v8 }
0x6224   :  { %v9401_v5 = vpop.eup %9400 }
0x6225   :  { %7508 = vrot.lane.b32.xlu0 %v9401_v5, %s9414_s25 }
0x6226   :  { %v9403_v28 = vpop.eup %9402 }
0x6227   :  { %v7502_v18 = vadd.f32 1.0, %v9403_v28 }
0x6229   :  { %9404 = vrcp.f32 %v7502_v18 }
0x6233   :  { %v9405_v10 = vpop.eup %9404 }
0x6234   :  { %v7506_v34 = vmul.f32 %v9405_v10, %v10804_v27  ;;  %v7593_v27 = vld [vmem:[%s10901_s0 + $0x4a0] sm:$0xff] }
0x6235   :  { %v8970_v11 = vpack.c.bf16 %v7594_v38, %v7593_v27 }
0x6237   :  { %8971 = vmatpush3.bf16.msra.mxu0 %v8970_v11 }
0x6238   :  { %8972 = vmatprep.subr.bf16.mxu0 %v9410_v3 }
0x623b   :  { %8974 = vmatpush3.bf16.msra.mxu0 %v8973_v51 }
0x623c   :  { %8975 = vmatprep.subr.bf16.mxu0 %v9410_v3  ;;  %v7582_v3 = vcombine.low %v7574_v22, %v7581_v24 }
0x623f   :  { %8977 = vmatpush3.bf16.msra.mxu0 %v8976_v43 }
0x6240   :  { %8633 = vmatprep.subr.mxu0 %v9412_v4  ;;  %v7544_v4 = vcombine.low %v7532_v7, %v7533_v55 }
0x6242   :  { %v7552_v41 = vrot.slane %v7544_v4, %v9492_v17 }
0x6243   :  { %8634 = vmatpush3.msra.mxu0 %v7599_v39 }
0x6297   :  { %v7509_v25 = vpop.permute.xlu0 %7508 }
0x6298   :  { %v7511_v59 = vmul.f32 %v9405_v10, %v7509_v25 }
0x629a   :  { %7513 = vrot.lane.b32.xlu0 %v7511_v59, %s9415_s26 }
0x630c   :  { %v7514_v29 = vpop.permute.xlu0 %7513 }
0x630d   :  { %v7516_v6 = vadd.f32 %v7514_v29, %v7506_v34 }
0x630f   :  { %9406 = vtanh.f32 %v7516_v6 }
0x6319   :  { %v9407_v21 = vpop.eup %9406 }
0x631a   :  { %7519 = vrot.lane.b32.xlu0 %v9407_v21, %s9414_s25 }
0x638c   :  { %v7520_v20 = vpop.permute.xlu0 %7519 }
0x638d   :  { %v7522_v14 = vmul.f32 %v9405_v10, %v7520_v20 }
0x638f   :  { %7524 = vrot.lane.b32.xlu0 %v7522_v14, %s9415_s26 }
0x6393   :  { %7583 = vrot.lane.b32.xlu0 %v7582_v3, %s9415_s26 }
0x6397   :  { %7586 = vrot.lane.b32.xlu0 %v9409_v58, %s9414_s25 }
0x6401   :  { %v7525_v0 = vpop.permute.xlu0 %7524 }
0x6402   :  { %7528 = vst.msk [vmem:[#allocation10 + $0x6] sm:$0x3] %vm256_vm2, %v7525_v0 }
0x6405   :  { %v7584_v40 = vpop.permute.xlu0 %7583 }
0x6409   :  { %v7535_v15 = vld [vmem:[#allocation10 + $0x6] sm:$0x3]  ;;  %v7587_v32 = vpop.permute.xlu0 %7586 }
0x640a   :  { %v7545_v48 = vcombine.low %v7534_v63, %v7535_v15 }
0x640c   :  { %v7559_v62 = vrot.slane %v7545_v48, %v9492_v17 }
0x640e   :  { %v7560_v13 = vcombine.low %v7552_v41, %v7559_v62 }
0x6410   :  { %v7589_v44 = vsel %vm153_vm3, %v7560_v13, %v7584_v40 }
0x6411   :  { %v7590_v26 = vsel %vm5951_vm15, %v7589_v44, %v7587_v32 }
0x6412   :  { %8636 = vmatmul.mubr.msk.f32.vlgmr.msra.gmra.mrb[70].mxu0 %vm5963_vm0, %v7590_v26 }
0x64e5   :  { %v7670_v2 = vpop.f32.mrb[70].mxu0 }
0x64e6   :  { %v7671_v31 = vadd.f32 %v7670_v2, %v7600_v9  ;;  %v8637_v46 = vpop.f32.mrb[71].mxu0 }
0x64e8   :  { %7674 = vst [vmem:[%s10903_s2] sm:$0xff] %v7671_v31 }

</bundles_post_ra>
